<compile_context>
chip_gen: v6e
topology: v6e:2x2x1
jax: 0.10.0
libtpu: 0.0.40
codegen_flags: <defaults>
</compile_context>

<pallas_src>
import math

import jax
import jax.numpy as jnp
from jax import lax
from jax.experimental import pallas as pl
from jax.experimental.pallas import tpu as pltpu

# ---- small config consistent with the module's forward -------------------
BATCH = 2
SEQ = 16
TOKENS = BATCH * SEQ           # 32 rows, fed to the MXU as one slab
HIDDEN = 128
HEADS = 4
HEAD_DIM = HIDDEN // HEADS
FFN = 256
VOCAB = 512                    # stands in for 30522
LINEAR_UNITS = 128
NUM_LAYERS = 2
MAX_POS = 64
TYPE_VOCAB = 2
LN_EPS = 1e-12


# =========================== in-kernel helpers =============================

def _gelu_tanh(x):
    # TODO(synk): HF BERT uses exact erf-GELU; tanh approximation used here
    # (Mosaic-friendly, EUP tanh).
    c = 0.7978845608028654  # sqrt(2/pi)
    return 0.5 * x * (1.0 + jnp.tanh(c * (x + 0.044715 * x * x * x)))


def _layernorm(x, g, b, eps=LN_EPS):
    # single-pass LN: one pair of cross-lane reductions, var = E[x^2] - E[x]^2
    mu = jnp.mean(x, axis=-1, keepdims=True)
    ms = jnp.mean(x * x, axis=-1, keepdims=True)
    var = jnp.maximum(ms - mu * mu, 0.0)
    return (x - mu) * lax.rsqrt(var + eps) * g + b


def _mm(a, b):
    # bf16 MXU inputs, f32 accumulation.
    return jnp.dot(a.astype(jnp.bfloat16), b.astype(jnp.bfloat16),
                   preferred_element_type=jnp.float32)


# =========================== fused Pallas kernel ===========================

def _bert_fused_kernel(
        x_ref, mask_ref, emb_g_ref, emb_b_ref,
        wqkv_ref, bqkv_ref, wo_ref, bo_ref, ln1_g_ref, ln1_b_ref,
        w1_ref, b1_ref, w2_ref, b2_ref, ln2_g_ref, ln2_b_ref,
        mlm_w_ref, mlm_b_ref, mlm_g_ref, mlm_bb_ref,
        wfused_ref, bfused_ref, cls_w_ref, cls_b_ref,
        o_ref, x_scr):
    """grid = (NUM_LAYERS,); the [B*S, H] activation stays resident in x_scr."""
    l = pl.program_id(0)

    # ---- layer 0: load embeddings and apply the embedding LayerNorm ----
    @pl.when(l == 0)
    def _():
        x_scr[...] = _layernorm(x_ref[...], emb_g_ref[...], emb_b_ref[...])

    x = x_scr[...]                      # [B*S, H] f32 (VMEM resident)
    add_mask = mask_ref[...]            # [B*S, B*S] additive (pad + cross-batch)

    # ---- fused QKV projection over the full B*S slab (one MXU pass) ----
    # (1/sqrt(head_dim) softmax scale is pre-folded into the Q columns)
    qkv = _mm(x, wqkv_ref[0]) + bqkv_ref[0]          # [B*S, 3H] f32
    q = qkv[:, :HIDDEN]
    k = qkv[:, HIDDEN:2 * HIDDEN]
    v = qkv[:, 2 * HIDDEN:]
    wo = wo_ref[0]                                   # [H, H]

    # ---- attention; heads merged through the output projection:
    #      ctx @ Wo == sum_h ctx_h @ Wo[h*Dh:(h+1)*Dh, :]  (lane-dense result)
    attn = jnp.zeros((TOKENS, HIDDEN), jnp.float32)
    for h in range(HEADS):               # HEADS=4, unrolled; all 2-D MXU ops
        lo = h * HEAD_DIM
        hi = lo + HEAD_DIM
        s = lax.dot_general(q[:, lo:hi].astype(jnp.bfloat16),
                            k[:, lo:hi].astype(jnp.bfloat16),
                            (((1,), (1,)), ((), ())),
                            preferred_element_type=jnp.float32)  # [B*S, B*S]
        s = s + add_mask
        p = jnp.exp(s - jnp.max(s, axis=-1, keepdims=True))
        p = p * pl.reciprocal(jnp.sum(p, axis=-1, keepdims=True), approx=True)
        ctx = _mm(p, v[:, lo:hi])                    # [B*S, Dh]
        attn = attn + _mm(ctx, wo[lo:hi, :])         # [B*S, H]
    attn = attn + bo_ref[0]

    # ---- residual + LN1, FFN (GELU) + residual + LN2, all fused ----
    x = _layernorm(x + attn, ln1_g_ref[0], ln1_b_ref[0])
    h1 = _gelu_tanh(_mm(x, w1_ref[0]) + b1_ref[0])
    x = _layernorm(x + _mm(h1, w2_ref[0]) + b2_ref[0],
                   ln2_g_ref[0], ln2_b_ref[0])
    x_scr[...] = x

    # ---- last layer: MLM transform + collapsed (decoder @ pre_classifier)
    #      + ReLU + classifier.  Computed for the full 32-row slab (cheaper and
    #      more robust than a strided CLS gather); glue keeps only token 0.
    @pl.when(l == pl.num_programs(0) - 1)
    def _():
        hm = _gelu_tanh(_mm(x, mlm_w_ref[...]) + mlm_b_ref[...])
        hm = _layernorm(hm, mlm_g_ref[...], mlm_bb_ref[...])
        pooled = jnp.maximum(_mm(hm, wfused_ref[...]) + bfused_ref[...], 0.0)
        # bert_drop: eval mode -> identity
        o_ref[...] = (_mm(pooled, cls_w_ref[...]) + cls_b_ref[...]
                      ).astype(o_ref.dtype)


def bert_fused_forward(params, x_emb, big_mask):
    """x_emb: [B*S, H] f32 pre-LN embeddings; big_mask: [B*S, B*S] additive."""
    fixed = lambda s: pl.BlockSpec(s, lambda l: (0, 0))
    per_layer = lambda s: pl.BlockSpec((1,) + s, lambda l: (l, 0, 0))
    # TODO(synk): on v7x a leading "parallel" axis (e.g. over batch/seq tiles)
    # would engage both TensorCores; at B*S=32 a single sequential layer grid
    # with the full slab resident in VMEM is the faster layout.
    return pl.pallas_call(
        _bert_fused_kernel,
        out_shape=jax.ShapeDtypeStruct((TOKENS, 2), jnp.float32),
        grid=(NUM_LAYERS,),
        in_specs=[
            fixed((TOKENS, HIDDEN)),                        # x (embeddings)
            fixed((TOKENS, TOKENS)),                        # additive mask
            fixed((1, HIDDEN)), fixed((1, HIDDEN)),         # embedding LN g/b
            per_layer((HIDDEN, 3 * HIDDEN)),                # wqkv   [L,H,3H]
            per_layer((1, 3 * HIDDEN)),                     # bqkv
            per_layer((HIDDEN, HIDDEN)),                    # wo
            per_layer((1, HIDDEN)),                         # bo
            per_layer((1, HIDDEN)), per_layer((1, HIDDEN)), # ln1 g/b
            per_layer((HIDDEN, FFN)), per_layer((1, FFN)),  # w1/b1
            per_layer((FFN, HIDDEN)), per_layer((1, HIDDEN)),  # w2/b2
            per_layer((1, HIDDEN)), per_layer((1, HIDDEN)), # ln2 g/b
            fixed((HIDDEN, HIDDEN)), fixed((1, HIDDEN)),    # mlm_w / mlm_b
            fixed((1, HIDDEN)), fixed((1, HIDDEN)),         # mlm LN g/b
            fixed((HIDDEN, LINEAR_UNITS)),                  # W_fused = dec_w@pre_w
            fixed((1, LINEAR_UNITS)),                       # b_fused
            fixed((LINEAR_UNITS, 2)), fixed((1, 2)),        # classifier w/b
        ],
        out_specs=fixed((TOKENS, 2)),
        scratch_shapes=[pltpu.VMEM((TOKENS, HIDDEN), jnp.float32)],
        compiler_params=pltpu.CompilerParams(
            dimension_semantics=("arbitrary",)),            # layers are sequential
    )(x_emb, big_mask,
      params["emb_ln_g"], params["emb_ln_b"],
      params["wqkv"], params["bqkv"], params["wo"], params["bo"],
      params["ln1_g"], params["ln1_b"],
      params["w1"], params["b1"], params["w2"], params["b2"],
      params["ln2_g"], params["ln2_b"],
      params["mlm_w"], params["mlm_b"], params["mlm_ln_g"], params["mlm_ln_b"],
      params["w_fused"], params["b_fused"], params["cls_w"], params["cls_b"])


# =========================== model (glue in plain JAX) =====================

def bert_base_uncased_forward(params, ids, mask):
    B, S = ids.shape
    # Embeddings (dynamic gather stays in plain JAX glue); LN happens in-kernel.
    x = (params["word_emb"][ids].astype(jnp.float32)
         + params["pos_emb"][:S][None, :, :]
         + params["type_emb"][0][None, None, :])            # [B, S, H] f32
    x = x.reshape(B * S, HIDDEN)
    # embedding dropout: eval mode -> identity

    # Flat additive attention mask for the [B*S, B*S] score matrix:
    #   -10000 on padded keys (BERT convention), -1e9 across batch boundaries
    #   (exp underflows to 0 -> identical to per-batch softmax).
    pad = (1.0 - mask.astype(jnp.float32)) * -10000.0        # [B, S]
    key_pad = pad.reshape(B * S)
    batch_of = jnp.arange(B * S, dtype=jnp.int32) // S
    same_batch = batch_of[:, None] == batch_of[None, :]
    big_mask = jnp.where(same_batch, key_pad[None, :], -1e9).astype(jnp.float32)

    out_tokens = bert_fused_forward(params, x, big_mask)     # [B*S, 2]
    return out_tokens.reshape(B, S, 2)[:, 0, :]              # [CLS] rows -> [B, 2]


# =========================== parameter init ================================

def init_params(key):
    keys = iter(jax.random.split(key, 64))

    def nrm_f32(shape, scale=0.02):
        return scale * jax.random.normal(next(keys), shape, dtype=jnp.float32)

    def nrm(shape, dtype=jnp.bfloat16, scale=0.02):
        return nrm_f32(shape, scale).astype(dtype)

    word_emb = nrm((VOCAB, HIDDEN))                  # bf16, tied with decoder

    # ---- per-layer encoder weights, stacked along a leading layer axis ----
    scale = 1.0 / math.sqrt(HEAD_DIM)                # folded into Wq (and bq)
    wqkv, bqkv, wo, bo = [], [], [], []
    ln1_g, ln1_b, w1, b1 = [], [], [], []
    w2, b2, ln2_g, ln2_b = [], [], [], []
    for _ in range(NUM_LAYERS):
        wq = nrm_f32((HIDDEN, HIDDEN)) * scale       # softmax scale pre-applied
        wk = nrm_f32((HIDDEN, HIDDEN))
        wv = nrm_f32((HIDDEN, HIDDEN))
        wqkv.append(jnp.concatenate([wq, wk, wv], axis=1).astype(jnp.bfloat16))
        bqkv.append(jnp.zeros((1, 3 * HIDDEN), jnp.float32))  # bq would be scaled too
        wo.append(nrm((HIDDEN, HIDDEN)))
        bo.append(jnp.zeros((1, HIDDEN), jnp.float32))
        ln1_g.append(jnp.ones((1, HIDDEN), jnp.float32))
        ln1_b.append(jnp.zeros((1, HIDDEN), jnp.float32))
        w1.append(nrm((HIDDEN, FFN)))
        b1.append(jnp.zeros((1, FFN), jnp.float32))
        w2.append(nrm((FFN, HIDDEN)))
        b2.append(jnp.zeros((1, HIDDEN), jnp.float32))
        ln2_g.append(jnp.ones((1, HIDDEN), jnp.float32))
        ln2_b.append(jnp.zeros((1, HIDDEN), jnp.float32))

    stack = lambda xs: jnp.stack(xs, axis=0)

    # ---- head: tied decoder + pre_classifier collapsed algebraically (f32) ----
    dec_w = word_emb.astype(jnp.float32).T           # [H, VOCAB]  (tied weight)
    dec_b = jnp.zeros((1, VOCAB), jnp.float32)
    pre_w = nrm_f32((VOCAB, LINEAR_UNITS))
    pre_b = jnp.zeros((1, LINEAR_UNITS), jnp.float32)
    w_fused = dec_w @ pre_w                          # [H, LINEAR_UNITS] f32
    b_fused = dec_b @ pre_w + pre_b                  # [1, LINEAR_UNITS] f32

    return {
        "word_emb": word_emb,
        "pos_emb": nrm((MAX_POS, HIDDEN), jnp.float32),
        "type_emb": nrm((TYPE_VOCAB, HIDDEN), jnp.float32),
        "emb_ln_g": jnp.ones((1, HIDDEN), jnp.float32),
        "emb_ln_b": jnp.zeros((1, HIDDEN), jnp.float32),
        "wqkv": stack(wqkv), "bqkv": stack(bqkv),
        "wo": stack(wo), "bo": stack(bo),
        "ln1_g": stack(ln1_g), "ln1_b": stack(ln1_b),
        "w1": stack(w1), "b1": stack(b1),
        "w2": stack(w2), "b2": stack(b2),
        "ln2_g": stack(ln2_g), "ln2_b": stack(ln2_b),
        "mlm_w": nrm((HIDDEN, HIDDEN)),
        "mlm_b": jnp.zeros((1, HIDDEN), jnp.float32),
        "mlm_ln_g": jnp.ones((1, HIDDEN), jnp.float32),
        "mlm_ln_b": jnp.zeros((1, HIDDEN), jnp.float32),
        "w_fused": w_fused,
        "b_fused": b_fused,
        "cls_w": nrm((LINEAR_UNITS, 2), jnp.float32),
        "cls_b": jnp.zeros((1, 2), jnp.float32),
    }


# =========================== main ==========================================

if __name__ == "__main__":
    key = jax.random.PRNGKey(0)
    pkey, ikey = jax.random.split(key)
    params = init_params(pkey)

    ids = jax.random.randint(ikey, (BATCH, SEQ), 0, VOCAB, dtype=jnp.int32)
    mask = jnp.ones((BATCH, SEQ), jnp.int32).at[1, SEQ - 4:].set(0)  # pad tail of ex. 1

    fwd = jax.jit(bert_base_uncased_forward)
    out = jax.block_until_ready(fwd(params, ids, mask))
    assert out.shape == (BATCH, 2) and out.dtype == jnp.float32
    print("KERNEL_OK")
</pallas_src>

<mosaic_0001>
module attributes {stable_mosaic.version = 11 : i64} {
  func.func @_bert_fused_kernel(%arg0: i32, %arg1: memref<32x128xf32, #tpu.memory_space<vmem>>, %arg2: memref<32x32xf32, #tpu.memory_space<vmem>>, %arg3: memref<1x128xf32, #tpu.memory_space<vmem>>, %arg4: memref<1x128xf32, #tpu.memory_space<vmem>>, %arg5: memref<1x128x384xbf16, #tpu.memory_space<vmem>>, %arg6: memref<1x1x384xf32, #tpu.memory_space<vmem>>, %arg7: memref<1x128x128xbf16, #tpu.memory_space<vmem>>, %arg8: memref<1x1x128xf32, #tpu.memory_space<vmem>>, %arg9: memref<1x1x128xf32, #tpu.memory_space<vmem>>, %arg10: memref<1x1x128xf32, #tpu.memory_space<vmem>>, %arg11: memref<1x128x256xbf16, #tpu.memory_space<vmem>>, %arg12: memref<1x1x256xf32, #tpu.memory_space<vmem>>, %arg13: memref<1x256x128xbf16, #tpu.memory_space<vmem>>, %arg14: memref<1x1x128xf32, #tpu.memory_space<vmem>>, %arg15: memref<1x1x128xf32, #tpu.memory_space<vmem>>, %arg16: memref<1x1x128xf32, #tpu.memory_space<vmem>>, %arg17: memref<128x128xbf16, #tpu.memory_space<vmem>>, %arg18: memref<1x128xf32, #tpu.memory_space<vmem>>, %arg19: memref<1x128xf32, #tpu.memory_space<vmem>>, %arg20: memref<1x128xf32, #tpu.memory_space<vmem>>, %arg21: memref<128x128xf32, #tpu.memory_space<vmem>>, %arg22: memref<1x128xf32, #tpu.memory_space<vmem>>, %arg23: memref<128x2xf32, #tpu.memory_space<vmem>>, %arg24: memref<1x2xf32, #tpu.memory_space<vmem>>, %arg25: memref<32x2xf32, #tpu.memory_space<vmem>>, %arg26: memref<32x128xf32, #tpu.memory_space<vmem>>) attributes {dimension_semantics = [#tpu.dimension_semantics<arbitrary>], iteration_bounds = array<i64: 2>, scalar_prefetch = 0 : i64, scratch_operands = 1 : i64, tpu.core_type = #tpu.core_type<tc>, window_params = [{pipeline_mode = #tpu.pipeline_mode<synchronous>, transform_indices = @transform_0, window_bounds = array<i64: 32, 128>}, {pipeline_mode = #tpu.pipeline_mode<synchronous>, transform_indices = @transform_1, window_bounds = array<i64: 32, 32>}, {pipeline_mode = #tpu.pipeline_mode<synchronous>, transform_indices = @transform_2, window_bounds = array<i64: 1, 128>}, {pipeline_mode = #tpu.pipeline_mode<synchronous>, transform_indices = @transform_3, window_bounds = array<i64: 1, 128>}, {transform_indices = @transform_4, window_bounds = array<i64: 1, 128, 384>}, {transform_indices = @transform_5, window_bounds = array<i64: 1, 1, 384>}, {transform_indices = @transform_6, window_bounds = array<i64: 1, 128, 128>}, {transform_indices = @transform_7, window_bounds = array<i64: 1, 1, 128>}, {transform_indices = @transform_8, window_bounds = array<i64: 1, 1, 128>}, {transform_indices = @transform_9, window_bounds = array<i64: 1, 1, 128>}, {transform_indices = @transform_10, window_bounds = array<i64: 1, 128, 256>}, {transform_indices = @transform_11, window_bounds = array<i64: 1, 1, 256>}, {transform_indices = @transform_12, window_bounds = array<i64: 1, 256, 128>}, {transform_indices = @transform_13, window_bounds = array<i64: 1, 1, 128>}, {transform_indices = @transform_14, window_bounds = array<i64: 1, 1, 128>}, {transform_indices = @transform_15, window_bounds = array<i64: 1, 1, 128>}, {pipeline_mode = #tpu.pipeline_mode<synchronous>, transform_indices = @transform_16, window_bounds = array<i64: 128, 128>}, {pipeline_mode = #tpu.pipeline_mode<synchronous>, transform_indices = @transform_17, window_bounds = array<i64: 1, 128>}, {pipeline_mode = #tpu.pipeline_mode<synchronous>, transform_indices = @transform_18, window_bounds = array<i64: 1, 128>}, {pipeline_mode = #tpu.pipeline_mode<synchronous>, transform_indices = @transform_19, window_bounds = array<i64: 1, 128>}, {pipeline_mode = #tpu.pipeline_mode<synchronous>, transform_indices = @transform_20, window_bounds = array<i64: 128, 128>}, {pipeline_mode = #tpu.pipeline_mode<synchronous>, transform_indices = @transform_21, window_bounds = array<i64: 1, 128>}, {pipeline_mode = #tpu.pipeline_mode<synchronous>, transform_indices = @transform_22, window_bounds = array<i64: 128, 2>}, {pipeline_mode = #tpu.pipeline_mode<synchronous>, transform_indices = @transform_23, window_bounds = array<i64: 1, 2>}, {pipeline_mode = #tpu.pipeline_mode<synchronous>, transform_indices = @transform_24, window_bounds = array<i64: 32, 2>}]} {
    %c0_i32 = arith.constant 0 : i32
    %0 = arith.cmpi eq, %arg0, %c0_i32 : i32
    %1 = arith.extui %0 : i1 to i32
    %c0_i32_0 = arith.constant 0 : i32
    %2 = arith.cmpi ne, %1, %c0_i32_0 : i32
    scf.if %2 {
      %c0_82 = arith.constant 0 : index
      %c0_83 = arith.constant 0 : index
      %210 = vector.load %arg1[%c0_82, %c0_83] : memref<32x128xf32, #tpu.memory_space<vmem>>, vector<32x128xf32>
      %c0_84 = arith.constant 0 : index
      %c0_85 = arith.constant 0 : index
      %211 = vector.load %arg3[%c0_84, %c0_85] : memref<1x128xf32, #tpu.memory_space<vmem>>, vector<1x128xf32>
      %c0_86 = arith.constant 0 : index
      %c0_87 = arith.constant 0 : index
      %212 = vector.load %arg4[%c0_86, %c0_87] : memref<1x128xf32, #tpu.memory_space<vmem>>, vector<1x128xf32>
      %cst_88 = arith.constant dense<0.000000e+00> : vector<32xf32>
      %213 = vector.multi_reduction <add>, %210, %cst_88 [1] : vector<32x128xf32> to vector<32xf32>
      %214 = vector.shape_cast %213 : vector<32xf32> to vector<32x1xf32>
      %cst_89 = arith.constant 1.280000e+02 : f32
      %215 = vector.broadcast %cst_89 : f32 to vector<32x1xf32>
      %216 = arith.divf %214, %215 : vector<32x1xf32>
      %217 = arith.mulf %210, %210 : vector<32x128xf32>
      %cst_90 = arith.constant dense<0.000000e+00> : vector<32xf32>
      %218 = vector.multi_reduction <add>, %217, %cst_90 [1] : vector<32x128xf32> to vector<32xf32>
      %219 = vector.shape_cast %218 : vector<32xf32> to vector<32x1xf32>
      %cst_91 = arith.constant 1.280000e+02 : f32
      %220 = vector.broadcast %cst_91 : f32 to vector<32x1xf32>
      %221 = arith.divf %219, %220 : vector<32x1xf32>
      %222 = arith.mulf %216, %216 : vector<32x1xf32>
      %223 = arith.subf %221, %222 : vector<32x1xf32>
      %cst_92 = arith.constant 0.000000e+00 : f32
      %224 = vector.broadcast %cst_92 : f32 to vector<32x1xf32>
      %225 = arith.maximumf %223, %224 : vector<32x1xf32>
      %226 = vector.broadcast %216 : vector<32x1xf32> to vector<32x128xf32>
      %227 = arith.subf %210, %226 : vector<32x128xf32>
      %cst_93 = arith.constant 9.99999996E-13 : f32
      %228 = vector.broadcast %cst_93 : f32 to vector<32x1xf32>
      %229 = arith.addf %225, %228 : vector<32x1xf32>
      %230 = math.rsqrt %229 : vector<32x1xf32>
      %231 = vector.broadcast %230 : vector<32x1xf32> to vector<32x128xf32>
      %232 = arith.mulf %227, %231 : vector<32x128xf32>
      %233 = vector.broadcast %211 : vector<1x128xf32> to vector<32x128xf32>
      %234 = arith.mulf %232, %233 : vector<32x128xf32>
      %235 = vector.broadcast %212 : vector<1x128xf32> to vector<32x128xf32>
      %236 = arith.addf %234, %235 : vector<32x128xf32>
      %c0_94 = arith.constant 0 : index
      %c0_95 = arith.constant 0 : index
      %237 = vector.load %arg26[%c0_94, %c0_95] : memref<32x128xf32, #tpu.memory_space<vmem>>, vector<32x128xf32>
      tpu.vector_store %arg26[%c0_94, %c0_95], %236 {strides = array<i32>} : memref<32x128xf32, #tpu.memory_space<vmem>>, vector<32x128xf32>,
    } else {
    }
    %c0 = arith.constant 0 : index
    %c0_1 = arith.constant 0 : index
    %3 = vector.load %arg26[%c0, %c0_1] : memref<32x128xf32, #tpu.memory_space<vmem>>, vector<32x128xf32>
    %c0_2 = arith.constant 0 : index
    %c0_3 = arith.constant 0 : index
    %4 = vector.load %arg2[%c0_2, %c0_3] : memref<32x32xf32, #tpu.memory_space<vmem>>, vector<32x32xf32>
    %c0_4 = arith.constant 0 : index
    %c0_5 = arith.constant 0 : index
    %c0_6 = arith.constant 0 : index
    %5 = vector.load %arg5[%c0_4, %c0_5, %c0_6] : memref<1x128x384xbf16, #tpu.memory_space<vmem>>, vector<1x128x384xbf16>
    %6 = vector.shape_cast %5 : vector<1x128x384xbf16> to vector<128x384xbf16>
    %7 = arith.truncf %3 : vector<32x128xf32> to vector<32x128xbf16>
    %cst = arith.constant dense<0.000000e+00> : vector<32x384xf32>
    %8 = tpu.matmul %7, %6, %cst {dimension_numbers = #tpu.dot_dimension_numbers<[1], [0], [0], [1], [0, 0, 1, 1], [], []>} : vector<32x128xbf16>, vector<128x384xbf16>, vector<32x384xf32> -> vector<32x384xf32>
    %c0_7 = arith.constant 0 : index
    %c0_8 = arith.constant 0 : index
    %c0_9 = arith.constant 0 : index
    %9 = vector.load %arg6[%c0_7, %c0_8, %c0_9] : memref<1x1x384xf32, #tpu.memory_space<vmem>>, vector<1x1x384xf32>
    %10 = vector.shape_cast %9 : vector<1x1x384xf32> to vector<1x384xf32>
    %11 = vector.broadcast %10 : vector<1x384xf32> to vector<32x384xf32>
    %12 = arith.addf %8, %11 : vector<32x384xf32>
    %13 = vector.extract_strided_slice %12 {offsets = [0, 0], sizes = [32, 128], strides = [1, 1]} : vector<32x384xf32> to vector<32x128xf32>
    %14 = vector.extract_strided_slice %12 {offsets = [0, 128], sizes = [32, 128], strides = [1, 1]} : vector<32x384xf32> to vector<32x128xf32>
    %15 = vector.extract_strided_slice %12 {offsets = [0, 256], sizes = [32, 128], strides = [1, 1]} : vector<32x384xf32> to vector<32x128xf32>
    %c0_10 = arith.constant 0 : index
    %c0_11 = arith.constant 0 : index
    %c0_12 = arith.constant 0 : index
    %16 = vector.load %arg7[%c0_10, %c0_11, %c0_12] : memref<1x128x128xbf16, #tpu.memory_space<vmem>>, vector<1x128x128xbf16>
    %17 = vector.shape_cast %16 : vector<1x128x128xbf16> to vector<128x128xbf16>
    %cst_13 = arith.constant 0.000000e+00 : f32
    %18 = vector.broadcast %cst_13 : f32 to vector<32x128xf32>
    %19 = vector.extract_strided_slice %13 {offsets = [0, 0], sizes = [32, 32], strides = [1, 1]} : vector<32x128xf32> to vector<32x32xf32>
    %20 = arith.truncf %19 : vector<32x32xf32> to vector<32x32xbf16>
    %21 = vector.extract_strided_slice %14 {offsets = [0, 0], sizes = [32, 32], strides = [1, 1]} : vector<32x128xf32> to vector<32x32xf32>
    %22 = arith.truncf %21 : vector<32x32xf32> to vector<32x32xbf16>
    %cst_14 = arith.constant dense<0.000000e+00> : vector<32x32xf32>
    %23 = tpu.matmul %20, %22, %cst_14 {dimension_numbers = #tpu.dot_dimension_numbers<[1], [1], [0], [0], [0, 0, 1, 0], [], []>} : vector<32x32xbf16>, vector<32x32xbf16>, vector<32x32xf32> -> vector<32x32xf32>
    %24 = arith.addf %23, %4 : vector<32x32xf32>
    %cst_15 = arith.constant dense<0xFF800000> : vector<32xf32>
    %25 = vector.multi_reduction <maximumf>, %24, %cst_15 [1] : vector<32x32xf32> to vector<32xf32>
    %26 = vector.shape_cast %25 : vector<32xf32> to vector<32x1xf32>
    %27 = vector.broadcast %26 : vector<32x1xf32> to vector<32x32xf32>
    %28 = arith.subf %24, %27 : vector<32x32xf32>
    %29 = math.exp %28 : vector<32x32xf32>
    %cst_16 = arith.constant dense<0.000000e+00> : vector<32xf32>
    %30 = vector.multi_reduction <add>, %29, %cst_16 [1] : vector<32x32xf32> to vector<32xf32>
    %31 = vector.shape_cast %30 : vector<32xf32> to vector<32x1xf32>
    %32 = tpu.reciprocal %31 {approx = true} : vector<32x1xf32> -> vector<32x1xf32>
    %33 = vector.broadcast %32 : vector<32x1xf32> to vector<32x32xf32>
    %34 = arith.mulf %29, %33 : vector<32x32xf32>
    %35 = vector.extract_strided_slice %15 {offsets = [0, 0], sizes = [32, 32], strides = [1, 1]} : vector<32x128xf32> to vector<32x32xf32>
    %36 = arith.truncf %34 : vector<32x32xf32> to vector<32x32xbf16>
    %37 = arith.truncf %35 : vector<32x32xf32> to vector<32x32xbf16>
    %cst_17 = arith.constant dense<0.000000e+00> : vector<32x32xf32>
    %38 = tpu.matmul %36, %37, %cst_17 {dimension_numbers = #tpu.dot_dimension_numbers<[1], [0], [0], [1], [0, 0, 1, 1], [], []>} : vector<32x32xbf16>, vector<32x32xbf16>, vector<32x32xf32> -> vector<32x32xf32>
    %39 = vector.extract_strided_slice %17 {offsets = [0, 0], sizes = [32, 128], strides = [1, 1]} : vector<128x128xbf16> to vector<32x128xbf16>
    %40 = arith.truncf %38 : vector<32x32xf32> to vector<32x32xbf16>
    %cst_18 = arith.constant dense<0.000000e+00> : vector<32x128xf32>
    %41 = tpu.matmul %40, %39, %cst_18 {dimension_numbers = #tpu.dot_dimension_numbers<[1], [0], [0], [1], [0, 0, 1, 1], [], []>} : vector<32x32xbf16>, vector<32x128xbf16>, vector<32x128xf32> -> vector<32x128xf32>
    %42 = arith.addf %18, %41 : vector<32x128xf32>
    %43 = vector.extract_strided_slice %13 {offsets = [0, 32], sizes = [32, 32], strides = [1, 1]} : vector<32x128xf32> to vector<32x32xf32>
    %44 = arith.truncf %43 : vector<32x32xf32> to vector<32x32xbf16>
    %45 = vector.extract_strided_slice %14 {offsets = [0, 32], sizes = [32, 32], strides = [1, 1]} : vector<32x128xf32> to vector<32x32xf32>
    %46 = arith.truncf %45 : vector<32x32xf32> to vector<32x32xbf16>
    %cst_19 = arith.constant dense<0.000000e+00> : vector<32x32xf32>
    %47 = tpu.matmul %44, %46, %cst_19 {dimension_numbers = #tpu.dot_dimension_numbers<[1], [1], [0], [0], [0, 0, 1, 0], [], []>} : vector<32x32xbf16>, vector<32x32xbf16>, vector<32x32xf32> -> vector<32x32xf32>
    %48 = arith.addf %47, %4 : vector<32x32xf32>
    %cst_20 = arith.constant dense<0xFF800000> : vector<32xf32>
    %49 = vector.multi_reduction <maximumf>, %48, %cst_20 [1] : vector<32x32xf32> to vector<32xf32>
    %50 = vector.shape_cast %49 : vector<32xf32> to vector<32x1xf32>
    %51 = vector.broadcast %50 : vector<32x1xf32> to vector<32x32xf32>
    %52 = arith.subf %48, %51 : vector<32x32xf32>
    %53 = math.exp %52 : vector<32x32xf32>
    %cst_21 = arith.constant dense<0.000000e+00> : vector<32xf32>
    %54 = vector.multi_reduction <add>, %53, %cst_21 [1] : vector<32x32xf32> to vector<32xf32>
    %55 = vector.shape_cast %54 : vector<32xf32> to vector<32x1xf32>
    %56 = tpu.reciprocal %55 {approx = true} : vector<32x1xf32> -> vector<32x1xf32>
    %57 = vector.broadcast %56 : vector<32x1xf32> to vector<32x32xf32>
    %58 = arith.mulf %53, %57 : vector<32x32xf32>
    %59 = vector.extract_strided_slice %15 {offsets = [0, 32], sizes = [32, 32], strides = [1, 1]} : vector<32x128xf32> to vector<32x32xf32>
    %60 = arith.truncf %58 : vector<32x32xf32> to vector<32x32xbf16>
    %61 = arith.truncf %59 : vector<32x32xf32> to vector<32x32xbf16>
    %cst_22 = arith.constant dense<0.000000e+00> : vector<32x32xf32>
    %62 = tpu.matmul %60, %61, %cst_22 {dimension_numbers = #tpu.dot_dimension_numbers<[1], [0], [0], [1], [0, 0, 1, 1], [], []>} : vector<32x32xbf16>, vector<32x32xbf16>, vector<32x32xf32> -> vector<32x32xf32>
    %63 = vector.extract_strided_slice %17 {offsets = [32, 0], sizes = [32, 128], strides = [1, 1]} : vector<128x128xbf16> to vector<32x128xbf16>
    %64 = arith.truncf %62 : vector<32x32xf32> to vector<32x32xbf16>
    %cst_23 = arith.constant dense<0.000000e+00> : vector<32x128xf32>
    %65 = tpu.matmul %64, %63, %cst_23 {dimension_numbers = #tpu.dot_dimension_numbers<[1], [0], [0], [1], [0, 0, 1, 1], [], []>} : vector<32x32xbf16>, vector<32x128xbf16>, vector<32x128xf32> -> vector<32x128xf32>
    %66 = arith.addf %42, %65 : vector<32x128xf32>
    %67 = vector.extract_strided_slice %13 {offsets = [0, 64], sizes = [32, 32], strides = [1, 1]} : vector<32x128xf32> to vector<32x32xf32>
    %68 = arith.truncf %67 : vector<32x32xf32> to vector<32x32xbf16>
    %69 = vector.extract_strided_slice %14 {offsets = [0, 64], sizes = [32, 32], strides = [1, 1]} : vector<32x128xf32> to vector<32x32xf32>
    %70 = arith.truncf %69 : vector<32x32xf32> to vector<32x32xbf16>
    %cst_24 = arith.constant dense<0.000000e+00> : vector<32x32xf32>
    %71 = tpu.matmul %68, %70, %cst_24 {dimension_numbers = #tpu.dot_dimension_numbers<[1], [1], [0], [0], [0, 0, 1, 0], [], []>} : vector<32x32xbf16>, vector<32x32xbf16>, vector<32x32xf32> -> vector<32x32xf32>
    %72 = arith.addf %71, %4 : vector<32x32xf32>
    %cst_25 = arith.constant dense<0xFF800000> : vector<32xf32>
    %73 = vector.multi_reduction <maximumf>, %72, %cst_25 [1] : vector<32x32xf32> to vector<32xf32>
    %74 = vector.shape_cast %73 : vector<32xf32> to vector<32x1xf32>
    %75 = vector.broadcast %74 : vector<32x1xf32> to vector<32x32xf32>
    %76 = arith.subf %72, %75 : vector<32x32xf32>
    %77 = math.exp %76 : vector<32x32xf32>
    %cst_26 = arith.constant dense<0.000000e+00> : vector<32xf32>
    %78 = vector.multi_reduction <add>, %77, %cst_26 [1] : vector<32x32xf32> to vector<32xf32>
    %79 = vector.shape_cast %78 : vector<32xf32> to vector<32x1xf32>
    %80 = tpu.reciprocal %79 {approx = true} : vector<32x1xf32> -> vector<32x1xf32>
    %81 = vector.broadcast %80 : vector<32x1xf32> to vector<32x32xf32>
    %82 = arith.mulf %77, %81 : vector<32x32xf32>
    %83 = vector.extract_strided_slice %15 {offsets = [0, 64], sizes = [32, 32], strides = [1, 1]} : vector<32x128xf32> to vector<32x32xf32>
    %84 = arith.truncf %82 : vector<32x32xf32> to vector<32x32xbf16>
    %85 = arith.truncf %83 : vector<32x32xf32> to vector<32x32xbf16>
    %cst_27 = arith.constant dense<0.000000e+00> : vector<32x32xf32>
    %86 = tpu.matmul %84, %85, %cst_27 {dimension_numbers = #tpu.dot_dimension_numbers<[1], [0], [0], [1], [0, 0, 1, 1], [], []>} : vector<32x32xbf16>, vector<32x32xbf16>, vector<32x32xf32> -> vector<32x32xf32>
    %87 = vector.extract_strided_slice %17 {offsets = [64, 0], sizes = [32, 128], strides = [1, 1]} : vector<128x128xbf16> to vector<32x128xbf16>
    %88 = arith.truncf %86 : vector<32x32xf32> to vector<32x32xbf16>
    %cst_28 = arith.constant dense<0.000000e+00> : vector<32x128xf32>
    %89 = tpu.matmul %88, %87, %cst_28 {dimension_numbers = #tpu.dot_dimension_numbers<[1], [0], [0], [1], [0, 0, 1, 1], [], []>} : vector<32x32xbf16>, vector<32x128xbf16>, vector<32x128xf32> -> vector<32x128xf32>
    %90 = arith.addf %66, %89 : vector<32x128xf32>
    %91 = vector.extract_strided_slice %13 {offsets = [0, 96], sizes = [32, 32], strides = [1, 1]} : vector<32x128xf32> to vector<32x32xf32>
    %92 = arith.truncf %91 : vector<32x32xf32> to vector<32x32xbf16>
    %93 = vector.extract_strided_slice %14 {offsets = [0, 96], sizes = [32, 32], strides = [1, 1]} : vector<32x128xf32> to vector<32x32xf32>
    %94 = arith.truncf %93 : vector<32x32xf32> to vector<32x32xbf16>
    %cst_29 = arith.constant dense<0.000000e+00> : vector<32x32xf32>
    %95 = tpu.matmul %92, %94, %cst_29 {dimension_numbers = #tpu.dot_dimension_numbers<[1], [1], [0], [0], [0, 0, 1, 0], [], []>} : vector<32x32xbf16>, vector<32x32xbf16>, vector<32x32xf32> -> vector<32x32xf32>
    %96 = arith.addf %95, %4 : vector<32x32xf32>
    %cst_30 = arith.constant dense<0xFF800000> : vector<32xf32>
    %97 = vector.multi_reduction <maximumf>, %96, %cst_30 [1] : vector<32x32xf32> to vector<32xf32>
    %98 = vector.shape_cast %97 : vector<32xf32> to vector<32x1xf32>
    %99 = vector.broadcast %98 : vector<32x1xf32> to vector<32x32xf32>
    %100 = arith.subf %96, %99 : vector<32x32xf32>
    %101 = math.exp %100 : vector<32x32xf32>
    %cst_31 = arith.constant dense<0.000000e+00> : vector<32xf32>
    %102 = vector.multi_reduction <add>, %101, %cst_31 [1] : vector<32x32xf32> to vector<32xf32>
    %103 = vector.shape_cast %102 : vector<32xf32> to vector<32x1xf32>
    %104 = tpu.reciprocal %103 {approx = true} : vector<32x1xf32> -> vector<32x1xf32>
    %105 = vector.broadcast %104 : vector<32x1xf32> to vector<32x32xf32>
    %106 = arith.mulf %101, %105 : vector<32x32xf32>
    %107 = vector.extract_strided_slice %15 {offsets = [0, 96], sizes = [32, 32], strides = [1, 1]} : vector<32x128xf32> to vector<32x32xf32>
    %108 = arith.truncf %106 : vector<32x32xf32> to vector<32x32xbf16>
    %109 = arith.truncf %107 : vector<32x32xf32> to vector<32x32xbf16>
    %cst_32 = arith.constant dense<0.000000e+00> : vector<32x32xf32>
    %110 = tpu.matmul %108, %109, %cst_32 {dimension_numbers = #tpu.dot_dimension_numbers<[1], [0], [0], [1], [0, 0, 1, 1], [], []>} : vector<32x32xbf16>, vector<32x32xbf16>, vector<32x32xf32> -> vector<32x32xf32>
    %111 = vector.extract_strided_slice %17 {offsets = [96, 0], sizes = [32, 128], strides = [1, 1]} : vector<128x128xbf16> to vector<32x128xbf16>
    %112 = arith.truncf %110 : vector<32x32xf32> to vector<32x32xbf16>
    %cst_33 = arith.constant dense<0.000000e+00> : vector<32x128xf32>
    %113 = tpu.matmul %112, %111, %cst_33 {dimension_numbers = #tpu.dot_dimension_numbers<[1], [0], [0], [1], [0, 0, 1, 1], [], []>} : vector<32x32xbf16>, vector<32x128xbf16>, vector<32x128xf32> -> vector<32x128xf32>
    %114 = arith.addf %90, %113 : vector<32x128xf32>
    %c0_34 = arith.constant 0 : index
    %c0_35 = arith.constant 0 : index
    %c0_36 = arith.constant 0 : index
    %115 = vector.load %arg8[%c0_34, %c0_35, %c0_36] : memref<1x1x128xf32, #tpu.memory_space<vmem>>, vector<1x1x128xf32>
    %116 = vector.shape_cast %115 : vector<1x1x128xf32> to vector<1x128xf32>
    %117 = vector.broadcast %116 : vector<1x128xf32> to vector<32x128xf32>
    %118 = arith.addf %114, %117 : vector<32x128xf32>
    %119 = arith.addf %3, %118 : vector<32x128xf32>
    %c0_37 = arith.constant 0 : index
    %c0_38 = arith.constant 0 : index
    %c0_39 = arith.constant 0 : index
    %120 = vector.load %arg9[%c0_37, %c0_38, %c0_39] : memref<1x1x128xf32, #tpu.memory_space<vmem>>, vector<1x1x128xf32>
    %121 = vector.shape_cast %120 : vector<1x1x128xf32> to vector<1x128xf32>
    %c0_40 = arith.constant 0 : index
    %c0_41 = arith.constant 0 : index
    %c0_42 = arith.constant 0 : index
    %122 = vector.load %arg10[%c0_40, %c0_41, %c0_42] : memref<1x1x128xf32, #tpu.memory_space<vmem>>, vector<1x1x128xf32>
    %123 = vector.shape_cast %122 : vector<1x1x128xf32> to vector<1x128xf32>
    %cst_43 = arith.constant dense<0.000000e+00> : vector<32xf32>
    %124 = vector.multi_reduction <add>, %119, %cst_43 [1] : vector<32x128xf32> to vector<32xf32>
    %125 = vector.shape_cast %124 : vector<32xf32> to vector<32x1xf32>
    %cst_44 = arith.constant 1.280000e+02 : f32
    %126 = vector.broadcast %cst_44 : f32 to vector<32x1xf32>
    %127 = arith.divf %125, %126 : vector<32x1xf32>
    %128 = arith.mulf %119, %119 : vector<32x128xf32>
    %cst_45 = arith.constant dense<0.000000e+00> : vector<32xf32>
    %129 = vector.multi_reduction <add>, %128, %cst_45 [1] : vector<32x128xf32> to vector<32xf32>
    %130 = vector.shape_cast %129 : vector<32xf32> to vector<32x1xf32>
    %cst_46 = arith.constant 1.280000e+02 : f32
    %131 = vector.broadcast %cst_46 : f32 to vector<32x1xf32>
    %132 = arith.divf %130, %131 : vector<32x1xf32>
    %133 = arith.mulf %127, %127 : vector<32x1xf32>
    %134 = arith.subf %132, %133 : vector<32x1xf32>
    %cst_47 = arith.constant 0.000000e+00 : f32
    %135 = vector.broadcast %cst_47 : f32 to vector<32x1xf32>
    %136 = arith.maximumf %134, %135 : vector<32x1xf32>
    %137 = vector.broadcast %127 : vector<32x1xf32> to vector<32x128xf32>
    %138 = arith.subf %119, %137 : vector<32x128xf32>
    %cst_48 = arith.constant 9.99999996E-13 : f32
    %139 = vector.broadcast %cst_48 : f32 to vector<32x1xf32>
    %140 = arith.addf %136, %139 : vector<32x1xf32>
    %141 = math.rsqrt %140 : vector<32x1xf32>
    %142 = vector.broadcast %141 : vector<32x1xf32> to vector<32x128xf32>
    %143 = arith.mulf %138, %142 : vector<32x128xf32>
    %144 = vector.broadcast %121 : vector<1x128xf32> to vector<32x128xf32>
    %145 = arith.mulf %143, %144 : vector<32x128xf32>
    %146 = vector.broadcast %123 : vector<1x128xf32> to vector<32x128xf32>
    %147 = arith.addf %145, %146 : vector<32x128xf32>
    %c0_49 = arith.constant 0 : index
    %c0_50 = arith.constant 0 : index
    %c0_51 = arith.constant 0 : index
    %148 = vector.load %arg11[%c0_49, %c0_50, %c0_51] : memref<1x128x256xbf16, #tpu.memory_space<vmem>>, vector<1x128x256xbf16>
    %149 = vector.shape_cast %148 : vector<1x128x256xbf16> to vector<128x256xbf16>
    %150 = arith.truncf %147 : vector<32x128xf32> to vector<32x128xbf16>
    %cst_52 = arith.constant dense<0.000000e+00> : vector<32x256xf32>
    %151 = tpu.matmul %150, %149, %cst_52 {dimension_numbers = #tpu.dot_dimension_numbers<[1], [0], [0], [1], [0, 0, 1, 1], [], []>} : vector<32x128xbf16>, vector<128x256xbf16>, vector<32x256xf32> -> vector<32x256xf32>
    %c0_53 = arith.constant 0 : index
    %c0_54 = arith.constant 0 : index
    %c0_55 = arith.constant 0 : index
    %152 = vector.load %arg12[%c0_53, %c0_54, %c0_55] : memref<1x1x256xf32, #tpu.memory_space<vmem>>, vector<1x1x256xf32>
    %153 = vector.shape_cast %152 : vector<1x1x256xf32> to vector<1x256xf32>
    %154 = vector.broadcast %153 : vector<1x256xf32> to vector<32x256xf32>
    %155 = arith.addf %151, %154 : vector<32x256xf32>
    %cst_56 = arith.constant 5.000000e-01 : f32
    %156 = vector.broadcast %cst_56 : f32 to vector<32x256xf32>
    %157 = arith.mulf %156, %155 : vector<32x256xf32>
    %cst_57 = arith.constant 4.471500e-02 : f32
    %158 = vector.broadcast %cst_57 : f32 to vector<32x256xf32>
    %159 = arith.mulf %158, %155 : vector<32x256xf32>
    %160 = arith.mulf %159, %155 : vector<32x256xf32>
    %161 = arith.mulf %160, %155 : vector<32x256xf32>
    %162 = arith.addf %155, %161 : vector<32x256xf32>
    %cst_58 = arith.constant 0.797884583 : f32
    %163 = vector.broadcast %cst_58 : f32 to vector<32x256xf32>
    %164 = arith.mulf %163, %162 : vector<32x256xf32>
    %165 = math.tanh %164 : vector<32x256xf32>
    %cst_59 = arith.constant 1.000000e+00 : f32
    %166 = vector.broadcast %cst_59 : f32 to vector<32x256xf32>
    %167 = arith.addf %166, %165 : vector<32x256xf32>
    %168 = arith.mulf %157, %167 : vector<32x256xf32>
    %c0_60 = arith.constant 0 : index
    %c0_61 = arith.constant 0 : index
    %c0_62 = arith.constant 0 : index
    %169 = vector.load %arg13[%c0_60, %c0_61, %c0_62] : memref<1x256x128xbf16, #tpu.memory_space<vmem>>, vector<1x256x128xbf16>
    %170 = vector.shape_cast %169 : vector<1x256x128xbf16> to vector<256x128xbf16>
    %171 = arith.truncf %168 : vector<32x256xf32> to vector<32x256xbf16>
    %cst_63 = arith.constant dense<0.000000e+00> : vector<32x128xf32>
    %172 = tpu.matmul %171, %170, %cst_63 {dimension_numbers = #tpu.dot_dimension_numbers<[1], [0], [0], [1], [0, 0, 1, 1], [], []>} : vector<32x256xbf16>, vector<256x128xbf16>, vector<32x128xf32> -> vector<32x128xf32>
    %173 = arith.addf %147, %172 : vector<32x128xf32>
    %c0_64 = arith.constant 0 : index
    %c0_65 = arith.constant 0 : index
    %c0_66 = arith.constant 0 : index
    %174 = vector.load %arg14[%c0_64, %c0_65, %c0_66] : memref<1x1x128xf32, #tpu.memory_space<vmem>>, vector<1x1x128xf32>
    %175 = vector.shape_cast %174 : vector<1x1x128xf32> to vector<1x128xf32>
    %176 = vector.broadcast %175 : vector<1x128xf32> to vector<32x128xf32>
    %177 = arith.addf %173, %176 : vector<32x128xf32>
    %c0_67 = arith.constant 0 : index
    %c0_68 = arith.constant 0 : index
    %c0_69 = arith.constant 0 : index
    %178 = vector.load %arg15[%c0_67, %c0_68, %c0_69] : memref<1x1x128xf32, #tpu.memory_space<vmem>>, vector<1x1x128xf32>
    %179 = vector.shape_cast %178 : vector<1x1x128xf32> to vector<1x128xf32>
    %c0_70 = arith.constant 0 : index
    %c0_71 = arith.constant 0 : index
    %c0_72 = arith.constant 0 : index
    %180 = vector.load %arg16[%c0_70, %c0_71, %c0_72] : memref<1x1x128xf32, #tpu.memory_space<vmem>>, vector<1x1x128xf32>
    %181 = vector.shape_cast %180 : vector<1x1x128xf32> to vector<1x128xf32>
    %cst_73 = arith.constant dense<0.000000e+00> : vector<32xf32>
    %182 = vector.multi_reduction <add>, %177, %cst_73 [1] : vector<32x128xf32> to vector<32xf32>
    %183 = vector.shape_cast %182 : vector<32xf32> to vector<32x1xf32>
    %cst_74 = arith.constant 1.280000e+02 : f32
    %184 = vector.broadcast %cst_74 : f32 to vector<32x1xf32>
    %185 = arith.divf %183, %184 : vector<32x1xf32>
    %186 = arith.mulf %177, %177 : vector<32x128xf32>
    %cst_75 = arith.constant dense<0.000000e+00> : vector<32xf32>
    %187 = vector.multi_reduction <add>, %186, %cst_75 [1] : vector<32x128xf32> to vector<32xf32>
    %188 = vector.shape_cast %187 : vector<32xf32> to vector<32x1xf32>
    %cst_76 = arith.constant 1.280000e+02 : f32
    %189 = vector.broadcast %cst_76 : f32 to vector<32x1xf32>
    %190 = arith.divf %188, %189 : vector<32x1xf32>
    %191 = arith.mulf %185, %185 : vector<32x1xf32>
    %192 = arith.subf %190, %191 : vector<32x1xf32>
    %cst_77 = arith.constant 0.000000e+00 : f32
    %193 = vector.broadcast %cst_77 : f32 to vector<32x1xf32>
    %194 = arith.maximumf %192, %193 : vector<32x1xf32>
    %195 = vector.broadcast %185 : vector<32x1xf32> to vector<32x128xf32>
    %196 = arith.subf %177, %195 : vector<32x128xf32>
    %cst_78 = arith.constant 9.99999996E-13 : f32
    %197 = vector.broadcast %cst_78 : f32 to vector<32x1xf32>
    %198 = arith.addf %194, %197 : vector<32x1xf32>
    %199 = math.rsqrt %198 : vector<32x1xf32>
    %200 = vector.broadcast %199 : vector<32x1xf32> to vector<32x128xf32>
    %201 = arith.mulf %196, %200 : vector<32x128xf32>
    %202 = vector.broadcast %179 : vector<1x128xf32> to vector<32x128xf32>
    %203 = arith.mulf %201, %202 : vector<32x128xf32>
    %204 = vector.broadcast %181 : vector<1x128xf32> to vector<32x128xf32>
    %205 = arith.addf %203, %204 : vector<32x128xf32>
    %c0_79 = arith.constant 0 : index
    %c0_80 = arith.constant 0 : index
    %206 = vector.load %arg26[%c0_79, %c0_80] : memref<32x128xf32, #tpu.memory_space<vmem>>, vector<32x128xf32>
    tpu.vector_store %arg26[%c0_79, %c0_80], %205 {strides = array<i32>} : memref<32x128xf32, #tpu.memory_space<vmem>>, vector<32x128xf32>,
    %c1_i32 = arith.constant 1 : i32
    %207 = arith.cmpi eq, %arg0, %c1_i32 : i32
    %208 = arith.extui %207 : i1 to i32
    %c0_i32_81 = arith.constant 0 : i32
    %209 = arith.cmpi ne, %208, %c0_i32_81 : i32
    scf.if %209 {
      %c0_82 = arith.constant 0 : index
      %c0_83 = arith.constant 0 : index
      %210 = vector.load %arg17[%c0_82, %c0_83] : memref<128x128xbf16, #tpu.memory_space<vmem>>, vector<128x128xbf16>
      %211 = arith.truncf %205 : vector<32x128xf32> to vector<32x128xbf16>
      %cst_84 = arith.constant dense<0.000000e+00> : vector<32x128xf32>
      %212 = tpu.matmul %211, %210, %cst_84 {dimension_numbers = #tpu.dot_dimension_numbers<[1], [0], [0], [1], [0, 0, 1, 1], [], []>} : vector<32x128xbf16>, vector<128x128xbf16>, vector<32x128xf32> -> vector<32x128xf32>
      %c0_85 = arith.constant 0 : index
      %c0_86 = arith.constant 0 : index
      %213 = vector.load %arg18[%c0_85, %c0_86] : memref<1x128xf32, #tpu.memory_space<vmem>>, vector<1x128xf32>
      %214 = vector.broadcast %213 : vector<1x128xf32> to vector<32x128xf32>
      %215 = arith.addf %212, %214 : vector<32x128xf32>
      %cst_87 = arith.constant 5.000000e-01 : f32
      %216 = vector.broadcast %cst_87 : f32 to vector<32x128xf32>
      %217 = arith.mulf %216, %215 : vector<32x128xf32>
      %cst_88 = arith.constant 4.471500e-02 : f32
      %218 = vector.broadcast %cst_88 : f32 to vector<32x128xf32>
      %219 = arith.mulf %218, %215 : vector<32x128xf32>
      %220 = arith.mulf %219, %215 : vector<32x128xf32>
      %221 = arith.mulf %220, %215 : vector<32x128xf32>
      %222 = arith.addf %215, %221 : vector<32x128xf32>
      %cst_89 = arith.constant 0.797884583 : f32
      %223 = vector.broadcast %cst_89 : f32 to vector<32x128xf32>
      %224 = arith.mulf %223, %222 : vector<32x128xf32>
      %225 = math.tanh %224 : vector<32x128xf32>
      %cst_90 = arith.constant 1.000000e+00 : f32
      %226 = vector.broadcast %cst_90 : f32 to vector<32x128xf32>
      %227 = arith.addf %226, %225 : vector<32x128xf32>
      %228 = arith.mulf %217, %227 : vector<32x128xf32>
      %c0_91 = arith.constant 0 : index
      %c0_92 = arith.constant 0 : index
      %229 = vector.load %arg19[%c0_91, %c0_92] : memref<1x128xf32, #tpu.memory_space<vmem>>, vector<1x128xf32>
      %c0_93 = arith.constant 0 : index
      %c0_94 = arith.constant 0 : index
      %230 = vector.load %arg20[%c0_93, %c0_94] : memref<1x128xf32, #tpu.memory_space<vmem>>, vector<1x128xf32>
      %cst_95 = arith.constant dense<0.000000e+00> : vector<32xf32>
      %231 = vector.multi_reduction <add>, %228, %cst_95 [1] : vector<32x128xf32> to vector<32xf32>
      %232 = vector.shape_cast %231 : vector<32xf32> to vector<32x1xf32>
      %cst_96 = arith.constant 1.280000e+02 : f32
      %233 = vector.broadcast %cst_96 : f32 to vector<32x1xf32>
      %234 = arith.divf %232, %233 : vector<32x1xf32>
      %235 = arith.mulf %228, %228 : vector<32x128xf32>
      %cst_97 = arith.constant dense<0.000000e+00> : vector<32xf32>
      %236 = vector.multi_reduction <add>, %235, %cst_97 [1] : vector<32x128xf32> to vector<32xf32>
      %237 = vector.shape_cast %236 : vector<32xf32> to vector<32x1xf32>
      %cst_98 = arith.constant 1.280000e+02 : f32
      %238 = vector.broadcast %cst_98 : f32 to vector<32x1xf32>
      %239 = arith.divf %237, %238 : vector<32x1xf32>
      %240 = arith.mulf %234, %234 : vector<32x1xf32>
      %241 = arith.subf %239, %240 : vector<32x1xf32>
      %cst_99 = arith.constant 0.000000e+00 : f32
      %242 = vector.broadcast %cst_99 : f32 to vector<32x1xf32>
      %243 = arith.maximumf %241, %242 : vector<32x1xf32>
      %244 = vector.broadcast %234 : vector<32x1xf32> to vector<32x128xf32>
      %245 = arith.subf %228, %244 : vector<32x128xf32>
      %cst_100 = arith.constant 9.99999996E-13 : f32
      %246 = vector.broadcast %cst_100 : f32 to vector<32x1xf32>
      %247 = arith.addf %243, %246 : vector<32x1xf32>
      %248 = math.rsqrt %247 : vector<32x1xf32>
      %249 = vector.broadcast %248 : vector<32x1xf32> to vector<32x128xf32>
      %250 = arith.mulf %245, %249 : vector<32x128xf32>
      %251 = vector.broadcast %229 : vector<1x128xf32> to vector<32x128xf32>
      %252 = arith.mulf %250, %251 : vector<32x128xf32>
      %253 = vector.broadcast %230 : vector<1x128xf32> to vector<32x128xf32>
      %254 = arith.addf %252, %253 : vector<32x128xf32>
      %c0_101 = arith.constant 0 : index
      %c0_102 = arith.constant 0 : index
      %255 = vector.load %arg21[%c0_101, %c0_102] : memref<128x128xf32, #tpu.memory_space<vmem>>, vector<128x128xf32>
      %256 = arith.truncf %254 : vector<32x128xf32> to vector<32x128xbf16>
      %257 = arith.truncf %255 : vector<128x128xf32> to vector<128x128xbf16>
      %cst_103 = arith.constant dense<0.000000e+00> : vector<32x128xf32>
      %258 = tpu.matmul %256, %257, %cst_103 {dimension_numbers = #tpu.dot_dimension_numbers<[1], [0], [0], [1], [0, 0, 1, 1], [], []>} : vector<32x128xbf16>, vector<128x128xbf16>, vector<32x128xf32> -> vector<32x128xf32>
      %c0_104 = arith.constant 0 : index
      %c0_105 = arith.constant 0 : index
      %259 = vector.load %arg22[%c0_104, %c0_105] : memref<1x128xf32, #tpu.memory_space<vmem>>, vector<1x128xf32>
      %260 = vector.broadcast %259 : vector<1x128xf32> to vector<32x128xf32>
      %261 = arith.addf %258, %260 : vector<32x128xf32>
      %cst_106 = arith.constant 0.000000e+00 : f32
      %262 = vector.broadcast %cst_106 : f32 to vector<32x128xf32>
      %263 = arith.maximumf %261, %262 : vector<32x128xf32>
      %c0_107 = arith.constant 0 : index
      %c0_108 = arith.constant 0 : index
      %264 = vector.load %arg23[%c0_107, %c0_108] : memref<128x2xf32, #tpu.memory_space<vmem>>, vector<128x2xf32>
      %265 = arith.truncf %263 : vector<32x128xf32> to vector<32x128xbf16>
      %266 = arith.truncf %264 : vector<128x2xf32> to vector<128x2xbf16>
      %cst_109 = arith.constant dense<0.000000e+00> : vector<32x2xf32>
      %267 = tpu.matmul %265, %266, %cst_109 {dimension_numbers = #tpu.dot_dimension_numbers<[1], [0], [0], [1], [0, 0, 1, 1], [], []>} : vector<32x128xbf16>, vector<128x2xbf16>, vector<32x2xf32> -> vector<32x2xf32>
      %c0_110 = arith.constant 0 : index
      %c0_111 = arith.constant 0 : index
      %268 = vector.load %arg24[%c0_110, %c0_111] : memref<1x2xf32, #tpu.memory_space<vmem>>, vector<1x2xf32>
      %269 = vector.broadcast %268 : vector<1x2xf32> to vector<32x2xf32>
      %270 = arith.addf %267, %269 : vector<32x2xf32>
      %c0_112 = arith.constant 0 : index
      %c0_113 = arith.constant 0 : index
      %271 = vector.load %arg25[%c0_112, %c0_113] : memref<32x2xf32, #tpu.memory_space<vmem>>, vector<32x2xf32>
      tpu.vector_store %arg25[%c0_112, %c0_113], %270 {strides = array<i32>} : memref<32x2xf32, #tpu.memory_space<vmem>>, vector<32x2xf32>,
    } else {
    }
    return
  }
  func.func @transform_0(%arg0: i32) -> (i32, i32) {
    %c0_i32 = arith.constant 0 : i32
    %c0_i32_0 = arith.constant 0 : i32
    %c0_i32_1 = arith.constant 0 : i32
    return %c0_i32, %c0_i32_0 : i32, i32
  }
  func.func @transform_1(%arg0: i32) -> (i32, i32) {
    %c0_i32 = arith.constant 0 : i32
    %c0_i32_0 = arith.constant 0 : i32
    %c0_i32_1 = arith.constant 0 : i32
    return %c0_i32, %c0_i32_0 : i32, i32
  }
  func.func @transform_2(%arg0: i32) -> (i32, i32) {
    %c0_i32 = arith.constant 0 : i32
    %c0_i32_0 = arith.constant 0 : i32
    %c0_i32_1 = arith.constant 0 : i32
    return %c0_i32, %c0_i32_0 : i32, i32
  }
  func.func @transform_3(%arg0: i32) -> (i32, i32) {
    %c0_i32 = arith.constant 0 : i32
    %c0_i32_0 = arith.constant 0 : i32
    %c0_i32_1 = arith.constant 0 : i32
    return %c0_i32, %c0_i32_0 : i32, i32
  }
  func.func @transform_4(%arg0: i32) -> (i32, i32, i32) {
    %c0_i32 = arith.constant 0 : i32
    %c0_i32_0 = arith.constant 0 : i32
    %c0_i32_1 = arith.constant 0 : i32
    return %arg0, %c0_i32, %c0_i32_0 : i32, i32, i32
  }
  func.func @transform_5(%arg0: i32) -> (i32, i32, i32) {
    %c0_i32 = arith.constant 0 : i32
    %c0_i32_0 = arith.constant 0 : i32
    %c0_i32_1 = arith.constant 0 : i32
    return %arg0, %c0_i32, %c0_i32_0 : i32, i32, i32
  }
  func.func @transform_6(%arg0: i32) -> (i32, i32, i32) {
    %c0_i32 = arith.constant 0 : i32
    %c0_i32_0 = arith.constant 0 : i32
    %c0_i32_1 = arith.constant 0 : i32
    return %arg0, %c0_i32, %c0_i32_0 : i32, i32, i32
  }
  func.func @transform_7(%arg0: i32) -> (i32, i32, i32) {
    %c0_i32 = arith.constant 0 : i32
    %c0_i32_0 = arith.constant 0 : i32
    %c0_i32_1 = arith.constant 0 : i32
    return %arg0, %c0_i32, %c0_i32_0 : i32, i32, i32
  }
  func.func @transform_8(%arg0: i32) -> (i32, i32, i32) {
    %c0_i32 = arith.constant 0 : i32
    %c0_i32_0 = arith.constant 0 : i32
    %c0_i32_1 = arith.constant 0 : i32
    return %arg0, %c0_i32, %c0_i32_0 : i32, i32, i32
  }
  func.func @transform_9(%arg0: i32) -> (i32, i32, i32) {
    %c0_i32 = arith.constant 0 : i32
    %c0_i32_0 = arith.constant 0 : i32
    %c0_i32_1 = arith.constant 0 : i32
    return %arg0, %c0_i32, %c0_i32_0 : i32, i32, i32
  }
  func.func @transform_10(%arg0: i32) -> (i32, i32, i32) {
    %c0_i32 = arith.constant 0 : i32
    %c0_i32_0 = arith.constant 0 : i32
    %c0_i32_1 = arith.constant 0 : i32
    return %arg0, %c0_i32, %c0_i32_0 : i32, i32, i32
  }
  func.func @transform_11(%arg0: i32) -> (i32, i32, i32) {
    %c0_i32 = arith.constant 0 : i32
    %c0_i32_0 = arith.constant 0 : i32
    %c0_i32_1 = arith.constant 0 : i32
    return %arg0, %c0_i32, %c0_i32_0 : i32, i32, i32
  }
  func.func @transform_12(%arg0: i32) -> (i32, i32, i32) {
    %c0_i32 = arith.constant 0 : i32
    %c0_i32_0 = arith.constant 0 : i32
    %c0_i32_1 = arith.constant 0 : i32
    return %arg0, %c0_i32, %c0_i32_0 : i32, i32, i32
  }
  func.func @transform_13(%arg0: i32) -> (i32, i32, i32) {
    %c0_i32 = arith.constant 0 : i32
    %c0_i32_0 = arith.constant 0 : i32
    %c0_i32_1 = arith.constant 0 : i32
    return %arg0, %c0_i32, %c0_i32_0 : i32, i32, i32
  }
  func.func @transform_14(%arg0: i32) -> (i32, i32, i32) {
    %c0_i32 = arith.constant 0 : i32
    %c0_i32_0 = arith.constant 0 : i32
    %c0_i32_1 = arith.constant 0 : i32
    return %arg0, %c0_i32, %c0_i32_0 : i32, i32, i32
  }
  func.func @transform_15(%arg0: i32) -> (i32, i32, i32) {
    %c0_i32 = arith.constant 0 : i32
    %c0_i32_0 = arith.constant 0 : i32
    %c0_i32_1 = arith.constant 0 : i32
    return %arg0, %c0_i32, %c0_i32_0 : i32, i32, i32
  }
  func.func @transform_16(%arg0: i32) -> (i32, i32) {
    %c0_i32 = arith.constant 0 : i32
    %c0_i32_0 = arith.constant 0 : i32
    %c0_i32_1 = arith.constant 0 : i32
    return %c0_i32, %c0_i32_0 : i32, i32
  }
  func.func @transform_17(%arg0: i32) -> (i32, i32) {
    %c0_i32 = arith.constant 0 : i32
    %c0_i32_0 = arith.constant 0 : i32
    %c0_i32_1 = arith.constant 0 : i32
    return %c0_i32, %c0_i32_0 : i32, i32
  }
  func.func @transform_18(%arg0: i32) -> (i32, i32) {
    %c0_i32 = arith.constant 0 : i32
    %c0_i32_0 = arith.constant 0 : i32
    %c0_i32_1 = arith.constant 0 : i32
    return %c0_i32, %c0_i32_0 : i32, i32
  }
  func.func @transform_19(%arg0: i32) -> (i32, i32) {
    %c0_i32 = arith.constant 0 : i32
    %c0_i32_0 = arith.constant 0 : i32
    %c0_i32_1 = arith.constant 0 : i32
    return %c0_i32, %c0_i32_0 : i32, i32
  }
  func.func @transform_20(%arg0: i32) -> (i32, i32) {
    %c0_i32 = arith.constant 0 : i32
    %c0_i32_0 = arith.constant 0 : i32
    %c0_i32_1 = arith.constant 0 : i32
    return %c0_i32, %c0_i32_0 : i32, i32
  }
  func.func @transform_21(%arg0: i32) -> (i32, i32) {
    %c0_i32 = arith.constant 0 : i32
    %c0_i32_0 = arith.constant 0 : i32
    %c0_i32_1 = arith.constant 0 : i32
    return %c0_i32, %c0_i32_0 : i32, i32
  }
  func.func @transform_22(%arg0: i32) -> (i32, i32) {
    %c0_i32 = arith.constant 0 : i32
    %c0_i32_0 = arith.constant 0 : i32
    %c0_i32_1 = arith.constant 0 : i32
    return %c0_i32, %c0_i32_0 : i32, i32
  }
  func.func @transform_23(%arg0: i32) -> (i32, i32) {
    %c0_i32 = arith.constant 0 : i32
    %c0_i32_0 = arith.constant 0 : i32
    %c0_i32_1 = arith.constant 0 : i32
    return %c0_i32, %c0_i32_0 : i32, i32
  }
  func.func @transform_24(%arg0: i32) -> (i32, i32) {
    %c0_i32 = arith.constant 0 : i32
    %c0_i32_0 = arith.constant 0 : i32
    %c0_i32_1 = arith.constant 0 : i32
    return %c0_i32, %c0_i32_0 : i32, i32
  }
}

</mosaic_0001>

<bundles_post_ra>
// kernel: bert_base_uncased_forward.1
= control target key start
LH: loop header
LB: loop body
LE: loop exit
PB: predicated region body
PF: predicated region fallthrough
CT: control target
= control target key end

     0   :  { %s5274_s0 = inlined_call_operand.vmem [shape: f32[32,128], index: 0, kind: input, shape index: {}]   ;;  %s5275_s1 = inlined_call_operand.vmem [shape: f32[32,32], index: 1, kind: input, shape index: {}]   ;;  %s5276_s2 = inlined_call_operand.vmem [shape: f32[1,128], index: 2, kind: input, shape index: {}]   ;;  %s5277_s3 = inlined_call_operand.vmem [shape: f32[1,128], index: 3, kind: input, shape index: {}]   ;;  %s5278_s4 = inlined_call_operand.vmem [shape: bf16[2,128,384], index: 4, kind: input, shape index: {}]   ;;  %s5279_s5 = inlined_call_operand.vmem [shape: f32[2,1,384], index: 5, kind: input, shape index: {}]   ;;  %s5280_s6 = inlined_call_operand.vmem [shape: bf16[2,128,128], index: 6, kind: input, shape index: {}]   ;;  %s5281_s7 = inlined_call_operand.vmem [shape: f32[2,1,128], index: 7, kind: input, shape index: {}]   ;;  %s5282_s8 = inlined_call_operand.vmem [shape: f32[2,1,128], index: 8, kind: input, shape index: {}]   ;;  %s5283_s9 = inlined_call_operand.vmem [shape: f32[2,1,128], index: 9, kind: input, shape index: {}]   ;;  %s5284_s10 = inlined_call_operand.hbm [shape: bf16[2,128,256], index: 10, kind: input, shape index: {}]   ;;  %s5285_s11 = inlined_call_operand.vmem [shape: f32[2,1,256], index: 11, kind: input, shape index: {}]   ;;  %s5286_s12 = inlined_call_operand.hbm [shape: bf16[2,256,128], index: 12, kind: input, shape index: {}]   ;;  %s5287_s13 = inlined_call_operand.vmem [shape: f32[2,1,128], index: 13, kind: input, shape index: {}]   ;;  %s5288_s14 = inlined_call_operand.vmem [shape: f32[2,1,128], index: 14, kind: input, shape index: {}]   ;;  %s5289_s15 = inlined_call_operand.vmem [shape: f32[2,1,128], index: 15, kind: input, shape index: {}]   ;;  %s5290_s16 = inlined_call_operand.vmem [shape: bf16[128,128], index: 16, kind: input, shape index: {}]   ;;  %s5291_s17 = inlined_call_operand.vmem [shape: f32[1,128], index: 17, kind: input, shape index: {}]   ;;  %s5292_s18 = inlined_call_operand.vmem [shape: f32[1,128], index: 18, kind: input, shape index: {}]   ;;  %s5293_s19 = inlined_call_operand.vmem [shape: f32[1,128], index: 19, kind: input, shape index: {}]   ;;  %s5294_s20 = inlined_call_operand.hbm [shape: f32[128,128], index: 20, kind: input, shape index: {}]   ;;  %s5295_s21 = inlined_call_operand.vmem [shape: f32[1,128], index: 21, kind: input, shape index: {}]   ;;  %s5296_s22 = inlined_call_operand.vmem [shape: f32[128,2], index: 22, kind: input, shape index: {}]   ;;  %s5297_s23 = inlined_call_operand.vmem [shape: f32[1,2], index: 23, kind: input, shape index: {}]   ;;  %s5298_s24 = inlined_call_operand.vmem [shape: f32[32,2], index: 24, kind: output, shape index: {}]  }
   0x1   :  { %5312 = sst [smem:[#allocation15_spill]] %s5274_s0 }
   0x2   :  { %5313 = sst [smem:[#allocation16_spill]] %s5275_s1 }
   0x3   :  { %5314 = sst [smem:[#allocation17_spill]] %s5276_s2 }
   0x4   :  { %5315 = sst [smem:[#allocation18_spill]] %s5277_s3 }
   0x5   :  { %5316 = sst [smem:[#allocation19_spill]] %s5278_s4 }
   0x6   :  { %5317 = sst [smem:[#allocation20_spill]] %s5279_s5 }
   0x7   :  { %5318 = sst [smem:[#allocation21_spill]] %s5280_s6 }
   0x8   :  { %5319 = sst [smem:[#allocation22_spill]] %s5281_s7 }
   0x9   :  { %5320 = sst [smem:[#allocation23_spill]] %s5282_s8 }
   0xa   :  { %5321 = sst [smem:[#allocation24_spill]] %s5284_s10 }
   0xb   :  { %5322 = sst [smem:[#allocation25_spill]] %s5286_s12 }
   0xc   :  { %5323 = sst [smem:[#allocation26_spill]] %s5290_s16 }
   0xd   :  { %5324 = sst [smem:[#allocation27_spill]] %s5291_s17 }
   0xe   :  { %5325 = sst [smem:[#allocation28_spill]] %s5292_s18 }
   0xf   :  { %5326 = sst [smem:[#allocation29_spill]] %s5293_s19 }
  0x10   :  { %5327 = sst [smem:[#allocation30_spill]] %s5294_s20 }
  0x11   :  { %5328 = sst [smem:[#allocation31_spill]] %s5295_s21 }
  0x12   :  { %5329 = sst [smem:[#allocation32_spill]] %s5296_s22 }
  0x13   :  { %5330 = sst [smem:[#allocation33_spill]] %s5297_s23 }
  0x14   :  { %5331 = sst [smem:[#allocation34_spill]] %s5298_s24 }
  0x15   :  { %29 = vsyncpa [#allocation4], 0 }
  0x16   :  { %31 = vsyncpa [#allocation4 + $0x1], 0 }
  0x17   :  { %32 = vsyncpa [#allocation6], 0 }
  0x18   :  { %34 = vsyncpa [#allocation6 + $0x1], 0  ;;  %s4505_s5 = smov 0   ;;  %s4507_s26 = smov 0  }
  0x19   :  { %s4509_s27 = smov 0   ;;  %s4511_s28 = smov 0  }
  0x1a LB: > { %5332 = sst [smem:[#allocation11_spill]] %s4359_s26  ;;  %s4524_s6 = sadd.s32 4294967295, %s4367_s28   ;;  %s4367_s28 = sphi %s4511_s28, %s5369_s28   ;;  %s4363_s27 = sphi %s4509_s27, %s5372_s27   ;;  %s4359_s26 = sphi %s4507_s26, %s5371_s26   ;;  %s4355_s5 = sphi %s4505_s5, %s5370_s5  }
  0x1b   : > { %5333 = sst [smem:[#allocation12_spill]] %s4363_s27  ;;  %p300_p0 = scmp.ne.s32.totalorder %s4359_s26, %s4355_s5 }
  0x1c   : > { %p5306_p1 = scmp.eq.s32.totalorder %s4524_s6, 0  ;;  %p3533_p2 = scmp.ge.s32.totalorder %s4367_s28, 1 }
  0x1d   : > { %p630_p3 = scmp.lt.s32.totalorder %s4367_s28, 3  ;;  %s4369_s0 = smov [#allocation7]  }
  0x1e   : > { %p4533_p5 = por %p5306_p1, %p300_p0  ;;  %s666_s7 = sshll.u32 %s4369_s0, 4  ;;  %s667_s7 = int_to_ptr.vmem [resolvable:$true] %s666_s7 }
  0x1f   : > { %p4537_p6 = pnand %p3533_p2, %p630_p3  ;;  %s4550_s3 = sadd.s32 1, %s4367_s28  }
  0x20   : > { %s5334_s2 = scalar_select %p4533_p5, 1, 0 }
  0x21   : > { %p3976_p7 = pneg %p4537_p6  ;;  %5337 = sst [smem:[#allocation13_spill]] %s4550_s3 }
  0x22   : > { %s287_s25 = sadd.s32 1, %s4363_s27  ;;  %s284_s8 = ssub.s32 %s4367_s28, %s4550_s3 }
  0x23   : > { %p4545_p8 = pnand %p3976_p7, %p5306_p1  ;;  %s4254_s4 = scalar_lea.vmem %s667_s7, 2048 }
  0x24   : > { %p4255_p10 = scmp.ne.s32.totalorder %s667_s7, %s4254_s4  ;;  %p4262_p13 = scmp.lt.s32.totalorder %s667_s7, %s667_s7 }
  0x25   : > { %p4245_p9 = pneg %p4545_p8  ;;  %p4263_p0 = scmp.lt.s32.totalorder %s4254_s4, %s4254_s4 }
  0x27   : > { %p4257_p11 = pnand %p4255_p10, %p4245_p9  ;;  %p4264_p2 = por %p4263_p0, %p4262_p13 }
  0x29   : > { %p4258_p12 = pneg %p4257_p11 }
  0x2b   : > { %p4265_p3 = pnand %p4264_p2, %p4258_p12 }
  0x2d   : > { %4268 = shalt.err (!%p4265_p3)
}
  0x2e   : > { %s5304_s1 = smov 128   ;;  %s5305_s5 = smov 8  }
  0x2f   : > { %s5338_s20 = sld [smem:[#allocation30_spill]]  ;;  %p285_p7 = scmp.eq.s32.totalorder %s284_s8, 0 }
  0x30   : > { %p294_p9 = scmp.ne.s32.totalorder %s4363_s27, %s4359_s26  ;;  %p295_p10 = scmp.eq.s32.totalorder %s4367_s28, 0 }
  0x31   : > { %p3988_p11 = scmp.lt.s32.totalorder %s4367_s28, 2  ;;  %s730_s24 = sand.u32 1, %s4363_s27  }
  0x32   : > { %s4570_s4 = scalar_select %p285_p7, %s4363_s27, %s287_s25  }
  0x33   : > { %p296_p12 = por %p295_p10, %p294_p9  ;;  %s3536_s23 = sshll.u32 %s730_s24, 7 }
  0x34   : > { %5339 = sst [smem:[#allocation14_spill]] %s4570_s4  ;;  %s3663_s21 = sshll.u32 %s4367_s28, 11 }
  0x35   : > { %3979 = dma.hbm_to_vmem [thread:$0]  (!%p4545_p8), %s5338_s20, 2048, %s667_s7, [#allocation6], %s5304_s1, %s5304_s1, %s5305_s5  }
  0x36   : > { %s5340_s10 = sld [smem:[#allocation24_spill]]  ;;  %s734_s3 = scalar_lea.vmem [#allocation3], %s3536_s23 }
  0x37   : > { %s741_s7 = sshll.u32 %s734_s3, 4  ;;  %p4581_p8 = pnand %p3988_p11, %p296_p12  ;;  %s4579_s7 = int_to_ptr.vmem [resolvable:$true] %s741_s7 }
  0x38   : > { %s5342_s12 = sld [smem:[#allocation25_spill]]  ;;  %s762_s18 = scalar_lea.vmem [#allocation5], %s3536_s23 }
  0x39   : > { %s4590_s19 = sshll.u32 %s762_s18, 4  ;;  %s4592_s5 = scalar_lea.sflag [#allocation4], %s730_s24  ;;  %s4623_s19 = int_to_ptr.vmem [resolvable:$true] %s4590_s19 }
  0x3a   : > { %p4271_p0 = pneg %p4581_p8 }
  0x3c   : > { %s4577_s30 = scalar_lea.hbm %s5340_s10, %s3663_s21  ;;  %s4274_s25 = scalar_lea.hbm %s5340_s10, 4096 }
  0x3d   : > { %s4269_s20 = scalar_lea.hbm %s4577_s30, 2048  ;;  %p4275_p7 = scmp.lt.s32.totalorder %s4577_s30, %s5340_s10 }
  0x3e   : > { %s4588_s1 = scalar_lea.hbm %s5342_s12, %s3663_s21  ;;  %p4270_p13 = scmp.ne.s32.totalorder %s4577_s30, %s4269_s20 }
  0x3f   : > { %p4276_p9 = scmp.lt.s32.totalorder %s4274_s25, %s4269_s20 }
  0x40   : > { %p4272_p2 = pnand %p4271_p0, %p4270_p13 }
  0x41   : > { %p4277_p10 = por %p4276_p9, %p4275_p7 }
  0x42   : > { %p4273_p3 = pneg %p4272_p2 }
  0x44   : > { %p4278_p11 = pnand %p4277_p10, %p4273_p3 }
  0x46   : > { %4281 = shalt.err (!%p4278_p11)
}
  0x47   : > { %s4282_s23 = scalar_lea.vmem %s4579_s7, 2048  ;;  %s4372_s24 = smov [#allocation3]  }
  0x48   : > { %p4283_p12 = scmp.ne.s32.totalorder %s4579_s7, %s4282_s23  ;;  %s4287_s4 = sshll.u32 %s4372_s24, 4  ;;  %s4288_s4 = int_to_ptr.vmem [resolvable:$false] %s4287_s4 }
  0x49   : > { %s4289_s18 = scalar_lea.vmem %s4288_s4, 4096  ;;  %p4290_p4 = scmp.lt.s32.totalorder %s4579_s7, %s4288_s4 }
  0x4a   : > { %p4285_p13 = pnand %p4283_p12, %p4271_p0  ;;  %p4291_p1 = scmp.lt.s32.totalorder %s4289_s18, %s4282_s23 }
  0x4c   : > { %p4286_p2 = pneg %p4285_p13  ;;  %p4292_p5 = por %p4291_p1, %p4290_p4 }
  0x4e   : > { %p4293_p7 = pnand %p4292_p5, %p4286_p2 }
  0x50   : > { %4296 = shalt.err (!%p4293_p7)
}
  0x51   : > { %s5343_s20 = smov 8   ;;  %s5344_s3 = smov 128  }
  0x52   : > { %3983 = dma.hbm_to_vmem [thread:$0]  (!%p4581_p8), %s4577_s30, 2048, %s4579_s7, %s4592_s5, %s5344_s3, %s5344_s3, %s5343_s20  }
  0x53   : > { %s758_s25 = sand.u32 1, %s4367_s28   ;;  %s4297_s21 = scalar_lea.hbm %s4588_s1, 2048 }
  0x54   : > { %s4626_s0 = scalar_lea.sflag [#allocation6], %s758_s25  ;;  %p4298_p1 = scmp.ne.s32.totalorder %s4588_s1, %s4297_s21 }
  0x55   : > { %s4302_s4 = scalar_lea.hbm %s5342_s12, 4096  ;;  %p4303_p3 = scmp.lt.s32.totalorder %s4588_s1, %s5342_s12 }
  0x56   : > { %p4300_p4 = pnand %p4298_p1, %p4271_p0  ;;  %p4304_p9 = scmp.lt.s32.totalorder %s4302_s4, %s4297_s21 }
  0x58   : > { %p4301_p5 = pneg %p4300_p4  ;;  %p4305_p10 = por %p4304_p9, %p4303_p3 }
  0x5a   : > { %p4306_p11 = pnand %p4305_p10, %p4301_p5 }
  0x5c   : > { %4309 = shalt.err (!%p4306_p11)
}
  0x5d   : > { %s4310_s28 = scalar_lea.vmem %s4623_s19, 2048  ;;  %s4373_s5 = smov [#allocation5]  }
  0x5e   : > { %p4311_p12 = scmp.ne.s32.totalorder %s4623_s19, %s4310_s28  ;;  %s4315_s30 = sshll.u32 %s4373_s5, 4  ;;  %s4316_s30 = int_to_ptr.vmem [resolvable:$false] %s4315_s30 }
  0x5f   : > { %s4317_s7 = scalar_lea.vmem %s4316_s30, 4096  ;;  %p4318_p7 = scmp.lt.s32.totalorder %s4623_s19, %s4316_s30 }
  0x60   : > { %p4313_p13 = pnand %p4311_p12, %p4271_p0  ;;  %p4319_p1 = scmp.lt.s32.totalorder %s4317_s7, %s4310_s28 }
  0x62   : > { %p4314_p2 = pneg %p4313_p13  ;;  %p4320_p4 = por %p4319_p1, %p4318_p7 }
  0x64   : > { %p4321_p3 = pnand %p4320_p4, %p4314_p2 }
  0x66   : > { %4324 = shalt.err (!%p4321_p3)
}
  0x67   : > { %s4374_s10 = smov 64   ;;  %s4375_s20 = smov 4  }
  0x68   : > { %3986 = dma.hbm_to_vmem [thread:$0]  (!%p4581_p8), %s4588_s1, 2048, %s4623_s19, %s4626_s0, %s4374_s10, %s4374_s10, %s4375_s20  }
  0x69   : > { %799 = sbr.rel (%p4537_p6) target bundleno = 4636 (0x121c), region = 116  ;;  %s801_s3 = sand.u32 (!%p4537_p6), 1, %s4359_s26  }
  0x6a   : > { %s3543_s25 = sshll.u32 (!%p4537_p6), %s801_s3, 7  ;;  %s802_s21 = scalar_lea.sflag (!%p4537_p6), [#allocation4], %s801_s3 }
  0x6b   : > { %s4654_s23 = scalar_lea.vmem (!%p4537_p6), [#allocation3], %s3543_s25  ;;  %p5345_p0 = scmp.ne.s32.totalorder (!%p4537_p6), %s5334_s2, 0 }
  0x6e   : > { %4342 = dma.done.wait (%p5345_p0), %s802_s21, 2048  }
  0x6f   : > { %4344 = vsyncadd (%p5345_p0), %s802_s21, 4294965248  ;;  %s810_s24 = sand.u32 1, %s4524_s6   ;;  %s4661_s1 = scalar_lea.vmem [#allocation5], %s3543_s25 }
  0x70   : > { %s811_s8 = scalar_lea.sflag [#allocation6], %s810_s24 }
  0x71   : > { %4346 = dma.done.wait (%p5345_p0), %s811_s8, 2048  }
  0x72   : > { %4348 = vsyncadd (%p5345_p0), %s811_s8, 4294965248  ;;  %p5346_p6 = scmp.eq.s32.totalorder %s4524_s6, 0 }
  0x74   : > { %4350 = dma.done.wait (%p5346_p6), [#allocation6], 2048   ;;  %p5347_p8 = pmov %p5346_p6 }
  0x75   : > { %p919_p5 = scmp.lt.s32.totalorder %s4524_s6, 1  ;;  %s5348_s28 = sld [smem:[#allocation21_spill]] }
  0x76   : > { %4352 = vsyncadd (%p5347_p8), [#allocation6], 4294965248  ;;  %s5349_s10 = sld [smem:[#allocation19_spill]]  ;;  %p5353_p9 = scmp.ne.s32.totalorder %s4524_s6, 0 }
  0x77   : > { %s4673_s29 = scalar_select %p919_p5, %s4524_s6, 1 }
  0x78   : > { %s5350_s21 = sld [smem:[#allocation22_spill]] }
  0x79   : > { %s3966_s2 = smul.u32 192, %s4673_s29  ;;  %s3665_s19 = sshll.u32 %s4673_s29, 6 }
  0x7a   : > { %s3967_s0 = smul.u32 3, %s4673_s29  ;;  %s5351_s27 = sld [smem:[#allocation20_spill]] }
  0x7b   : > { %s4681_s5 = scalar_lea.vmem %s5348_s28, %s3665_s19  ;;  %s5352_s16 = sld [smem:[#allocation23_spill]] }
  0x7c   : > { %s4686_s20 = scalar_lea.vmem %s5349_s10, %s3966_s2  ;;  %s941_s28 = scalar_lea.vmem %s5283_s9, %s4673_s29 }
  0x7d   : > { %s3549_s30 = sshll.u32 %s4673_s29, 1  ;;  %s948_s12 = scalar_lea.vmem %s5287_s13, %s4673_s29 }
  0x7e   : > { %s935_s24 = scalar_lea.vmem %s5350_s21, %s4673_s29  ;;  %s4709_s10 = scalar_lea.vmem %s5285_s11, %s3549_s30 }
  0x7f   : > { %s951_s21 = scalar_lea.vmem %s5288_s14, %s4673_s29  ;;  %s954_s22 = scalar_lea.vmem %s5289_s15, %s4673_s29 }
  0x80   : > { %s4695_s26 = scalar_lea.vmem %s5351_s27, %s3967_s0  ;;  %959 = sbr.rel (%p5353_p9) target bundleno = 316 (0x13c), region = 132 }
  0x81   : > { %s938_s4 = scalar_lea.vmem %s5352_s16, %s4673_s29  ;;  %s5354_s18 = sld [smem:[#allocation15_spill]] (!%p5353_p9) }
  0x82   : > { %s5355_s16 = sld [smem:[#allocation17_spill]] (!%p5353_p9) }
  0x83   : > { %s5356_s30 = sld [smem:[#allocation18_spill]] (!%p5353_p9) }
  0x87   : > { %v4728_v0 = vld [vmem:[%s5354_s18 + $0x10] sm:$0xff]  ;;  %v960_v1 = vld [vmem:[%s5354_s18] sm:$0xff]  ;;  %v4737_v2 = vld [vmem:[%s5354_s18 + $0x18] sm:$0xff] }
  0x88   : > { %970 = vadd.xlane.f32.xlu1 %v4728_v0  ;;  %966 = vadd.xlane.f32.xlu0 %v960_v1  ;;  %v961_v3 = vld [vmem:[%s5354_s18 + $0x8] sm:$0xff]  ;;  %v979_v5 = vmul.f32 %v960_v1, %v960_v1  ;;  %v982_v6 = vmul.f32 %v4737_v2, %v4737_v2  ;;  %v981_v7 = vmul.f32 %v4728_v0, %v4728_v0  ;;  %v3551_v43 = vld [vmem:[%s5355_s16] ss:$0 sm:$0xff] }
  0x89   : > { %v980_v4 = vmul.f32 %v961_v3, %v961_v3  ;;  %v3552_v46 = vld [vmem:[%s5356_s30] ss:$0 sm:$0xff] }
  0x8c   : > { %972 = vadd.xlane.f32.xlu1 %v4737_v2  ;;  %968 = vadd.xlane.f32.xlu0 %v961_v3 }
  0x90   : > { %985 = vadd.xlane.f32.xlu1 %v980_v4  ;;  %983 = vadd.xlane.f32.xlu0 %v979_v5 }
  0x94   : > { %989 = vadd.xlane.f32.xlu1 %v982_v6  ;;  %987 = vadd.xlane.f32.xlu0 %v981_v7 }
 0x111   : > { %v971_v8 = vpop.xlane.xlu1 %970  ;;  %v967_v9 = vpop.xlane.xlu0 %966 }
 0x112   : > { %v975_v12 = vmul.f32 0.0078125, %v967_v9  ;;  %v977_v14 = vmul.f32 0.0078125, %v971_v8 }
 0x114   : > { %v995_v18 = vmul.f32 %v975_v12, %v975_v12  ;;  %v997_v24 = vmul.f32 %v977_v14, %v977_v14  ;;  %v1007_v42 = vsub.f32 %v960_v1, %v975_v12  ;;  %v1009_v51 = vsub.f32 %v4728_v0, %v977_v14 }
 0x115   : > { %v973_v10 = vpop.xlane.xlu1 %972  ;;  %v969_v11 = vpop.xlane.xlu0 %968 }
 0x116   : > { %v976_v13 = vmul.f32 0.0078125, %v969_v11  ;;  %v978_v15 = vmul.f32 0.0078125, %v973_v10 }
 0x118   : > { %v996_v19 = vmul.f32 %v976_v13, %v976_v13  ;;  %v998_v25 = vmul.f32 %v978_v15, %v978_v15  ;;  %v1008_v40 = vsub.f32 %v961_v3, %v976_v13  ;;  %v1010_v48 = vsub.f32 %v4737_v2, %v978_v15 }
 0x119   : > { %v986_v16 = vpop.xlane.xlu1 %985  ;;  %v984_v17 = vpop.xlane.xlu0 %983 }
 0x11a   : > { %v992_v20 = vmul.f32 0.0078125, %v986_v16  ;;  %v991_v21 = vmul.f32 0.0078125, %v984_v17 }
 0x11c   : > { %v1000_v22 = vsub.f32 %v992_v20, %v996_v19  ;;  %v999_v23 = vsub.f32 %v991_v21, %v995_v18 }
 0x11d   : > { %v990_v26 = vpop.xlane.xlu1 %989  ;;  %v988_v27 = vpop.xlane.xlu0 %987 }
 0x11e   : > { %v1004_v28 = vmax.f32 %v1000_v22, 0.0  ;;  %v1003_v29 = vmax.f32 %v999_v23, 0.0  ;;  %v994_v30 = vmul.f32 0.0078125, %v990_v26  ;;  %v993_v31 = vmul.f32 0.0078125, %v988_v27 }
 0x120   : > { %v1012_v32 = vadd.f32 1e-12, %v1004_v28  ;;  %v1011_v33 = vadd.f32 1e-12, %v1003_v29  ;;  %v1002_v34 = vsub.f32 %v994_v30, %v998_v25  ;;  %v1001_v35 = vsub.f32 %v993_v31, %v997_v24 }
 0x122   : > { %4031 = vrsqrt.f32 %v1012_v32  ;;  %v1006_v36 = vmax.f32 %v1002_v34, 0.0  ;;  %v1005_v37 = vmax.f32 %v1001_v35, 0.0 }
 0x123   : > { %4033 = vrsqrt.f32 %v1011_v33 }
 0x124   : > { %v1014_v38 = vadd.f32 1e-12, %v1006_v36  ;;  %v1013_v39 = vadd.f32 1e-12, %v1005_v37 }
 0x126   : > { %4035 = vrsqrt.f32 %v1014_v38 }
 0x127   : > { %4037 = vrsqrt.f32 %v1013_v39 }
 0x12f   : > { %v4032_v41 = vpop.eup %4031 }
 0x130   : > { %v4034_v44 = vpop.eup %4033  ;;  %v1020_v45 = vmul.f32 %v4032_v41, %v1008_v40 }
 0x131   : > { %v1019_v47 = vmul.f32 %v4034_v44, %v1007_v42 }
 0x132   : > { %v1030_v49 = vmul.f32 %v3551_v43, %v1020_v45 }
 0x133   : > { %v4036_v50 = vpop.eup %4035  ;;  %v1029_v52 = vmul.f32 %v3551_v43, %v1019_v47 }
 0x134   : > { %v4038_v53 = vpop.eup %4037  ;;  %v1040_v54 = vadd.f32 %v3552_v46, %v1030_v49  ;;  %v1022_v55 = vmul.f32 %v4036_v50, %v1010_v48 }
 0x135   : > { %v1039_v56 = vadd.f32 %v3552_v46, %v1029_v52  ;;  %v1021_v57 = vmul.f32 %v4038_v53, %v1009_v51 }
 0x136   : > { %1044 = vst [vmem:[#allocation2] sm:$0xff] %v1040_v54  ;;  %v1032_v58 = vmul.f32 %v3551_v43, %v1022_v55 }
 0x137   : > { %1043 = vst [vmem:[#allocation2 + $0x10] sm:$0xff] %v1039_v56  ;;  %v1031_v59 = vmul.f32 %v3551_v43, %v1021_v57 }
 0x138   : > { %v1042_v60 = vadd.f32 %v3552_v46, %v1032_v58 }
 0x139   : > { %v1041_v61 = vadd.f32 %v3552_v46, %v1031_v59 }
 0x13a   : > { %1046 = vst [vmem:[#allocation2 + $0x8] sm:$0xff] %v1042_v60 }
 0x13b   : > { %1045 = vst [vmem:[#allocation2 + $0x18] sm:$0xff] %v1041_v61 }
 0x13c PF: > { %v4039_v62 = vld [vmem:[%s4686_s20 + $0xac] ss:$12 sps:$4 sm:$0xff]   ;;  %v4041_v63 = vld [vmem:[%s4686_s20 + $0xa8] ss:$12 sps:$4 sm:$0xff]   ;;  %v4376_v0 = vmov 0   ;;  %v1091_v21 = vlaneseq  ;;  %vm1356_vm0 = vcmask 261120  }
 0x13d   : > { %1266 = vmatprep.mubr.bf16.mxu0 %v4376_v0  ;;  %1234 = vmatprep.subr.bf16.mxu0 %v4039_v62  ;;  %v4042_v1 = vld [vmem:[%s4686_s20 + $0x94] ss:$12 sps:$4 sm:$0xff]   ;;  %v4044_v2 = vld [vmem:[%s4686_s20 + $0x90] ss:$12 sps:$4 sm:$0xff]   ;;  %v4047_v4 = vld [vmem:[%s4686_s20 + $0x78] ss:$12 sps:$4 sm:$0xff]  }
 0x13e   : > { %1235 = vmatpush1.bf16.msra.mxu0 %v4041_v63  ;;  %v4045_v3 = vld [vmem:[%s4686_s20 + $0x7c] ss:$12 sps:$4 sm:$0xff]   ;;  %v4048_v5 = vld [vmem:[%s4686_s20 + $0x64] ss:$12 sps:$4 sm:$0xff]   ;;  %v4050_v7 = vld [vmem:[%s4686_s20 + $0x60] ss:$12 sps:$4 sm:$0xff]  }
 0x13f   : > { %1236 = vmatprep.subr.bf16.mxu0 %v4042_v1  ;;  %v1047_v6 = vld [vmem:[#allocation2 + $0x10] sm:$0xff]  ;;  %v1048_v8 = vld [vmem:[#allocation2] sm:$0xff]  ;;  %v4051_v9 = vld [vmem:[%s4686_s20 + $0x4c] ss:$12 sps:$4 sm:$0xff]   ;;  %v4773_v22 = vshrl.u32 %v1091_v21, 7  ;;  %s5357_s7 = sld [smem:[#allocation16_spill]] }
 0x140   : > { %v1087_v10 = vpack.c.bf16 %v1048_v8, %v1047_v6  ;;  %v4053_v11 = vld [vmem:[%s4686_s20 + $0x48] ss:$12 sps:$4 sm:$0xff]   ;;  %v4056_v13 = vld [vmem:[%s4686_s20 + $0x30] ss:$12 sps:$4 sm:$0xff]   ;;  %v4059_v15 = vld [vmem:[%s4686_s20 + $0x18] ss:$12 sps:$4 sm:$0xff]  }
 0x141   : > { %v4054_v12 = vld [vmem:[%s4686_s20 + $0x34] ss:$12 sps:$4 sm:$0xff]   ;;  %v4057_v14 = vld [vmem:[%s4686_s20 + $0x1c] ss:$12 sps:$4 sm:$0xff]   ;;  %v4060_v16 = vld [vmem:[%s4686_s20 + $0x4] ss:$12 sps:$4 sm:$0xff]  }
 0x142   : > { %1237 = vmatpush1.bf16.msra.mxu0 %v4044_v2  ;;  %3798 = vmatprep.mubr.bf16.mxu1 %v1087_v10  ;;  %v4062_v17 = vld [vmem:[%s4686_s20] ss:$12 sps:$4 sm:$0xff]   ;;  %v1049_v18 = vld [vmem:[#allocation2 + $0x18] sm:$0xff]  ;;  %v1093_v23 = vsub.s32 0, %v4773_v22  ;;  %v1097_v34 = vsub.s32 1, %v4773_v22  ;;  %s4377_s16 = smov 96  }
 0x143   : > { %1238 = vmatprep.subr.bf16.mxu0 %v4045_v3  ;;  %v1050_v19 = vld [vmem:[#allocation2 + $0x8] sm:$0xff]  ;;  %v4777_v24 = vld [vmem:[%s4695_s26] sm:$0x7]  ;;  %v4063_v50 = vld [vmem:[%s4686_s20 + $0xb0] ss:$12 sps:$4 sm:$0xff]   ;;  %s4378_s8 = smov 64  }
 0x144   : > { %v1088_v20 = vpack.c.bf16 %v1050_v19, %v1049_v18  ;;  %v1094_v26 = vrot.slane %v4777_v24, %v1093_v23  ;;  %v1098_v37 = vrot.slane %v4777_v24, %v1097_v34  ;;  %v4064_v51 = vld [vmem:[%s4686_s20 + $0x98] ss:$12 sps:$4 sm:$0xff]   ;;  %3782 = vmatprep.subr.bf16.mxu1 %v4063_v50  ;;  %v4065_v52 = vld [vmem:[%s4686_s20 + $0x80] ss:$12 sps:$4 sm:$0xff]   ;;  %v4066_v53 = vld [vmem:[%s4686_s20 + $0x68] ss:$12 sps:$4 sm:$0xff]  }
 0x145   : > { %3783 = vmatpush3.bf16.msra.mxu1 %v4063_v50  ;;  %v4067_v54 = vld [vmem:[%s4686_s20 + $0x50] ss:$12 sps:$4 sm:$0xff]   ;;  %v4068_v55 = vld [vmem:[%s4686_s20 + $0x38] ss:$12 sps:$4 sm:$0xff]   ;;  %v4069_v56 = vld [vmem:[%s4686_s20 + $0x20] ss:$12 sps:$4 sm:$0xff]  }
 0x146   : > { %1239 = vmatpush1.bf16.msra.mxu0 %v4047_v4  ;;  %3784 = vmatprep.subr.bf16.mxu1 %v4064_v51  ;;  %v4070_v57 = vld [vmem:[%s4686_s20 + $0x8] ss:$12 sps:$4 sm:$0xff]   ;;  %v4822_v60 = vld [vmem:[%s5357_s7] sm:$0xff]  ;;  %v4828_v63 = vld [vmem:[%s5357_s7 + $0x18] sm:$0xff]  ;;  %s4379_s19 = smov 32   ;;  %p3647_p10 = scmp.ne.s32.totalorder %s4524_s6, 1 }
 0x147   : > { %1240 = vmatprep.subr.bf16.mxu0 %v4048_v5  ;;  %v4817_v58 = vld [vmem:[%s5357_s7 + $0x10] sm:$0xff]  ;;  %v4835_v4 = vld [vmem:[%s5357_s7 + $0x8] sm:$0xff]  ;;  %s5364_s29 = sld [smem:[#allocation29_spill]] (!%p3647_p10) }
 0x148   : > { %s5365_s3 = sld [smem:[#allocation31_spill]] (!%p3647_p10) }
 0x149   : > { %3785 = vmatpush3.bf16.msra.mxu1 %v4064_v51  ;;  %s5367_s27 = sld [smem:[#allocation34_spill]] (!%p3647_p10) }
 0x14a   : > { %1241 = vmatpush1.bf16.msra.mxu0 %v4050_v7  ;;  %3786 = vmatprep.subr.bf16.mxu1 %v4065_v52 }
 0x14b   : > { %1242 = vmatprep.subr.bf16.mxu0 %v4051_v9 }
 0x14d   : > { %3787 = vmatpush3.bf16.msra.mxu1 %v4065_v52 }
 0x14e   : > { %1243 = vmatpush1.bf16.msra.mxu0 %v4053_v11  ;;  %3788 = vmatprep.subr.bf16.mxu1 %v4066_v53  ;;  %v1101_v11 = vsub.s32 2, %v4773_v22 }
 0x14f   : > { %1244 = vmatprep.subr.bf16.mxu0 %v4054_v12 }
 0x150   : > { %v1102_v12 = vrot.slane %v4777_v24, %v1101_v11  ;;  %v4071_v11 = vld [vmem:[%s4681_s5 + $0x8] sm:$0xff]  }
 0x151   : > { %3789 = vmatpush3.bf16.msra.mxu1 %v4066_v53 }
 0x152   : > { %1245 = vmatpush1.bf16.msra.mxu0 %v4056_v13  ;;  %3790 = vmatprep.subr.bf16.mxu1 %v4067_v54 }
 0x153   : > { %1246 = vmatprep.subr.bf16.mxu0 %v4057_v14 }
 0x155   : > { %3791 = vmatpush3.bf16.msra.mxu1 %v4067_v54 }
 0x156   : > { %1247 = vmatpush1.bf16.msra.mxu0 %v4059_v15  ;;  %3792 = vmatprep.subr.bf16.mxu1 %v4068_v55 }
 0x157   : > { %1248 = vmatprep.subr.bf16.mxu0 %v4060_v16 }
 0x159   : > { %3793 = vmatpush3.bf16.msra.mxu1 %v4068_v55 }
 0x15a   : > { %1249 = vmatpush1.bf16.msra.mxu0 %v4062_v17  ;;  %3794 = vmatprep.subr.bf16.mxu1 %v4069_v56 }
 0x15d   : > { %1267 = vmatmul.mubr.bf16.vlgmr.msra.gmra.mxu0 %v1087_v10  ;;  %3795 = vmatpush3.bf16.msra.mxu1 %v4069_v56 }
 0x15e   : > { %1276 = vmatprep.mubr.bf16.mxu0 %v4376_v0  ;;  %3796 = vmatprep.subr.bf16.mxu1 %v4070_v57 }
 0x161   : > { %3797 = vmatpush3.bf16.msra.mxu1 %v4070_v57 }
 0x164   : > { %3799 = vmatmul.mubr.bf16.vlgmr.msra.gmra.mxu1 %v1088_v20 }
 0x165   : > { %1277 = vmatmul.mubr.bf16.gmra.mxu0 %v1088_v20 }
 0x21d   : > { %v1268_v25 = vpop.f32.mrf.mxu0 }
 0x21e   : > { %v1269_v29 = vadd.f32 %v1268_v25, %v1094_v26 }
 0x21f   : > { %v1270_v27 = vpop.f32.mrf.mxu0 }
 0x220   : > { %v1271_v42 = vadd.f32 %v1270_v27, %v1098_v37 }
 0x221   : > { %v1272_v28 = vpop.f32.mrf.mxu0 }
 0x222   : > { %v1273_v30 = vadd.f32 %v1272_v28, %v1094_v26 }
 0x223   : > { %v1274_v31 = vpop.f32.mrf.mxu0 }
 0x224   : > { %v4782_v32 = vpack.c.bf16 %v1273_v30, %v1269_v29  ;;  %v1275_v39 = vadd.f32 %v1274_v31, %v1098_v37  ;;  %v3800_v13 = vpop.f32.mrf.mxu1 }
 0x225   : > { %v1278_v33 = vpop.f32.mrf.mxu0  ;;  %v1330_v15 = vadd.f32 %v3800_v13, %v1102_v12 }
 0x226   : > { %3806 = vmatprep.mubr.msk.bf16.mxu0 %vm1356_vm0, %v4782_v32  ;;  %v4792_v44 = vpack.c.bf16 %v1275_v39, %v1271_v42  ;;  %v1279_v48 = vadd.f32 %v1278_v33, %v1094_v26  ;;  %v1321_v14 = vpop.f32.mrf.mxu1 }
 0x227   : > { %v1280_v35 = vpop.f32.mrf.mxu0 }
 0x228   : > { %v1281_v40 = vadd.f32 %v1280_v35, %v1098_v37  ;;  %v1364_v46 = vsel %vm1356_vm0, %v4792_v44, 0  ;;  %v3801_v16 = vpop.f32.mrf.mxu1 }
 0x229   : > { %v1282_v36 = vpop.f32.mrf.mxu0  ;;  %v1333_v17 = vadd.f32 %v3801_v16, %v1102_v12 }
 0x22a   : > { %v1283_v47 = vadd.f32 %v1282_v36, %v1094_v26 }
 0x22b   : > { %v1284_v38 = vpop.f32.mrf.mxu0  ;;  %v4844_v18 = vpack.c.bf16 %v1333_v17, %v1330_v15 }
 0x22c   : > { %v1285_v41 = vadd.f32 %v1284_v38, %v1098_v37  ;;  %v4802_v49 = vpack.c.bf16 %v1283_v47, %v1279_v48 }
 0x22d   : > { %3810 = vmatprep.subr.bf16.mxu1 %v4844_v18 }
 0x22e   : > { %v4790_v43 = vpack.c.bf16 %v1285_v41, %v1281_v40  ;;  %3811 = vmatpush3.bf16.msra.mxu1 %v4844_v18 }
 0x230   : > { %3958 = vmatprep.subr.msk.bf16.mxu0 %vm1356_vm0, %v4790_v43  ;;  %v1367_v45 = vsel %vm1356_vm0, %v4790_v43, 0 }
 0x231   : > { %3803 = vmatpush3.bf16.xpose.msra.mxu0 %v1367_v45  ;;  %v1322_v45 = vadd.f32 %v1321_v14, %v1102_v12 }
 0x232   : > { %3959 = vmatprep.subr.msk.bf16.mxu0 %vm1356_vm0, %v4792_v44 }
 0x239   : > { %3805 = vmatpush3.bf16.xpose.msra.mxu0 %v1364_v46  ;;  %v1324_v46 = vpop.f32.mrf.mxu1 }
 0x23a   : > { %v1325_v47 = vadd.f32 %v1324_v46, %v1102_v12  ;;  %v4072_v12 = vld [vmem:[%s4681_s5] sm:$0xff]  }
 0x23c   : > { %v4852_v48 = vpack.c.bf16 %v1325_v47, %v1322_v45 }
 0x23e   : > { %3812 = vmatprep.subr.bf16.mxu1 %v4852_v48 }
 0x23f   : > { %3813 = vmatpush3.bf16.msra.mxu1 %v4852_v48 }
 0x240   : > { %3807 = vmatmul.mubr.msk.bf16.vlgmr.msra.gmra.mxu0 %vm1356_vm0, %v4802_v49 }
 0x300   : > { %v3808_v59 = vpop.f32.mrf.mxu0 }
 0x301   : > { %v1412_v61 = vadd.f32 %v3808_v59, %v4817_v58 }
 0x302   : > { %v1403_v62 = vpop.f32.mrf.mxu0 }
 0x303   : > { %v1404_v1 = vadd.f32 %v1403_v62, %v4822_v60  ;;  %v1424_v2 = vsel %vm1356_vm0, %v1412_v61, -inf }
 0x304   : > { %1425 = vmax.xlane.f32.xlu1 %v1424_v2  ;;  %v3809_v3 = vpop.f32.mrf.mxu0 }
 0x305   : > { %v1415_v5 = vadd.f32 %v3809_v3, %v4828_v63  ;;  %v1418_v6 = vsel %vm1356_vm0, %v1404_v1, -inf }
 0x306   : > { %v1406_v7 = vpop.f32.mrf.mxu0  ;;  %1419 = vmax.xlane.f32.xlu0 %v1418_v6 }
 0x307   : > { %v1407_v8 = vadd.f32 %v1406_v7, %v4835_v4  ;;  %v1427_v9 = vsel %vm1356_vm0, %v1415_v5, -inf }
 0x308   : > { %1428 = vmax.xlane.f32.xlu1 %v1427_v9 }
 0x309   : > { %v1421_v10 = vsel %vm1356_vm0, %v1407_v8, -inf }
 0x30a   : > { %1422 = vmax.xlane.f32.xlu0 %v1421_v10 }
 0x38d   : > { %v1426_v19 = vpop.xlane.xlu1 %1425 }
 0x38e   : > { %v1432_v20 = vsub.f32 %v1412_v61, %v1426_v19 }
 0x38f   : > { %v1420_v21 = vpop.xlane.xlu0 %1419 }
 0x390   : > { %v1438_v25 = vmul.f32 1.442695, %v1432_v20  ;;  %v1430_v26 = vsub.f32 %v1404_v1, %v1420_v21 }
 0x391   : > { %v1429_v27 = vpop.xlane.xlu1 %1428 }
 0x392   : > { %4119 = vpow2.f32 %v1438_v25  ;;  %v1434_v28 = vmul.f32 1.442695, %v1430_v26  ;;  %v1433_v24 = vsub.f32 %v1415_v5, %v1429_v27 }
 0x393   : > { %v1423_v29 = vpop.xlane.xlu0 %1422 }
 0x394   : > { %4121 = vpow2.f32 %v1434_v28  ;;  %v1431_v30 = vsub.f32 %v1407_v8, %v1423_v29  ;;  %v1440_v31 = vmul.f32 1.442695, %v1433_v24 }
 0x396   : > { %v1436_v33 = vmul.f32 1.442695, %v1431_v30 }
 0x398   : > { %4123 = vpow2.f32 %v1436_v33 }
 0x399   : > { %4125 = vpow2.f32 %v1440_v31 }
 0x39f   : > { %v4120_v35 = vpop.eup %4119 }
 0x3a0   : > { %v1448_v36 = vsel %vm1356_vm0, %v4120_v35, 0.0 }
 0x3a1   : > { %v4122_v37 = vpop.eup %4121  ;;  %1449 = vadd.xlane.f32.xlu0 %v1448_v36 }
 0x3a2   : > { %v1442_v38 = vsel %vm1356_vm0, %v4122_v37, 0.0 }
 0x3a5   : > { %v4124_v39 = vpop.eup %4123  ;;  %1443 = vadd.xlane.f32.xlu0 %v1442_v38 }
 0x3a6   : > { %v1445_v40 = vsel %vm1356_vm0, %v4124_v39, 0.0  ;;  %v4126_v41 = vpop.eup %4125 }
 0x3a7   : > { %1446 = vadd.xlane.f32.xlu1 %v1445_v40  ;;  %v1451_v42 = vsel %vm1356_vm0, %v4126_v41, 0.0 }
 0x3ab   : > { %1452 = vadd.xlane.f32.xlu1 %v1451_v42 }
 0x3bb   : > { %1533 = vrot.lane.b32.xlu0 %v4790_v43, %s4377_s16 }
 0x3bc   : > { %1531 = vrot.lane.b32.xlu1 %v4792_v44, %s4377_s16 }
 0x3c0   : > { %1525 = vrot.lane.b32.xlu1 %v4782_v32, %s4377_s16 }
 0x3c4   : > { %1527 = vrot.lane.b32.xlu1 %v4802_v49, %s4377_s16 }
 0x42a   : > { %v1450_v50 = vpop.xlane.xlu0 %1449 }
 0x42e   : > { %v1444_v51 = vpop.xlane.xlu0 %1443 }
 0x42f   : > { %4127 = vrcp.f32 %v1444_v51 }
 0x430   : > { %v1447_v52 = vpop.xlane.xlu1 %1446 }
 0x431   : > { %4129 = vrcp.f32 %v1447_v52 }
 0x432   : > { %v1534_v53 = vpop.permute.xlu0 %1533  ;;  %4131 = vrcp.f32 %v1450_v50 }
 0x433   : > { %3960 = vmatprep.subr.msk.bf16.mxu1 %vm1356_vm0, %v1534_v53  ;;  %v1545_v7 = vsel %vm1356_vm0, %v1534_v53, 0 }
 0x434   : > { %v1453_v54 = vpop.xlane.xlu1 %1452 }
 0x435   : > { %4133 = vrcp.f32 %v1453_v54 }
 0x438   : > { %v1532_v62 = vpop.permute.xlu1 %1531 }
 0x439   : > { %v1542_v9 = vsel %vm1356_vm0, %v1532_v62, 0 }
 0x43c   : > { %v4128_v55 = vpop.eup %4127  ;;  %v1526_v8 = vpop.permute.xlu1 %1525 }
 0x43d   : > { %v1458_v57 = vmul.f32 %v4128_v55, %v4122_v37 }
 0x43e   : > { %v4130_v56 = vpop.eup %4129 }
 0x43f   : > { %v1459_v59 = vmul.f32 %v4130_v56, %v4124_v39  ;;  %v4132_v61 = vpop.eup %4131 }
 0x440   : > { %v1460_v3 = vmul.f32 %v4132_v61, %v4120_v35  ;;  %v1528_v10 = vpop.permute.xlu1 %1527 }
 0x441   : > { %v1462_v1 = vpack.c.bf16 %v1459_v59, %v1458_v57 }
 0x442   : > { %v4134_v2 = vpop.eup %4133 }
 0x443   : > { %3814 = vmatprep.mubr.msk.bf16.mxu1 %vm1356_vm0, %v1462_v1  ;;  %v1461_v5 = vmul.f32 %v4134_v2, %v4126_v41 }
 0x445   : > { %v1463_v6 = vpack.c.bf16 %v1461_v5, %v1460_v3 }
 0x447   : > { %3815 = vmatmul.mubr.msk.bf16.vlgmr.msra.gmra.mxu1 %vm1356_vm0, %v1463_v6 }
 0x448   : > { %3819 = vmatpush3.bf16.xpose.msra.mxu1 %v1545_v7  ;;  %3822 = vmatprep.mubr.msk.bf16.mxu1 %vm1356_vm0, %v1526_v8 }
 0x449   : > { %3961 = vmatprep.subr.msk.bf16.mxu1 %vm1356_vm0, %v1532_v62 }
 0x450   : > { %3821 = vmatpush3.bf16.xpose.msra.mxu1 %v1542_v9 }
 0x451   : > { %3842 = vmatprep.subr.bf16.mxu1 %v4071_v11 }
 0x457   : > { %3823 = vmatmul.mubr.msk.bf16.vlgmr.msra.gmra.mxu1 %vm1356_vm0, %v1528_v10 }
 0x458   : > { %3843 = vmatpush3.bf16.msra.mxu1 %v4071_v11 }
 0x459   : > { %3844 = vmatprep.subr.bf16.mxu1 %v4072_v12 }
 0x45c   : > { %3845 = vmatpush3.bf16.msra.mxu1 %v4072_v12 }
 0x507   : > { %v3816_v13 = vpop.f32.mrf.mxu1 }
 0x509   : > { %v1506_v14 = vpop.f32.mrf.mxu1 }
 0x50b   : > { %v3817_v15 = vpop.f32.mrf.mxu1 }
 0x50c   : > { %v1522_v19 = vpack.c.bf16 %v3817_v15, %v3816_v13 }
 0x50d   : > { %v1509_v16 = vpop.f32.mrf.mxu1 }
 0x50e   : > { %v1521_v17 = vpack.c.bf16 %v1509_v16, %v1506_v14  ;;  %v4074_v14 = vld [vmem:[%s4681_s5 + $0x10] sm:$0xff]  }
 0x510   : > { %3846 = vmatprep.mubr.msk.bf16.mxu1 %vm1356_vm0, %v1521_v17 }
 0x511   : > { %3847 = vmatmul.mubr.msk.bf16.vlgmr.msra.gmra.mxu1 %vm1356_vm0, %v1522_v19 }
 0x517   : > { %v3824_v20 = vpop.f32.mrf.mxu1 }
 0x518   : > { %v1590_v27 = vadd.f32 %v3824_v20, %v4817_v58 }
 0x519   : > { %v1581_v21 = vpop.f32.mrf.mxu1 }
 0x51a   : > { %v1582_v25 = vadd.f32 %v1581_v21, %v4822_v60  ;;  %v1602_v33 = vsel %vm1356_vm0, %v1590_v27, -inf }
 0x51b   : > { %v3825_v26 = vpop.f32.mrf.mxu1 }
 0x51c   : > { %v1596_v28 = vsel %vm1356_vm0, %v1582_v25, -inf  ;;  %v1593_v30 = vadd.f32 %v3825_v26, %v4828_v63 }
 0x51d   : > { %v1584_v24 = vpop.f32.mrf.mxu1  ;;  %1597 = vmax.xlane.f32.xlu0 %v1596_v28 }
 0x51e   : > { %v1585_v29 = vadd.f32 %v1584_v24, %v4835_v4  ;;  %v1605_v35 = vsel %vm1356_vm0, %v1593_v30, -inf }
 0x520   : > { %v1599_v31 = vsel %vm1356_vm0, %v1585_v29, -inf }
 0x521   : > { %1600 = vmax.xlane.f32.xlu1 %v1599_v31  ;;  %1603 = vmax.xlane.f32.xlu0 %v1602_v33 }
 0x525   : > { %1606 = vmax.xlane.f32.xlu0 %v1605_v35 }
 0x5a6   : > { %v1598_v36 = vpop.xlane.xlu0 %1597 }
 0x5a7   : > { %v1608_v37 = vsub.f32 %v1582_v25, %v1598_v36 }
 0x5a9   : > { %v1612_v45 = vmul.f32 1.442695, %v1608_v37 }
 0x5aa   : > { %v1601_v38 = vpop.xlane.xlu1 %1600  ;;  %v1604_v39 = vpop.xlane.xlu0 %1603 }
 0x5ab   : > { %v1610_v40 = vsub.f32 %v1590_v27, %v1604_v39  ;;  %v1609_v41 = vsub.f32 %v1585_v29, %v1601_v38 }
 0x5ad   : > { %v1616_v42 = vmul.f32 1.442695, %v1610_v40  ;;  %v1614_v50 = vmul.f32 1.442695, %v1609_v41 }
 0x5ae   : > { %v1607_v46 = vpop.xlane.xlu0 %1606 }
 0x5af   : > { %v1611_v47 = vsub.f32 %v1593_v30, %v1607_v46  ;;  %4135 = vpow2.f32 %v1616_v42 }
 0x5b0   : > { %4137 = vpow2.f32 %v1612_v45 }
 0x5b1   : > { %v1618_v51 = vmul.f32 1.442695, %v1611_v47 }
 0x5b3   : > { %4139 = vpow2.f32 %v1618_v51 }
 0x5b4   : > { %4141 = vpow2.f32 %v1614_v50 }
 0x5bc   : > { %v4136_v52 = vpop.eup %4135 }
 0x5bd   : > { %v1626_v53 = vsel %vm1356_vm0, %v4136_v52, 0.0  ;;  %v4138_v54 = vpop.eup %4137 }
 0x5be   : > { %1627 = vadd.xlane.f32.xlu0 %v1626_v53  ;;  %v1620_v59 = vsel %vm1356_vm0, %v4138_v54, 0.0 }
 0x5c0   : > { %v4140_v55 = vpop.eup %4139 }
 0x5c1   : > { %v1629_v56 = vsel %vm1356_vm0, %v4140_v55, 0.0  ;;  %v4142_v57 = vpop.eup %4141 }
 0x5c2   : > { %1630 = vadd.xlane.f32.xlu1 %v1629_v56  ;;  %1621 = vadd.xlane.f32.xlu0 %v1620_v59  ;;  %v1623_v61 = vsel %vm1356_vm0, %v4142_v57, 0.0 }
 0x5c6   : > { %1624 = vadd.xlane.f32.xlu1 %v1623_v61 }
 0x5d7   : > { %1644 = vrot.lane.b32.xlu1 %v4852_v48, %s4377_s16 }
 0x5d8   : > { %1646 = vrot.lane.b32.xlu0 %v4844_v18, %s4377_s16 }
 0x5db   : > { %1847 = vrot.lane.b32.xlu1 %v4790_v43, %s4378_s8 }
 0x5dc   : > { %1841 = vrot.lane.b32.xlu0 %v4782_v32, %s4378_s8 }
 0x5df   : > { %1845 = vrot.lane.b32.xlu1 %v4792_v44, %s4378_s8 }
 0x5e0   : > { %2096 = vrot.lane.b32.xlu0 %v4790_v43, %s4379_s19 }
 0x5e3   : > { %1843 = vrot.lane.b32.xlu1 %v4802_v49, %s4378_s8 }
 0x5e4   : > { %2090 = vrot.lane.b32.xlu0 %v4782_v32, %s4379_s19  ;;  %v4073_v32 = vld [vmem:[%s4681_s5 + $0x18] sm:$0xff]  }
 0x5e7   : > { %2094 = vrot.lane.b32.xlu1 %v4792_v44, %s4379_s19 }
 0x5eb   : > { %2092 = vrot.lane.b32.xlu1 %v4802_v49, %s4379_s19 }
 0x647   : > { %v1628_v62 = vpop.xlane.xlu0 %1627 }
 0x64b   : > { %v1631_v1 = vpop.xlane.xlu1 %1630  ;;  %v1622_v2 = vpop.xlane.xlu0 %1621 }
 0x64c   : > { %4143 = vrcp.f32 %v1631_v1 }
 0x64d   : > { %4145 = vrcp.f32 %v1622_v2 }
 0x64e   : > { %4147 = vrcp.f32 %v1628_v62 }
 0x64f   : > { %v1625_v43 = vpop.xlane.xlu1 %1624  ;;  %v1647_v3 = vpop.permute.xlu0 %1646 }
 0x650   : > { %4149 = vrcp.f32 %v1625_v43  ;;  %3826 = vmatprep.subr.bf16.mxu0 %v1647_v3 }
 0x651   : > { %3827 = vmatpush3.bf16.msra.mxu0 %v1647_v3 }
 0x653   : > { %v1645_v5 = vpop.permute.xlu1 %1644  ;;  %v1842_v26 = vpop.permute.xlu0 %1841 }
 0x654   : > { %3828 = vmatprep.subr.bf16.mxu0 %v1645_v5 }
 0x655   : > { %3829 = vmatpush3.bf16.msra.mxu0 %v1645_v5 }
 0x656   : > { %3834 = vmatprep.subr.bf16.mxu0 %v4073_v32 }
 0x657   : > { %v1848_v15 = vpop.permute.xlu1 %1847  ;;  %v2097_v29 = vpop.permute.xlu0 %2096 }
 0x658   : > { %v1859_v27 = vsel %vm1356_vm0, %v1848_v15, 0  ;;  %v2108_v31 = vsel %vm1356_vm0, %v2097_v29, 0 }
 0x659   : > { %v4144_v44 = vpop.eup %4143 }
 0x65a   : > { %v4146_v6 = vpop.eup %4145  ;;  %v1639_v8 = vmul.f32 %v4144_v44, %v4140_v55 }
 0x65b   : > { %v4148_v49 = vpop.eup %4147  ;;  %v1636_v9 = vmul.f32 %v4146_v6, %v4138_v54  ;;  %v1846_v28 = vpop.permute.xlu1 %1845 }
 0x65c   : > { %v1638_v11 = vmul.f32 %v4148_v49, %v4136_v52  ;;  %v1856_v24 = vsel %vm1356_vm0, %v1846_v28, 0  ;;  %v2091_v33 = vpop.permute.xlu0 %2090 }
 0x65d   : > { %v4150_v7 = vpop.eup %4149 }
 0x65e   : > { %v1637_v10 = vmul.f32 %v4150_v7, %v4142_v57  ;;  %v1641_v13 = vpack.c.bf16 %v1639_v8, %v1638_v11 }
 0x65f   : > { %v1844_v30 = vpop.permute.xlu1 %1843 }
 0x660   : > { %v1640_v12 = vpack.c.bf16 %v1637_v10, %v1636_v9 }
 0x662   : > { %3830 = vmatprep.mubr.msk.bf16.mxu0 %vm1356_vm0, %v1640_v12 }
 0x663   : > { %3831 = vmatmul.mubr.msk.bf16.vlgmr.msra.gmra.mxu0 %vm1356_vm0, %v1641_v13  ;;  %v2095_v35 = vpop.permute.xlu1 %2094 }
 0x664   : > { %3835 = vmatpush3.bf16.msra.mxu0 %v4073_v32  ;;  %v2105_v36 = vsel %vm1356_vm0, %v2095_v35, 0 }
 0x665   : > { %3836 = vmatprep.subr.bf16.mxu0 %v4074_v14 }
 0x667   : > { %v2093_v37 = vpop.permute.xlu1 %2092 }
 0x668   : > { %3837 = vmatpush3.bf16.msra.mxu0 %v4074_v14 }
 0x669   : > { %3962 = vmatprep.subr.msk.bf16.mxu0 %vm1356_vm0, %v1848_v15 }
 0x723   : > { %v3832_v16 = vpop.f32.mrf.mxu0 }
 0x725   : > { %v1690_v17 = vpop.f32.mrf.mxu0 }
 0x727   : > { %v3833_v19 = vpop.f32.mrf.mxu0 }
 0x728   : > { %v1706_v25 = vpack.c.bf16 %v3833_v19, %v3832_v16 }
 0x729   : > { %v1693_v20 = vpop.f32.mrf.mxu0 }
 0x72a   : > { %v1705_v21 = vpack.c.bf16 %v1693_v20, %v1690_v17 }
 0x72c   : > { %3838 = vmatprep.mubr.msk.bf16.mxu0 %vm1356_vm0, %v1705_v21 }
 0x72d   : > { %3839 = vmatmul.mubr.msk.bf16.vlgmr.msra.gmra.mxu0 %vm1356_vm0, %v1706_v25 }
 0x72e   : > { %3851 = vmatpush3.bf16.xpose.msra.mxu0 %v1859_v27  ;;  %3854 = vmatprep.mubr.msk.bf16.mxu0 %vm1356_vm0, %v1842_v26 }
 0x72f   : > { %3963 = vmatprep.subr.msk.bf16.mxu0 %vm1356_vm0, %v1846_v28 }
 0x736   : > { %3853 = vmatpush3.bf16.xpose.msra.mxu0 %v1856_v24 }
 0x737   : > { %3964 = vmatprep.subr.msk.bf16.mxu0 %vm1356_vm0, %v2097_v29 }
 0x73d   : > { %3855 = vmatmul.mubr.msk.bf16.vlgmr.msra.gmra.mxu0 %vm1356_vm0, %v1844_v30 }
 0x73e   : > { %3875 = vmatpush3.bf16.xpose.msra.mxu0 %v2108_v31  ;;  %3878 = vmatprep.mubr.msk.bf16.mxu0 %vm1356_vm0, %v2091_v33 }
 0x73f   : > { %3965 = vmatprep.subr.msk.bf16.mxu0 %vm1356_vm0, %v2095_v35 }
 0x746   : > { %3877 = vmatpush3.bf16.xpose.msra.mxu0 %v2105_v36 }
 0x74d   : > { %3879 = vmatmul.mubr.msk.bf16.vlgmr.msra.gmra.mxu0 %vm1356_vm0, %v2093_v37 }
 0x74e   : > { %2575 = vmatprep.mubr.bf16.mxu0 %v4376_v0 }
 0x7ed   : > { %v4927_v38 = vpop.f32.mrf.mxu0 }
 0x7ef   : > { %v4929_v39 = vpop.f32.mrf.mxu0 }
 0x7f1   : > { %v4931_v40 = vpop.f32.mrf.mxu0 }
 0x7f3   : > { %v4933_v41 = vpop.f32.mrf.mxu0 }
 0x7fd   : > { %v3856_v42 = vpop.f32.mrf.mxu0 }
 0x7fe   : > { %v1904_v50 = vadd.f32 %v3856_v42, %v4817_v58 }
 0x7ff   : > { %v1895_v45 = vpop.f32.mrf.mxu0 }
 0x800   : > { %v1896_v46 = vadd.f32 %v1895_v45, %v4822_v60  ;;  %v1916_v56 = vsel %vm1356_vm0, %v1904_v50, -inf }
 0x801   : > { %v3857_v47 = vpop.f32.mrf.mxu0 }
 0x802   : > { %v1910_v51 = vsel %vm1356_vm0, %v1896_v46, -inf  ;;  %v1907_v54 = vadd.f32 %v3857_v47, %v4828_v63 }
 0x803   : > { %v1898_v52 = vpop.f32.mrf.mxu0  ;;  %1911 = vmax.xlane.f32.xlu0 %v1910_v51 }
 0x804   : > { %v1899_v53 = vadd.f32 %v1898_v52, %v4835_v4  ;;  %v1919_v57 = vsel %vm1356_vm0, %v1907_v54, -inf }
 0x806   : > { %v1913_v55 = vsel %vm1356_vm0, %v1899_v53, -inf }
 0x807   : > { %1914 = vmax.xlane.f32.xlu1 %v1913_v55  ;;  %1917 = vmax.xlane.f32.xlu0 %v1916_v56 }
 0x80b   : > { %1920 = vmax.xlane.f32.xlu0 %v1919_v57 }
 0x80d   : > { %v3880_v15 = vpop.f32.mrf.mxu0 }
 0x80e   : > { %v2153_v25 = vadd.f32 %v3880_v15, %v4817_v58 }
 0x80f   : > { %v2144_v16 = vpop.f32.mrf.mxu0 }
 0x810   : > { %v2145_v21 = vadd.f32 %v2144_v16, %v4822_v60  ;;  %v2165_v24 = vsel %vm1356_vm0, %v2153_v25, -inf }
 0x811   : > { %v3881_v17 = vpop.f32.mrf.mxu0 }
 0x812   : > { %v2156_v27 = vadd.f32 %v3881_v17, %v4828_v63  ;;  %v2159_v28 = vsel %vm1356_vm0, %v2145_v21, -inf }
 0x813   : > { %v2147_v19 = vpop.f32.mrf.mxu0 }
 0x814   : > { %v2148_v20 = vadd.f32 %v2147_v19, %v4835_v4  ;;  %v2168_v29 = vsel %vm1356_vm0, %v2156_v27, -inf }
 0x816   : > { %v2162_v26 = vsel %vm1356_vm0, %v2148_v20, -inf }
 0x88c   : > { %v1912_v59 = vpop.xlane.xlu0 %1911 }
 0x88d   : > { %v1922_v61 = vsub.f32 %v1896_v46, %v1912_v59 }
 0x88f   : > { %v1926_v5 = vmul.f32 1.442695, %v1922_v61 }
 0x890   : > { %v1915_v62 = vpop.xlane.xlu1 %1914  ;;  %v1918_v1 = vpop.xlane.xlu0 %1917 }
 0x891   : > { %v1924_v2 = vsub.f32 %v1904_v50, %v1918_v1  ;;  %v1923_v43 = vsub.f32 %v1899_v53, %v1915_v62 }
 0x893   : > { %v1930_v3 = vmul.f32 1.442695, %v1924_v2  ;;  %v1928_v6 = vmul.f32 1.442695, %v1923_v43 }
 0x894   : > { %v1921_v32 = vpop.xlane.xlu0 %1920 }
 0x895   : > { %v1925_v44 = vsub.f32 %v1907_v54, %v1921_v32  ;;  %4151 = vpow2.f32 %v1930_v3 }
 0x896   : > { %4153 = vpow2.f32 %v1926_v5 }
 0x897   : > { %v1932_v49 = vmul.f32 1.442695, %v1925_v44 }
 0x899   : > { %4155 = vpow2.f32 %v1932_v49 }
 0x89a   : > { %4157 = vpow2.f32 %v1928_v6 }
 0x8a2   : > { %v4152_v7 = vpop.eup %4151 }
 0x8a3   : > { %v1940_v8 = vsel %vm1356_vm0, %v4152_v7, 0.0  ;;  %v4154_v9 = vpop.eup %4153 }
 0x8a4   : > { %1941 = vadd.xlane.f32.xlu0 %v1940_v8  ;;  %v1934_v13 = vsel %vm1356_vm0, %v4154_v9, 0.0 }
 0x8a6   : > { %v4156_v10 = vpop.eup %4155 }
 0x8a7   : > { %v1943_v11 = vsel %vm1356_vm0, %v4156_v10, 0.0  ;;  %v4158_v12 = vpop.eup %4157 }
 0x8a8   : > { %1944 = vadd.xlane.f32.xlu1 %v1943_v11  ;;  %1935 = vadd.xlane.f32.xlu0 %v1934_v13  ;;  %v1937_v14 = vsel %vm1356_vm0, %v4158_v12, 0.0  ;;  %v3848_v11 = vpop.f32.mrf.mxu1 }
 0x8ac   : > { %1938 = vadd.xlane.f32.xlu1 %v1937_v14 }
 0x8bd   : > { %1956 = vrot.lane.b32.xlu1 %v4852_v48, %s4378_s8 }
 0x8be   : > { %1958 = vrot.lane.b32.xlu0 %v4844_v18, %s4378_s8 }
 0x8dd   : > { %2163 = vmax.xlane.f32.xlu0 %v2162_v26 }
 0x8e1   : > { %2160 = vmax.xlane.f32.xlu1 %v2159_v28  ;;  %2166 = vmax.xlane.f32.xlu0 %v2165_v24 }
 0x8e5   : > { %2169 = vmax.xlane.f32.xlu1 %v2168_v29 }
 0x92d   : > { %v1942_v30 = vpop.xlane.xlu0 %1941 }
 0x931   : > { %v1945_v4 = vpop.xlane.xlu1 %1944  ;;  %v1936_v31 = vpop.xlane.xlu0 %1935 }
 0x932   : > { %4159 = vrcp.f32 %v1945_v4 }
 0x933   : > { %4161 = vrcp.f32 %v1936_v31 }
 0x934   : > { %4163 = vrcp.f32 %v1942_v30 }
 0x935   : > { %v1939_v58 = vpop.xlane.xlu1 %1938  ;;  %v1959_v60 = vpop.permute.xlu0 %1958 }
 0x936   : > { %4165 = vrcp.f32 %v1939_v58  ;;  %3858 = vmatprep.subr.bf16.mxu1 %v1959_v60 }
 0x937   : > { %3859 = vmatpush3.bf16.msra.mxu1 %v1959_v60 }
 0x939   : > { %v1957_v63 = vpop.permute.xlu1 %1956 }
 0x93a   : > { %3860 = vmatprep.subr.bf16.mxu1 %v1957_v63 }
 0x93b   : > { %3861 = vmatpush3.bf16.msra.mxu1 %v1957_v63 }
 0x93f   : > { %v4160_v33 = vpop.eup %4159 }
 0x940   : > { %v4162_v35 = vpop.eup %4161  ;;  %v1953_v42 = vmul.f32 %v4160_v33, %v4156_v10  ;;  %v4076_v10 = vld [vmem:[%s4681_s5 + $0x20] sm:$0xff]  }
 0x941   : > { %v4164_v36 = vpop.eup %4163  ;;  %v1950_v45 = vmul.f32 %v4162_v35, %v4154_v9  ;;  %v4075_v9 = vld [vmem:[%s4681_s5 + $0x28] sm:$0xff]  }
 0x942   : > { %v1952_v47 = vmul.f32 %v4164_v36, %v4152_v7  ;;  %3866 = vmatprep.subr.bf16.mxu1 %v4075_v9  ;;  %v4077_v36 = vld [vmem:[%s4681_s5 + $0x38] sm:$0xff]  }
 0x943   : > { %v4166_v37 = vpop.eup %4165 }
 0x944   : > { %v1951_v46 = vmul.f32 %v4166_v37, %v4158_v12  ;;  %v1955_v51 = vpack.c.bf16 %v1953_v42, %v1952_v47  ;;  %v1826_v12 = vpop.f32.mrf.mxu1  ;;  %v4078_v37 = vld [vmem:[%s4681_s5 + $0x30] sm:$0xff]   ;;  %v1835_v42 = vadd.f32 %v3848_v11, %v4927_v38 }
 0x946   : > { %v1954_v50 = vpack.c.bf16 %v1951_v46, %v1950_v45  ;;  %v3849_v13 = vpop.f32.mrf.mxu1  ;;  %v1827_v46 = vadd.f32 %v1826_v12, %v4929_v39 }
 0x948   : > { %3862 = vmatprep.mubr.msk.bf16.mxu1 %vm1356_vm0, %v1954_v50  ;;  %v1829_v14 = vpop.f32.mrf.mxu1 }
 0x949   : > { %3863 = vmatmul.mubr.msk.bf16.vlgmr.msra.gmra.mxu1 %vm1356_vm0, %v1955_v51  ;;  %v1838_v51 = vadd.f32 %v3849_v13, %v4931_v40 }
 0x94a   : > { %3867 = vmatpush3.bf16.msra.mxu1 %v4075_v9 }
 0x94b   : > { %3868 = vmatprep.subr.bf16.mxu1 %v4076_v10 }
 0x94e   : > { %3869 = vmatpush3.bf16.msra.mxu1 %v4076_v10  ;;  %v4216_v10 = vld [vmem:[#allocation2] sm:$0xff] }
 0x966   : > { %v2164_v52 = vpop.xlane.xlu0 %2163 }
 0x967   : > { %v2172_v57 = vsub.f32 %v2148_v20, %v2164_v52 }
 0x969   : > { %v2177_v2 = vmul.f32 1.442695, %v2172_v57 }
 0x96a   : > { %v2161_v53 = vpop.xlane.xlu1 %2160  ;;  %v2167_v55 = vpop.xlane.xlu0 %2166 }
 0x96b   : > { %v2171_v54 = vsub.f32 %v2145_v21, %v2161_v53  ;;  %v2173_v56 = vsub.f32 %v2153_v25, %v2167_v55 }
 0x96d   : > { %v2175_v59 = vmul.f32 1.442695, %v2171_v54  ;;  %v2179_v61 = vmul.f32 1.442695, %v2173_v56  ;;  %v1830_v54 = vadd.f32 %v1829_v14, %v4933_v41  ;;  %v3609_v41 = vld [vmem:[%s935_s24] ss:$0 sm:$0xff] }
 0x96e   : > { %v2170_v62 = vpop.xlane.xlu1 %2169 }
 0x96f   : > { %v2174_v1 = vsub.f32 %v2156_v27, %v2170_v62  ;;  %4167 = vpow2.f32 %v2179_v61 }
 0x970   : > { %4169 = vpow2.f32 %v2175_v59 }
 0x971   : > { %v2181_v43 = vmul.f32 1.442695, %v2174_v1 }
 0x973   : > { %4171 = vpow2.f32 %v2181_v43 }
 0x974   : > { %4173 = vpow2.f32 %v2177_v2 }
 0x97c   : > { %v4168_v3 = vpop.eup %4167 }
 0x97d   : > { %v2189_v5 = vsel %vm1356_vm0, %v4168_v3, 0.0  ;;  %v4170_v32 = vpop.eup %4169 }
 0x97e   : > { %2190 = vadd.xlane.f32.xlu0 %v2189_v5  ;;  %v2183_v7 = vsel %vm1356_vm0, %v4170_v32, 0.0 }
 0x980   : > { %v4172_v44 = vpop.eup %4171 }
 0x981   : > { %v2192_v6 = vsel %vm1356_vm0, %v4172_v44, 0.0  ;;  %v4174_v49 = vpop.eup %4173 }
 0x982   : > { %2193 = vadd.xlane.f32.xlu1 %v2192_v6  ;;  %2184 = vadd.xlane.f32.xlu0 %v2183_v7  ;;  %v2186_v8 = vsel %vm1356_vm0, %v4174_v49, 0.0  ;;  %v4215_v6 = vld [vmem:[#allocation2 + $0x10] sm:$0xff] }
 0x986   : > { %2187 = vadd.xlane.f32.xlu1 %v2186_v8 }
 0x997   : > { %2205 = vrot.lane.b32.xlu1 %v4852_v48, %s4379_s19 }
 0x998   : > { %2207 = vrot.lane.b32.xlu0 %v4844_v18, %s4379_s19 }
 0xa07   : > { %v2191_v15 = vpop.xlane.xlu0 %2190 }
 0xa09   : > { %v3864_v16 = vpop.f32.mrf.mxu1 }
 0xa0b   : > { %v2194_v17 = vpop.xlane.xlu1 %2193  ;;  %v2002_v19 = vpop.f32.mrf.mxu1 }
 0xa0c   : > { %v2185_v20 = vpop.xlane.xlu0 %2184  ;;  %4175 = vrcp.f32 %v2194_v17 }
 0xa0d   : > { %v3865_v21 = vpop.f32.mrf.mxu1  ;;  %4177 = vrcp.f32 %v2185_v20 }
 0xa0e   : > { %4179 = vrcp.f32 %v2191_v15  ;;  %v2018_v28 = vpack.c.bf16 %v3865_v21, %v3864_v16  ;;  %v4217_v16 = vld [vmem:[#allocation2 + $0x8] sm:$0xff] }
 0xa0f   : > { %v2005_v25 = vpop.f32.mrf.mxu1  ;;  %v2188_v26 = vpop.xlane.xlu1 %2187 }
 0xa10   : > { %v2017_v27 = vpack.c.bf16 %v2005_v25, %v2002_v19  ;;  %4181 = vrcp.f32 %v2188_v26  ;;  %v2208_v48 = vpop.permute.xlu0 %2207  ;;  %v4218_v19 = vld [vmem:[#allocation2 + $0x18] sm:$0xff] }
 0xa11   : > { %3882 = vmatprep.subr.bf16.mxu1 %v2208_v48  ;;  %v4081_v26 = vld [vmem:[%s4654_s23 + $0x74] ss:$8 sps:$4 sm:$0xff]  }
 0xa12   : > { %3870 = vmatprep.mubr.msk.bf16.mxu1 %vm1356_vm0, %v2017_v27  ;;  %v4079_v27 = vld [vmem:[%s4654_s23 + $0x70] ss:$8 sps:$4 sm:$0xff]   ;;  %2543 = vmatprep.subr.bf16.mxu0 %v4081_v26  ;;  %v3611_v26 = vld [vmem:[%s941_s28] ss:$0 sm:$0xff]  ;;  %s5363_s28 = sld [smem:[#allocation28_spill]] (!%p3647_p10) }
 0xa13   : > { %3871 = vmatmul.mubr.msk.bf16.vlgmr.msra.gmra.mxu1 %vm1356_vm0, %v2018_v28  ;;  %v2206_v18 = vpop.permute.xlu1 %2205  ;;  %2544 = vmatpush1.bf16.msra.mxu0 %v4079_v27  ;;  %v4082_v28 = vld [vmem:[%s4654_s23 + $0x60] ss:$8 sps:$4 sm:$0xff]  }
 0xa14   : > { %3883 = vmatpush3.bf16.msra.mxu1 %v2208_v48  ;;  %v4084_v48 = vld [vmem:[%s4654_s23 + $0x64] ss:$8 sps:$4 sm:$0xff]  }
 0xa15   : > { %3884 = vmatprep.subr.bf16.mxu1 %v2206_v18  ;;  %2545 = vmatprep.subr.bf16.mxu0 %v4084_v48 }
 0xa17   : > { %2546 = vmatpush1.bf16.msra.mxu0 %v4082_v28 }
 0xa18   : > { %3885 = vmatpush3.bf16.msra.mxu1 %v2206_v18  ;;  %v4087_v18 = vld [vmem:[%s4654_s23 + $0x54] ss:$8 sps:$4 sm:$0xff]  }
 0xa19   : > { %v4176_v24 = vpop.eup %4175  ;;  %3890 = vmatprep.subr.bf16.mxu1 %v4077_v36  ;;  %2547 = vmatprep.subr.bf16.mxu0 %v4087_v18 }
 0xa1a   : > { %v4178_v29 = vpop.eup %4177  ;;  %v2202_v31 = vmul.f32 %v4176_v24, %v4172_v44  ;;  %v4085_v24 = vld [vmem:[%s4654_s23 + $0x50] ss:$8 sps:$4 sm:$0xff]  }
 0xa1b   : > { %v4180_v30 = vpop.eup %4179  ;;  %v2199_v58 = vmul.f32 %v4178_v29, %v4170_v32  ;;  %2548 = vmatpush1.bf16.msra.mxu0 %v4085_v24  ;;  %v4090_v29 = vld [vmem:[%s4654_s23 + $0x44] ss:$8 sps:$4 sm:$0xff]  }
 0xa1c   : > { %v2201_v63 = vmul.f32 %v4180_v30, %v4168_v3  ;;  %v4088_v30 = vld [vmem:[%s4654_s23 + $0x40] ss:$8 sps:$4 sm:$0xff]   ;;  %2549 = vmatprep.subr.bf16.mxu0 %v4090_v29 }
 0xa1d   : > { %v4182_v4 = vpop.eup %4181 }
 0xa1e   : > { %v2200_v60 = vmul.f32 %v4182_v4, %v4174_v49  ;;  %v2204_v35 = vpack.c.bf16 %v2202_v31, %v2201_v63  ;;  %v4093_v4 = vld [vmem:[%s4654_s23 + $0x34] ss:$8 sps:$4 sm:$0xff]   ;;  %v4091_v31 = vld [vmem:[%s4654_s23 + $0x30] ss:$8 sps:$4 sm:$0xff]  }
 0xa1f   : > { %2550 = vmatpush1.bf16.msra.mxu0 %v4088_v30  ;;  %v4099_v63 = vld [vmem:[%s4654_s23 + $0x14] ss:$8 sps:$4 sm:$0xff]  }
 0xa20   : > { %v2203_v33 = vpack.c.bf16 %v2200_v60, %v2199_v58  ;;  %2551 = vmatprep.subr.bf16.mxu0 %v4093_v4  ;;  %v4094_v58 = vld [vmem:[%s4654_s23 + $0x20] ss:$8 sps:$4 sm:$0xff]   ;;  %v4096_v60 = vld [vmem:[%s4654_s23 + $0x24] ss:$8 sps:$4 sm:$0xff]  }
 0xa22   : > { %3886 = vmatprep.mubr.msk.bf16.mxu1 %vm1356_vm0, %v2203_v33  ;;  %v4097_v33 = vld [vmem:[%s4654_s23 + $0x10] ss:$8 sps:$4 sm:$0xff]  }
 0xa23   : > { %3887 = vmatmul.mubr.msk.bf16.vlgmr.msra.gmra.mxu1 %vm1356_vm0, %v2204_v35  ;;  %2552 = vmatpush1.bf16.msra.mxu0 %v4091_v31  ;;  %v4102_v35 = vld [vmem:[%s4654_s23 + $0x4] ss:$8 sps:$4 sm:$0xff]  }
 0xa24   : > { %3891 = vmatpush3.bf16.msra.mxu1 %v4077_v36  ;;  %2553 = vmatprep.subr.bf16.mxu0 %v4096_v60  ;;  %v4100_v36 = vld [vmem:[%s4654_s23] ss:$8 sps:$4 sm:$0xff]  }
 0xa25   : > { %3892 = vmatprep.subr.bf16.mxu1 %v4078_v37 }
 0xa27   : > { %2554 = vmatpush1.bf16.msra.mxu0 %v4094_v58 }
 0xa28   : > { %3893 = vmatpush3.bf16.msra.mxu1 %v4078_v37  ;;  %2555 = vmatprep.subr.bf16.mxu0 %v4099_v63  ;;  %v4103_v63 = vld [vmem:[%s4661_s1 + $0x78] sm:$0xff]  }
 0xa29   : > { %3724 = vmatprep.subr.bf16.mxu1 %v4103_v63 }
 0xa2b   : > { %2556 = vmatpush1.bf16.msra.mxu0 %v4097_v33  ;;  %v4104_v33 = vld [vmem:[%s4661_s1 + $0x38] sm:$0xff]  }
 0xa2c   : > { %2557 = vmatprep.subr.bf16.mxu0 %v4102_v35  ;;  %v4105_v35 = vld [vmem:[%s4661_s1 + $0x70] sm:$0xff]  }
 0xa2f   : > { %2558 = vmatpush1.bf16.msra.mxu0 %v4100_v36  ;;  %v4107_v36 = vld [vmem:[%s4661_s1 + $0x68] sm:$0xff]  }
 0xad3   : > { %v3872_v45 = vpop.f32.mrf.mxu1 }
 0xad4   : > { %v2088_v47 = vadd.f32 %v3872_v45, %v1835_v42 }
 0xad5   : > { %v2071_v50 = vpop.f32.mrf.mxu1 }
 0xad6   : > { %v2086_v52 = vadd.f32 %v2071_v50, %v1827_v46 }
 0xad7   : > { %v3873_v53 = vpop.f32.mrf.mxu1 }
 0xad8   : > { %v2089_v55 = vadd.f32 %v3873_v53, %v1838_v51 }
 0xad9   : > { %v2074_v56 = vpop.f32.mrf.mxu1 }
 0xada   : > { %v2087_v57 = vadd.f32 %v2074_v56, %v1830_v54 }
 0xae3   : > { %v3888_v59 = vpop.f32.mrf.mxu1 }
 0xae5   : > { %v2251_v61 = vpop.f32.mrf.mxu1 }
 0xae7   : > { %v3889_v62 = vpop.f32.mrf.mxu1 }
 0xae8   : > { %v2267_v2 = vpack.c.bf16 %v3889_v62, %v3888_v59 }
 0xae9   : > { %v2254_v1 = vpop.f32.mrf.mxu1 }
 0xaea   : > { %v2266_v38 = vpack.c.bf16 %v2254_v1, %v2251_v61 }
 0xaec   : > { %3894 = vmatprep.mubr.msk.bf16.mxu1 %vm1356_vm0, %v2266_v38 }
 0xaed   : > { %3895 = vmatmul.mubr.msk.bf16.vlgmr.msra.gmra.mxu1 %vm1356_vm0, %v2267_v2 }
 0xaee   : > { %3725 = vmatpush3.bf16.msra.mxu1 %v4104_v33 }
 0xaef   : > { %3726 = vmatprep.subr.bf16.mxu1 %v4105_v35 }
 0xbad   : > { %v3896_v39 = vpop.f32.mrf.mxu1 }
 0xbae   : > { %v2337_v9 = vadd.f32 %v3896_v39, %v2088_v47 }
 0xbaf   : > { %v2320_v40 = vpop.f32.mrf.mxu1 }
 0xbb0   : > { %v2335_v43 = vadd.f32 %v2320_v40, %v2086_v52  ;;  %v2348_v14 = vadd.f32 %v3609_v41, %v2337_v9 }
 0xbb1   : > { %v3897_v3 = vpop.f32.mrf.mxu1 }
 0xbb2   : > { %v2346_v5 = vadd.f32 %v3609_v41, %v2335_v43  ;;  %v2338_v7 = vadd.f32 %v3897_v3, %v2089_v55  ;;  %v5001_v20 = vadd.f32 %v4218_v19, %v2348_v14  ;;  %v3610_v14 = vld [vmem:[%s938_s4] ss:$0 sm:$0xff]  ;;  %s5361_s4 = sld [smem:[#allocation27_spill]] (!%p3647_p10) }
 0xbb3   : > { %v2323_v32 = vpop.f32.mrf.mxu1 }
 0xbb4   : > { %v2336_v44 = vadd.f32 %v2323_v32, %v2087_v57  ;;  %v4988_v49 = vadd.f32 %v4215_v6, %v2346_v5  ;;  %v2349_v12 = vadd.f32 %v3609_v41, %v2338_v7  ;;  %v2371_v25 = vmul.f32 %v5001_v20, %v5001_v20 }
 0xbb6   : > { %v2347_v8 = vadd.f32 %v3609_v41, %v2336_v44  ;;  %2356 = vadd.xlane.f32.xlu1 %v4988_v49  ;;  %v2369_v15 = vmul.f32 %v4988_v49, %v4988_v49  ;;  %v4998_v17 = vadd.f32 %v4217_v16, %v2349_v12 }
 0xbb8   : > { %v4991_v11 = vadd.f32 %v4216_v10, %v2347_v8  ;;  %v2372_v21 = vmul.f32 %v4998_v17, %v4998_v17 }
 0xbba   : > { %2358 = vadd.xlane.f32.xlu0 %v4991_v11  ;;  %v2370_v13 = vmul.f32 %v4991_v11, %v4991_v11 }
 0xbbc   : > { %2375 = vadd.xlane.f32.xlu1 %v2370_v13 }
 0xbbe   : > { %2373 = vadd.xlane.f32.xlu0 %v2369_v15 }
 0xbc0   : > { %2362 = vadd.xlane.f32.xlu1 %v4998_v17 }
 0xbc2   : > { %2360 = vadd.xlane.f32.xlu0 %v5001_v20 }
 0xbc4   : > { %2379 = vadd.xlane.f32.xlu1 %v2372_v21 }
 0xbc6   : > { %2377 = vadd.xlane.f32.xlu0 %v2371_v25 }
 0xc3f   : > { %v2357_v37 = vpop.xlane.xlu1 %2356 }
 0xc40   : > { %v2365_v45 = vmul.f32 0.0078125, %v2357_v37  ;;  %v4108_v37 = vld [vmem:[%s4661_s1 + $0x28] sm:$0xff]  }
 0xc42   : > { %v2385_v53 = vmul.f32 %v2365_v45, %v2365_v45  ;;  %v2397_v15 = vsub.f32 %v4988_v49, %v2365_v45  ;;  %v4110_v45 = vld [vmem:[%s4661_s1 + $0x20] sm:$0xff]  }
 0xc43   : > { %v2359_v42 = vpop.xlane.xlu0 %2358 }
 0xc44   : > { %v2366_v46 = vmul.f32 0.0078125, %v2359_v42  ;;  %v4109_v42 = vld [vmem:[%s4661_s1 + $0x60] sm:$0xff]  }
 0xc45   : > { %v2376_v47 = vpop.xlane.xlu1 %2375 }
 0xc46   : > { %v2386_v50 = vmul.f32 %v2366_v46, %v2366_v46  ;;  %v2382_v51 = vmul.f32 0.0078125, %v2376_v47  ;;  %v2398_v12 = vsub.f32 %v4991_v11, %v2366_v46  ;;  %v4111_v46 = vld [vmem:[%s4661_s1 + $0x58] sm:$0xff]  }
 0xc47   : > { %v2374_v52 = vpop.xlane.xlu0 %2373  ;;  %v4112_v47 = vld [vmem:[%s4661_s1 + $0x18] sm:$0xff]  }
 0xc48   : > { %v2390_v54 = vsub.f32 %v2382_v51, %v2386_v50  ;;  %v2381_v55 = vmul.f32 0.0078125, %v2374_v52  ;;  %v4113_v50 = vld [vmem:[%s4661_s1 + $0x50] sm:$0xff]   ;;  %v4115_v52 = vld [vmem:[%s4661_s1 + $0x48] sm:$0xff]  }
 0xc49   : > { %v2363_v56 = vpop.xlane.xlu1 %2362  ;;  %v4114_v51 = vld [vmem:[%s4661_s1 + $0x10] sm:$0xff]  }
 0xc4a   : > { %v2394_v57 = vmax.f32 %v2390_v54, 0.0  ;;  %v2389_v59 = vsub.f32 %v2381_v55, %v2385_v53  ;;  %v2368_v61 = vmul.f32 0.0078125, %v2363_v56  ;;  %v4116_v53 = vld [vmem:[%s4661_s1 + $0x8] sm:$0xff]   ;;  %v4117_v54 = vld [vmem:[%s4661_s1 + $0x40] sm:$0xff]  }
 0xc4b   : > { %v2361_v62 = vpop.xlane.xlu0 %2360  ;;  %v4118_v55 = vld [vmem:[%s4661_s1] sm:$0xff]  }
 0xc4c   : > { %v2402_v1 = vadd.f32 1e-12, %v2394_v57  ;;  %v2393_v38 = vmax.f32 %v2389_v59, 0.0  ;;  %v2367_v2 = vmul.f32 0.0078125, %v2361_v62  ;;  %v2388_v43 = vmul.f32 %v2368_v61, %v2368_v61  ;;  %v2451_v56 = vld [vmem:[%s4709_s10] sm:$0x3] }
 0xc4d   : > { %v2380_v39 = vpop.xlane.xlu1 %2379  ;;  %v2400_v11 = vsub.f32 %v4998_v17, %v2368_v61  ;;  %v2456_v57 = vrot.slane %v2451_v56, %v1093_v23  ;;  %v2460_v59 = vrot.slane %v2451_v56, %v1097_v34 }
 0xc4e   : > { %4183 = vrsqrt.f32 %v2402_v1  ;;  %v2401_v40 = vadd.f32 1e-12, %v2393_v38  ;;  %v2384_v41 = vmul.f32 0.0078125, %v2380_v39  ;;  %v2387_v5 = vmul.f32 %v2367_v2, %v2367_v2 }
 0xc4f   : > { %v2378_v3 = vpop.xlane.xlu0 %2377  ;;  %v2399_v49 = vsub.f32 %v5001_v20, %v2367_v2 }
 0xc50   : > { %4185 = vrsqrt.f32 %v2401_v40  ;;  %v2392_v32 = vsub.f32 %v2384_v41, %v2388_v43  ;;  %v2383_v44 = vmul.f32 0.0078125, %v2378_v3 }
 0xc52   : > { %v2396_v6 = vmax.f32 %v2392_v32, 0.0  ;;  %v2391_v7 = vsub.f32 %v2383_v44, %v2387_v5 }
 0xc54   : > { %v2404_v8 = vadd.f32 1e-12, %v2396_v6  ;;  %v2395_v9 = vmax.f32 %v2391_v7, 0.0 }
 0xc56   : > { %4187 = vrsqrt.f32 %v2404_v8  ;;  %v2403_v10 = vadd.f32 1e-12, %v2395_v9 }
 0xc58   : > { %4189 = vrsqrt.f32 %v2403_v10 }
 0xc5b   : > { %v4184_v13 = vpop.eup %4183 }
 0xc5c   : > { %v2410_v16 = vmul.f32 %v4184_v13, %v2398_v12 }
 0xc5d   : > { %v4186_v19 = vpop.eup %4185 }
 0xc5e   : > { %v2409_v21 = vmul.f32 %v4186_v19, %v2397_v15  ;;  %v2420_v25 = vmul.f32 %v3610_v14, %v2410_v16 }
 0xc60   : > { %v2419_v27 = vmul.f32 %v3610_v14, %v2409_v21  ;;  %v5039_v28 = vadd.f32 %v3611_v26, %v2420_v25 }
 0xc62   : > { %v5037_v48 = vadd.f32 %v3611_v26, %v2419_v27 }
 0xc63   : > { %v4188_v18 = vpop.eup %4187 }
 0xc64   : > { %v2449_v24 = vpack.c.bf16 %v5039_v28, %v5037_v48  ;;  %v2412_v29 = vmul.f32 %v4188_v18, %v2400_v11 }
 0xc65   : > { %v4190_v30 = vpop.eup %4189 }
 0xc66   : > { %2576 = vmatmul.mubr.bf16.vlgmr.msra.gmra.mxu0 %v2449_v24  ;;  %v2411_v4 = vmul.f32 %v4190_v30, %v2399_v49  ;;  %v2422_v17 = vmul.f32 %v3610_v14, %v2412_v29 }
 0xc67   : > { %2585 = vmatprep.mubr.bf16.mxu0 %v4376_v0  ;;  %v4106_v0 = vld [vmem:[%s4661_s1 + $0x30] sm:$0xff]  }
 0xc68   : > { %v2421_v31 = vmul.f32 %v3610_v14, %v2411_v4  ;;  %v5047_v60 = vadd.f32 %v3611_v26, %v2422_v17  ;;  %3727 = vmatpush3.bf16.msra.mxu1 %v4106_v0 }
 0xc69   : > { %3728 = vmatprep.subr.bf16.mxu1 %v4107_v36 }
 0xc6a   : > { %v5045_v58 = vadd.f32 %v3611_v26, %v2421_v31 }
 0xc6c   : > { %v2450_v20 = vpack.c.bf16 %v5047_v60, %v5045_v58  ;;  %3729 = vmatpush3.bf16.msra.mxu1 %v4108_v37 }
 0xc6d   : > { %3730 = vmatprep.subr.bf16.mxu1 %v4109_v42 }
 0xc6e   : > { %2586 = vmatmul.mubr.bf16.gmra.mxu0 %v2450_v20 }
 0xc70   : > { %3731 = vmatpush3.bf16.msra.mxu1 %v4110_v45 }
 0xc71   : > { %3732 = vmatprep.subr.bf16.mxu1 %v4111_v46 }
 0xc74   : > { %3733 = vmatpush3.bf16.msra.mxu1 %v4112_v47 }
 0xc75   : > { %3734 = vmatprep.subr.bf16.mxu1 %v4113_v50 }
 0xc78   : > { %3735 = vmatpush3.bf16.msra.mxu1 %v4114_v51 }
 0xc79   : > { %3736 = vmatprep.subr.bf16.mxu1 %v4115_v52 }
 0xc7c   : > { %3737 = vmatpush3.bf16.msra.mxu1 %v4116_v53 }
 0xc7d   : > { %3738 = vmatprep.subr.bf16.mxu1 %v4117_v54 }
 0xc80   : > { %3739 = vmatpush3.bf16.msra.mxu1 %v4118_v55 }
 0xd26   : > { %v2577_v61 = vpop.f32.mrf.mxu0 }
 0xd27   : > { %v5072_v62 = vadd.f32 %v2577_v61, %v2456_v57 }
 0xd28   : > { %v2579_v1 = vpop.f32.mrf.mxu0 }
 0xd29   : > { %v2604_v38 = vmul.f32 0.044715, %v5072_v62  ;;  %v5075_v2 = vadd.f32 %v2579_v1, %v2460_v59 }
 0xd2a   : > { %v2581_v39 = vpop.f32.mrf.mxu0 }
 0xd2b   : > { %v2612_v40 = vmul.f32 %v2604_v38, %v5072_v62  ;;  %v2605_v43 = vmul.f32 0.044715, %v5075_v2  ;;  %v2582_v41 = vadd.f32 %v2581_v39, %v2456_v57 }
 0xd2c   : > { %v2583_v3 = vpop.f32.mrf.mxu0 }
 0xd2d   : > { %v2620_v23 = vmul.f32 %v2612_v40, %v5072_v62  ;;  %v2613_v22 = vmul.f32 %v2605_v43, %v5075_v2  ;;  %v2606_v34 = vmul.f32 0.044715, %v2582_v41  ;;  %v2584_v5 = vadd.f32 %v2583_v3, %v2460_v59 }
 0xd2e   : > { %v2587_v32 = vpop.f32.mrf.mxu0  ;;  %v2598_v38 = vmul.f32 0.5, %v2582_v41  ;;  %v2597_v40 = vmul.f32 0.5, %v5075_v2 }
 0xd2f   : > { %v2628_v44 = vadd.f32 %v2620_v23, %v5072_v62  ;;  %v2621_v6 = vmul.f32 %v2613_v22, %v5075_v2  ;;  %v2614_v7 = vmul.f32 %v2606_v34, %v2582_v41  ;;  %v2607_v8 = vmul.f32 0.044715, %v2584_v5 }
 0xd30   : > { %v5083_v9 = vadd.f32 %v2587_v32, %v2456_v57  ;;  %v2589_v10 = vpop.f32.mrf.mxu0  ;;  %v2599_v43 = vmul.f32 0.5, %v2584_v5  ;;  %v2596_v23 = vmul.f32 0.5, %v5072_v62 }
 0xd31   : > { %v2636_v12 = vmul.f32 0.7978846, %v2628_v44  ;;  %v2622_v13 = vmul.f32 %v2614_v7, %v2582_v41  ;;  %v2615_v14 = vmul.f32 %v2607_v8, %v2584_v5  ;;  %v5085_v15 = vadd.f32 %v2589_v10, %v2460_v59 }
 0xd32   : > { %v2608_v16 = vmul.f32 0.044715, %v5083_v9  ;;  %v2591_v19 = vpop.f32.mrf.mxu0  ;;  %v2629_v21 = vadd.f32 %v2621_v6, %v5075_v2 }
 0xd33   : > { %v2630_v25 = vadd.f32 %v2622_v13, %v2582_v41  ;;  %v2623_v26 = vmul.f32 %v2615_v14, %v2584_v5  ;;  %v2609_v27 = vmul.f32 0.044715, %v5085_v15  ;;  %4191 = vtanh.f32 %v2636_v12 }
 0xd34   : > { %v2616_v11 = vmul.f32 %v2608_v16, %v5083_v9  ;;  %v2592_v18 = vadd.f32 %v2591_v19, %v2456_v57  ;;  %v2593_v49 = vpop.f32.mrf.mxu0  ;;  %v2637_v24 = vmul.f32 0.7978846, %v2629_v21  ;;  %v2600_v21 = vmul.f32 0.5, %v5083_v9 }
 0xd35   : > { %v2638_v29 = vmul.f32 0.7978846, %v2630_v25  ;;  %v2617_v30 = vmul.f32 %v2609_v27, %v5085_v15  ;;  %v2594_v4 = vadd.f32 %v2593_v49, %v2460_v59  ;;  %v2631_v17 = vadd.f32 %v2623_v26, %v2584_v5 }
 0xd36   : > { %v2624_v31 = vmul.f32 %v2616_v11, %v5083_v9  ;;  %v2610_v20 = vmul.f32 0.044715, %v2592_v18  ;;  %4193 = vtanh.f32 %v2637_v24  ;;  %v2602_v41 = vmul.f32 0.5, %v2592_v18 }
 0xd37   : > { %4195 = vtanh.f32 %v2638_v29  ;;  %v2625_v63 = vmul.f32 %v2617_v30, %v5085_v15  ;;  %v2611_v33 = vmul.f32 0.044715, %v2594_v4  ;;  %v2639_v35 = vmul.f32 0.7978846, %v2631_v17 }
 0xd38   : > { %v2618_v0 = vmul.f32 %v2610_v20, %v2592_v18  ;;  %v2632_v36 = vadd.f32 %v2624_v31, %v5083_v9  ;;  %v2601_v5 = vmul.f32 0.5, %v5085_v15  ;;  %v2603_v62 = vmul.f32 0.5, %v2594_v4 }
 0xd39   : > { %v2619_v37 = vmul.f32 %v2611_v33, %v2594_v4  ;;  %4197 = vtanh.f32 %v2639_v35  ;;  %v2633_v42 = vadd.f32 %v2625_v63, %v5085_v15  ;;  %v3644_v15 = vld [vmem:[%s948_s12] ss:$0 sm:$0xff]  ;;  %s5362_s12 = sld [smem:[#allocation32_spill]] (!%p3647_p10) }
 0xd3a   : > { %v2626_v45 = vmul.f32 %v2618_v0, %v2592_v18  ;;  %v2640_v46 = vmul.f32 0.7978846, %v2632_v36 }
 0xd3b   : > { %v2627_v47 = vmul.f32 %v2619_v37, %v2594_v4  ;;  %v2641_v50 = vmul.f32 0.7978846, %v2633_v42 }
 0xd3c   : > { %v2634_v51 = vadd.f32 %v2626_v45, %v2592_v18 }
 0xd3d   : > { %v2635_v52 = vadd.f32 %v2627_v47, %v2594_v4  ;;  %4199 = vtanh.f32 %v2641_v50 }
 0xd3e   : > { %v2642_v53 = vmul.f32 0.7978846, %v2634_v51  ;;  %4201 = vtanh.f32 %v2640_v46 }
 0xd3f   : > { %v2643_v54 = vmul.f32 0.7978846, %v2635_v52 }
 0xd40   : > { %4203 = vtanh.f32 %v2642_v53  ;;  %v4192_v55 = vpop.eup %4191 }
 0xd41   : > { %4205 = vtanh.f32 %v2643_v54  ;;  %v2652_v39 = vadd.f32 1.0, %v4192_v55 }
 0xd43   : > { %v4194_v56 = vpop.eup %4193  ;;  %v2660_v6 = vmul.f32 %v2652_v39, %v2596_v23 }
 0xd44   : > { %v4196_v57 = vpop.eup %4195  ;;  %v2653_v59 = vadd.f32 1.0, %v4194_v56 }
 0xd45   : > { %v2654_v61 = vadd.f32 1.0, %v4196_v57 }
 0xd46   : > { %v4198_v1 = vpop.eup %4197  ;;  %v2661_v34 = vmul.f32 %v2653_v59, %v2597_v40 }
 0xd47   : > { %v2655_v3 = vadd.f32 1.0, %v4198_v1  ;;  %v2662_v22 = vmul.f32 %v2654_v61, %v2598_v38 }
 0xd49   : > { %v2663_v32 = vmul.f32 %v2655_v3, %v2599_v43  ;;  %v2700_v10 = vpack.c.bf16 %v2662_v22, %v2660_v6 }
 0xd4a   : > { %v4200_v44 = vpop.eup %4199 }
 0xd4b   : > { %v4202_v7 = vpop.eup %4201  ;;  %v2701_v8 = vpack.c.bf16 %v2663_v32, %v2661_v34  ;;  %v2657_v13 = vadd.f32 1.0, %v4200_v44 }
 0xd4c   : > { %v2656_v16 = vadd.f32 1.0, %v4202_v7 }
 0xd4d   : > { %v4204_v12 = vpop.eup %4203  ;;  %2832 = vmatprep.mubr.bf16.mxu1 %v2701_v8  ;;  %v2665_v26 = vmul.f32 %v2657_v13, %v2601_v5 }
 0xd4e   : > { %v4206_v14 = vpop.eup %4205  ;;  %2833 = vmatmul.mubr.bf16.vlgmr.msra.gmra.mxu1 %v2700_v10  ;;  %v2658_v2 = vadd.f32 1.0, %v4204_v12  ;;  %v2664_v11 = vmul.f32 %v2656_v16, %v2600_v21 }
 0xd4f   : > { %v2659_v19 = vadd.f32 1.0, %v4206_v14 }
 0xd50   : > { %v2666_v25 = vmul.f32 %v2658_v2, %v2602_v41 }
 0xd51   : > { %v2667_v27 = vmul.f32 %v2659_v19, %v2603_v62 }
 0xd52   : > { %v2702_v24 = vpack.c.bf16 %v2666_v25, %v2664_v11  ;;  %v3646_v11 = vld [vmem:[%s954_s22] ss:$0 sm:$0xff]  ;;  %s5360_s22 = sld [smem:[#allocation26_spill]] (!%p3647_p10) }
 0xd53   : > { %v2703_v49 = vpack.c.bf16 %v2667_v27, %v2665_v26  ;;  %v3645_v26 = vld [vmem:[%s951_s21] ss:$0 sm:$0xff] }
 0xd55   : > { %2840 = vmatprep.mubr.bf16.mxu1 %v2703_v49 }
 0xd56   : > { %2841 = vmatmul.mubr.bf16.gmra.mxu1 %v2702_v24 }
 0xe0e   : > { %v3740_v29 = vpop.f32.mrf.mxu1 }
 0xe10   : > { %v3741_v30 = vpop.f32.mrf.mxu1 }
 0xe11   : > { %v3742_v18 = vadd.f32 %v3741_v30, %v3740_v29 }
 0xe12   : > { %v3743_v17 = vpop.f32.mrf.mxu1 }
 0xe13   : > { %v2849_v4 = vadd.f32 %v3742_v18, %v5037_v48 }
 0xe14   : > { %v3744_v9 = vpop.f32.mrf.mxu1 }
 0xe15   : > { %v3745_v31 = vadd.f32 %v3744_v9, %v3743_v17  ;;  %v5106_v20 = vadd.f32 %v3644_v15, %v2849_v4 }
 0xe16   : > { %v3746_v63 = vpop.f32.mrf.mxu1 }
 0xe17   : > { %v2850_v33 = vadd.f32 %v3745_v31, %v5039_v28  ;;  %2866 = vadd.xlane.f32.xlu0 %v5106_v20  ;;  %v2878_v37 = vmul.f32 %v5106_v20, %v5106_v20 }
 0xe18   : > { %v3747_v35 = vpop.f32.mrf.mxu1 }
 0xe19   : > { %v3748_v0 = vadd.f32 %v3747_v35, %v3746_v63  ;;  %v5110_v36 = vadd.f32 %v3644_v15, %v2850_v33 }
 0xe1a   : > { %v3749_v42 = vpop.f32.mrf.mxu1 }
 0xe1b   : > { %v2851_v45 = vadd.f32 %v3748_v0, %v5045_v58  ;;  %2868 = vadd.xlane.f32.xlu1 %v5110_v36  ;;  %2882 = vadd.xlane.f32.xlu0 %v2878_v37  ;;  %v2879_v28 = vmul.f32 %v5110_v36, %v5110_v36 }
 0xe1c   : > { %v3750_v48 = vpop.f32.mrf.mxu1 }
 0xe1d   : > { %v3751_v46 = vadd.f32 %v3750_v48, %v3749_v42  ;;  %v2862_v47 = vadd.f32 %v3644_v15, %v2851_v45 }
 0xe1f   : > { %v2852_v50 = vadd.f32 %v3751_v46, %v5047_v60  ;;  %2884 = vadd.xlane.f32.xlu1 %v2879_v28  ;;  %2870 = vadd.xlane.f32.xlu0 %v2862_v47  ;;  %v2880_v52 = vmul.f32 %v2862_v47, %v2862_v47 }
 0xe21   : > { %v5119_v51 = vadd.f32 %v3644_v15, %v2852_v50 }
 0xe23   : > { %2872 = vadd.xlane.f32.xlu1 %v5119_v51  ;;  %2886 = vadd.xlane.f32.xlu0 %v2880_v52  ;;  %v2881_v58 = vmul.f32 %v5119_v51, %v5119_v51 }
 0xe27   : > { %2888 = vadd.xlane.f32.xlu1 %v2881_v58 }
 0xea0   : > { %v2867_v53 = vpop.xlane.xlu0 %2866 }
 0xea1   : > { %v2874_v54 = vmul.f32 0.0078125, %v2867_v53 }
 0xea3   : > { %v2894_v57 = vmul.f32 %v2874_v54, %v2874_v54  ;;  %v2906_v21 = vsub.f32 %v5106_v20, %v2874_v54 }
 0xea4   : > { %v2883_v55 = vpop.xlane.xlu0 %2882  ;;  %v2869_v56 = vpop.xlane.xlu1 %2868 }
 0xea5   : > { %v2890_v59 = vmul.f32 0.0078125, %v2883_v55  ;;  %v2875_v61 = vmul.f32 0.0078125, %v2869_v56 }
 0xea7   : > { %v2898_v60 = vsub.f32 %v2890_v59, %v2894_v57  ;;  %v2895_v40 = vmul.f32 %v2875_v61, %v2875_v61  ;;  %v2907_v24 = vsub.f32 %v5110_v36, %v2875_v61 }
 0xea8   : > { %v2871_v1 = vpop.xlane.xlu0 %2870  ;;  %v2885_v38 = vpop.xlane.xlu1 %2884 }
 0xea9   : > { %v2902_v39 = vmax.f32 %v2898_v60, 0.0  ;;  %v2876_v43 = vmul.f32 0.0078125, %v2871_v1  ;;  %v2891_v3 = vmul.f32 0.0078125, %v2885_v38 }
 0xeab   : > { %v2910_v23 = vadd.f32 1e-12, %v2902_v39  ;;  %v2899_v22 = vsub.f32 %v2891_v3, %v2895_v40  ;;  %v2896_v34 = vmul.f32 %v2876_v43, %v2876_v43  ;;  %v2908_v17 = vsub.f32 %v2862_v47, %v2876_v43 }
 0xeac   : > { %v2887_v32 = vpop.xlane.xlu0 %2886  ;;  %v2873_v44 = vpop.xlane.xlu1 %2872 }
 0xead   : > { %4207 = vrsqrt.f32 %v2910_v23  ;;  %v2903_v6 = vmax.f32 %v2899_v22, 0.0  ;;  %v2892_v7 = vmul.f32 0.0078125, %v2887_v32  ;;  %v2877_v8 = vmul.f32 0.0078125, %v2873_v44 }
 0xeaf   : > { %v2911_v10 = vadd.f32 1e-12, %v2903_v6  ;;  %v2900_v12 = vsub.f32 %v2892_v7, %v2896_v34  ;;  %v2897_v41 = vmul.f32 %v2877_v8, %v2877_v8  ;;  %v2909_v63 = vsub.f32 %v5119_v51, %v2877_v8 }
 0xeb0   : > { %v2889_v13 = vpop.xlane.xlu1 %2888 }
 0xeb1   : > { %4209 = vrsqrt.f32 %v2911_v10  ;;  %v2904_v14 = vmax.f32 %v2900_v12, 0.0  ;;  %v2893_v16 = vmul.f32 0.0078125, %v2889_v13 }
 0xeb3   : > { %v2912_v2 = vadd.f32 1e-12, %v2904_v14  ;;  %v2901_v5 = vsub.f32 %v2893_v16, %v2897_v41 }
 0xeb5   : > { %4211 = vrsqrt.f32 %v2912_v2  ;;  %v2905_v62 = vmax.f32 %v2901_v5, 0.0 }
 0xeb7   : > { %v2913_v19 = vadd.f32 1e-12, %v2905_v62 }
 0xeb9   : > { %4213 = vrsqrt.f32 %v2913_v19 }
 0xeba   : > { %v4208_v25 = vpop.eup %4207 }
 0xebb   : > { %v2918_v27 = vmul.f32 %v4208_v25, %v2906_v21 }
 0xebd   : > { %v2928_v49 = vmul.f32 %v3645_v26, %v2918_v27 }
 0xebe   : > { %v4210_v29 = vpop.eup %4209 }
 0xebf   : > { %v2938_v30 = vadd.f32 %v3646_v11, %v2928_v49  ;;  %v2919_v18 = vmul.f32 %v4210_v29, %v2907_v24 }
 0xec1   : > { %2942 = vst [vmem:[#allocation2 + $0x10] sm:$0xff] %v2938_v30  ;;  %v2929_v15 = vmul.f32 %v3645_v26, %v2919_v18 }
 0xec2   : > { %v4212_v4 = vpop.eup %4211 }
 0xec3   : > { %v2939_v9 = vadd.f32 %v3646_v11, %v2929_v15  ;;  %v2920_v31 = vmul.f32 %v4212_v4, %v2908_v17 }
 0xec5   : > { %2943 = vst [vmem:[#allocation2] sm:$0xff] %v2939_v9  ;;  %v2930_v20 = vmul.f32 %v3645_v26, %v2920_v31 }
 0xec6   : > { %v4214_v33 = vpop.eup %4213 }
 0xec7   : > { %v2940_v35 = vadd.f32 %v3646_v11, %v2930_v20  ;;  %v2921_v0 = vmul.f32 %v4214_v33, %v2909_v63 }
 0xec9   : > { %2944 = vst [vmem:[#allocation2 + $0x18] sm:$0xff] %v2940_v35  ;;  %v2931_v37 = vmul.f32 %v3645_v26, %v2921_v0  ;;  %2949 = sbr.rel (%p3647_p10) target bundleno = 4636 (0x121c), region = 136 }
 0xecb   : > { %v2941_v42 = vadd.f32 %v3646_v11, %v2931_v37 }
 0xecd   : > { %2945 = vst [vmem:[#allocation2 + $0x8] sm:$0xff] %v2941_v42 }
 0xece   : > { %v4219_v36 = vld [vmem:[%s5360_s22 + $0x38] sm:$0xff]   ;;  %v2966_v45 = vpack.c.bf16 %v2939_v9, %v2938_v30  ;;  %v4220_v48 = vld [vmem:[%s5360_s22 + $0x30] sm:$0xff]   ;;  %v4221_v46 = vld [vmem:[%s5360_s22 + $0x28] sm:$0xff]   ;;  %v2967_v58 = vpack.c.bf16 %v2941_v42, %v2940_v35  ;;  %vm3354_vm1 = vcmask 15360  }
 0xecf   : > { %3898 = vmatprep.subr.bf16.mxu0 %v4219_v36  ;;  %v4222_v28 = vld [vmem:[%s5360_s22 + $0x20] sm:$0xff]   ;;  %v4223_v47 = vld [vmem:[%s5360_s22 + $0x18] sm:$0xff]   ;;  %v4224_v50 = vld [vmem:[%s5360_s22 + $0x10] sm:$0xff]  }
 0xed0   : > { %3914 = vmatprep.mubr.bf16.mxu0 %v2966_v45  ;;  %3899 = vmatpush3.bf16.msra.mxu0 %v4219_v36  ;;  %v4225_v51 = vld [vmem:[%s5360_s22 + $0x8] sm:$0xff]   ;;  %v4226_v52 = vld [vmem:[%s5360_s22] sm:$0xff]   ;;  %v3200_v33 = vld [vmem:[#allocation7 + $0x70] sm:$0xff] }
 0xed1   : > { %3900 = vmatprep.subr.bf16.mxu0 %v4220_v48  ;;  %v3648_v53 = vld [vmem:[%s5361_s4] ss:$0 sm:$0xff]  ;;  %v3201_v35 = vld [vmem:[#allocation7 + $0x78] sm:$0xff]  ;;  %v3199_v42 = vld [vmem:[#allocation7 + $0x68] sm:$0xff]  ;;  %s5366_s4 = sld [smem:[#allocation33_spill]] }
 0xed2   : > { %v3211_v0 = vpack.c.bf16 %v3201_v35, %v3200_v33  ;;  %v3198_v37 = vld [vmem:[#allocation7 + $0x60] sm:$0xff]  ;;  %v3196_v45 = vld [vmem:[#allocation7 + $0x50] sm:$0xff] }
 0xed3   : > { %v3210_v36 = vpack.c.bf16 %v3199_v42, %v3198_v37 }
 0xed4   : > { %3901 = vmatpush3.bf16.msra.mxu0 %v4220_v48  ;;  %3918 = vmatprep.subr.bf16.mxu1 %v3211_v0  ;;  %v3197_v48 = vld [vmem:[#allocation7 + $0x58] sm:$0xff] }
 0xed5   : > { %3902 = vmatprep.subr.bf16.mxu0 %v4221_v46  ;;  %3919 = vmatpush3.bf16.msra.mxu1 %v3211_v0 }
 0xed6   : > { %3920 = vmatprep.subr.bf16.mxu1 %v3210_v36 }
 0xed8   : > { %3903 = vmatpush3.bf16.msra.mxu0 %v4221_v46  ;;  %v3209_v46 = vpack.c.bf16 %v3197_v48, %v3196_v45 }
 0xed9   : > { %3904 = vmatprep.subr.bf16.mxu0 %v4222_v28  ;;  %3921 = vmatpush3.bf16.msra.mxu1 %v3210_v36 }
 0xeda   : > { %3922 = vmatprep.subr.bf16.mxu1 %v3209_v46 }
 0xedc   : > { %3905 = vmatpush3.bf16.msra.mxu0 %v4222_v28  ;;  %v3194_v28 = vld [vmem:[#allocation7 + $0x40] sm:$0xff] }
 0xedd   : > { %3906 = vmatprep.subr.bf16.mxu0 %v4223_v47  ;;  %3923 = vmatpush3.bf16.msra.mxu1 %v3209_v46 }
 0xee0   : > { %3907 = vmatpush3.bf16.msra.mxu0 %v4223_v47  ;;  %v3195_v47 = vld [vmem:[#allocation7 + $0x48] sm:$0xff] }
 0xee1   : > { %3908 = vmatprep.subr.bf16.mxu0 %v4224_v50 }
 0xee4   : > { %3909 = vmatpush3.bf16.msra.mxu0 %v4224_v50  ;;  %v3208_v50 = vpack.c.bf16 %v3195_v47, %v3194_v28 }
 0xee5   : > { %3910 = vmatprep.subr.bf16.mxu0 %v4225_v51 }
 0xee6   : > { %3924 = vmatprep.subr.bf16.mxu1 %v3208_v50 }
 0xee7   : > { %3925 = vmatpush3.bf16.msra.mxu1 %v3208_v50 }
 0xee8   : > { %3911 = vmatpush3.bf16.msra.mxu0 %v4225_v51  ;;  %v3192_v51 = vld [vmem:[#allocation7 + $0x30] sm:$0xff] }
 0xee9   : > { %3912 = vmatprep.subr.bf16.mxu0 %v4226_v52 }
 0xeec   : > { %3913 = vmatpush3.bf16.msra.mxu0 %v4226_v52  ;;  %v3193_v52 = vld [vmem:[#allocation7 + $0x38] sm:$0xff] }
 0xeef   : > { %3915 = vmatmul.mubr.bf16.vlgmr.msra.gmra.mxu0 %v2967_v58  ;;  %v3207_v58 = vpack.c.bf16 %v3193_v52, %v3192_v51 }
 0xef1   : > { %3926 = vmatprep.subr.bf16.mxu1 %v3207_v58 }
 0xef2   : > { %3927 = vmatpush3.bf16.msra.mxu1 %v3207_v58  ;;  %v3657_v58 = vld [vmem:[%s5363_s28] ss:$0 sm:$0xff] }
 0xfaf   : > { %v3916_v54 = vpop.f32.mrf.mxu0 }
 0xfb0   : > { %v3066_v55 = vadd.f32 %v3916_v54, %v3648_v53  ;;  %v3191_v54 = vld [vmem:[#allocation7 + $0x28] sm:$0xff] }
 0xfb1   : > { %v3057_v56 = vpop.f32.mrf.mxu0 }
 0xfb2   : > { %v3078_v57 = vmul.f32 0.044715, %v3066_v55  ;;  %v3058_v59 = vadd.f32 %v3648_v53, %v3057_v56  ;;  %v3074_v62 = vmul.f32 0.5, %v3066_v55  ;;  %v3188_v56 = vld [vmem:[#allocation7 + $0x10] sm:$0xff] }
 0xfb3   : > { %v3917_v61 = vpop.f32.mrf.mxu0 }
 0xfb4   : > { %v3082_v60 = vmul.f32 %v3078_v57, %v3066_v55  ;;  %v3076_v1 = vmul.f32 0.044715, %v3058_v59  ;;  %v3069_v38 = vadd.f32 %v3917_v61, %v3648_v53  ;;  %v3072_v26 = vmul.f32 0.5, %v3058_v59  ;;  %v3189_v57 = vld [vmem:[#allocation7 + $0x18] sm:$0xff] }
 0xfb5   : > { %v3060_v39 = vpop.f32.mrf.mxu0  ;;  %v3205_v61 = vpack.c.bf16 %v3189_v57, %v3188_v56 }
 0xfb6   : > { %v3080_v40 = vmul.f32 %v3076_v1, %v3058_v59  ;;  %v3079_v43 = vmul.f32 0.044715, %v3069_v38  ;;  %v3061_v3 = vadd.f32 %v3648_v53, %v3060_v39  ;;  %v3086_v23 = vmul.f32 %v3082_v60, %v3066_v55  ;;  %v3190_v53 = vld [vmem:[#allocation7 + $0x20] sm:$0xff]  ;;  %v3187_v60 = vld [vmem:[#allocation7 + $0x8] sm:$0xff]  ;;  %v3287_v39 = vld [vmem:[%s5362_s12 + $0x78] sm:$0xff] }
 0xfb7   : > { %v3075_v24 = vmul.f32 0.5, %v3069_v38 }
 0xfb8   : > { %v3083_v22 = vmul.f32 %v3079_v43, %v3069_v38  ;;  %v3077_v34 = vmul.f32 0.044715, %v3061_v3  ;;  %v3090_v32 = vadd.f32 %v3086_v23, %v3066_v55  ;;  %v3084_v44 = vmul.f32 %v3080_v40, %v3058_v59  ;;  %v3284_v40 = vld [vmem:[%s5362_s12 + $0x60] sm:$0xff] }
 0xfb9   : > { %v3073_v17 = vmul.f32 0.5, %v3061_v3  ;;  %v3206_v55 = vpack.c.bf16 %v3191_v54, %v3190_v53 }
 0xfba   : > { %v3081_v6 = vmul.f32 %v3077_v34, %v3061_v3  ;;  %v3094_v7 = vmul.f32 0.7978846, %v3090_v32  ;;  %v3088_v8 = vadd.f32 %v3084_v44, %v3058_v59  ;;  %v3087_v10 = vmul.f32 %v3083_v22, %v3069_v38  ;;  %v3186_v59 = vld [vmem:[#allocation7] sm:$0xff]  ;;  %v3282_v22 = vld [vmem:[%s5362_s12 + $0x50] sm:$0xff]  ;;  %v3283_v34 = vld [vmem:[%s5362_s12 + $0x58] sm:$0xff] }
 0xfbb   : > { %3928 = vmatprep.subr.bf16.mxu1 %v3206_v55  ;;  %v3204_v1 = vpack.c.bf16 %v3187_v60, %v3186_v59  ;;  %v3295_v32 = vpack.c.bf16 %v3283_v34, %v3282_v22  ;;  %v3280_v44 = vld [vmem:[%s5362_s12 + $0x40] sm:$0xff] }
 0xfbc   : > { %v3085_v12 = vmul.f32 %v3081_v6, %v3061_v3  ;;  %4227 = vtanh.f32 %v3094_v7  ;;  %v3092_v13 = vmul.f32 0.7978846, %v3088_v8  ;;  %v3091_v14 = vadd.f32 %v3087_v10, %v3069_v38  ;;  %3929 = vmatpush3.bf16.msra.mxu1 %v3206_v55  ;;  %v3286_v38 = vld [vmem:[%s5362_s12 + $0x70] sm:$0xff]  ;;  %v3281_v6 = vld [vmem:[%s5362_s12 + $0x48] sm:$0xff]  ;;  %v3279_v10 = vld [vmem:[%s5362_s12 + $0x38] sm:$0xff] }
 0xfbd   : > { %3930 = vmatprep.subr.bf16.mxu1 %v3205_v61  ;;  %v3297_v43 = vpack.c.bf16 %v3287_v39, %v3286_v38  ;;  %v3294_v7 = vpack.c.bf16 %v3281_v6, %v3280_v44  ;;  %v3278_v8 = vld [vmem:[%s5362_s12 + $0x30] sm:$0xff] }
 0xfbe   : > { %4229 = vtanh.f32 %v3092_v13  ;;  %v3095_v41 = vmul.f32 0.7978846, %v3091_v14  ;;  %v3089_v16 = vadd.f32 %v3085_v12, %v3061_v3  ;;  %v3285_v3 = vld [vmem:[%s5362_s12 + $0x68] sm:$0xff]  ;;  %v3293_v12 = vpack.c.bf16 %v3279_v10, %v3278_v8  ;;  %v3274_v6 = vld [vmem:[%s5362_s12 + $0x10] sm:$0xff]  ;;  %v3272_v10 = vld [vmem:[%s5362_s12] sm:$0xff] }
 0xfbf   : > { %v3296_v23 = vpack.c.bf16 %v3285_v3, %v3284_v40  ;;  %3938 = vmatprep.subr.bf16.mxu0 %v3297_v43 }
 0xfc0   : > { %4231 = vtanh.f32 %v3095_v41  ;;  %v3093_v2 = vmul.f32 0.7978846, %v3089_v16  ;;  %3931 = vmatpush3.bf16.msra.mxu1 %v3205_v61  ;;  %3939 = vmatpush3.bf16.msra.mxu0 %v3297_v43 }
 0xfc1   : > { %3932 = vmatprep.subr.bf16.mxu1 %v3204_v1  ;;  %3940 = vmatprep.subr.bf16.mxu0 %v3296_v23 }
 0xfc2   : > { %4233 = vtanh.f32 %v3093_v2 }
 0xfc4   : > { %3933 = vmatpush3.bf16.msra.mxu1 %v3204_v1  ;;  %3941 = vmatpush3.bf16.msra.mxu0 %v3296_v23 }
 0xfc5   : > { %3942 = vmatprep.subr.bf16.mxu0 %v3295_v32 }
 0xfc8   : > { %3943 = vmatpush3.bf16.msra.mxu0 %v3295_v32  ;;  %v3277_v32 = vld [vmem:[%s5362_s12 + $0x28] sm:$0xff] }
 0xfc9   : > { %v4228_v5 = vpop.eup %4227  ;;  %3944 = vmatprep.subr.bf16.mxu0 %v3294_v7 }
 0xfca   : > { %v3102_v19 = vadd.f32 1.0, %v4228_v5 }
 0xfcb   : > { %v4230_v21 = vpop.eup %4229 }
 0xfcc   : > { %v5165_v25 = vmul.f32 %v3102_v19, %v3074_v62  ;;  %v3100_v27 = vadd.f32 1.0, %v4230_v21  ;;  %3945 = vmatpush3.bf16.msra.mxu0 %v3294_v7  ;;  %v3275_v7 = vld [vmem:[%s5362_s12 + $0x18] sm:$0xff] }
 0xfcd   : > { %v4232_v11 = vpop.eup %4231  ;;  %3946 = vmatprep.subr.bf16.mxu0 %v3293_v12  ;;  %v3291_v8 = vpack.c.bf16 %v3275_v7, %v3274_v6 }
 0xfce   : > { %3114 = vadd.xlane.f32.xlu1 %v5165_v25  ;;  %v5168_v49 = vmul.f32 %v3100_v27, %v3072_v26  ;;  %v3103_v29 = vadd.f32 1.0, %v4232_v11  ;;  %v3124_v63 = vmul.f32 %v5165_v25, %v5165_v25 }
 0xfcf   : > { %v4234_v30 = vpop.eup %4233 }
 0xfd0   : > { %3110 = vadd.xlane.f32.xlu0 %v5168_v49  ;;  %v5171_v18 = vmul.f32 %v3103_v29, %v3075_v24  ;;  %v3101_v15 = vadd.f32 1.0, %v4234_v30  ;;  %v3122_v4 = vmul.f32 %v5168_v49, %v5168_v49  ;;  %3947 = vmatpush3.bf16.msra.mxu0 %v3293_v12  ;;  %v3273_v12 = vld [vmem:[%s5362_s12 + $0x8] sm:$0xff] }
 0xfd2   : > { %3116 = vadd.xlane.f32.xlu1 %v5171_v18  ;;  %v5176_v9 = vmul.f32 %v3101_v15, %v3073_v17  ;;  %v3125_v20 = vmul.f32 %v5171_v18, %v5171_v18 }
 0xfd4   : > { %3126 = vadd.xlane.f32.xlu0 %v3122_v4  ;;  %v3123_v31 = vmul.f32 %v5176_v9, %v5176_v9 }
 0xfd6   : > { %3128 = vadd.xlane.f32.xlu1 %v3123_v31 }
 0xfd8   : > { %3112 = vadd.xlane.f32.xlu0 %v5176_v9 }
 0xfda   : > { %3132 = vadd.xlane.f32.xlu1 %v3125_v20 }
 0xfdc   : > { %3130 = vadd.xlane.f32.xlu0 %v3124_v63 }
0x1057   : > { %v3115_v13 = vpop.xlane.xlu1 %3114 }
0x1058   : > { %v3120_v27 = vmul.f32 0.0078125, %v3115_v13  ;;  %v3290_v13 = vpack.c.bf16 %v3273_v12, %v3272_v10 }
0x1059   : > { %v3111_v14 = vpop.xlane.xlu0 %3110 }
0x105a   : > { %v3118_v41 = vmul.f32 0.0078125, %v3111_v14  ;;  %v3140_v63 = vmul.f32 %v3120_v27, %v3120_v27  ;;  %v3152_v57 = vsub.f32 %v5165_v25, %v3120_v27  ;;  %v3276_v25 = vld [vmem:[%s5362_s12 + $0x20] sm:$0xff] }
0x105b   : > { %v3117_v16 = vpop.xlane.xlu1 %3116  ;;  %v3292_v44 = vpack.c.bf16 %v3277_v32, %v3276_v25 }
0x105c   : > { %v3138_v5 = vmul.f32 %v3118_v41, %v3118_v41  ;;  %v3121_v19 = vmul.f32 0.0078125, %v3117_v16  ;;  %v3150_v51 = vsub.f32 %v5168_v49, %v3118_v41  ;;  %v3658_v49 = vld [vmem:[%s5364_s29] ss:$0 sm:$0xff]  ;;  %s5368_s29 = smov %s5367_s27 }
0x105d   : > { %v3127_v2 = vpop.xlane.xlu0 %3126  ;;  %3948 = vmatprep.subr.bf16.mxu0 %v3292_v44  ;;  %v3659_v16 = vld [vmem:[%s5365_s3] ss:$0 sm:$0xff] }
0x105e   : > { %v3134_v62 = vmul.f32 0.0078125, %v3127_v2  ;;  %v3141_v30 = vmul.f32 %v3121_v19, %v3121_v19  ;;  %v3153_v55 = vsub.f32 %v5171_v18, %v3121_v19  ;;  %3949 = vmatpush3.bf16.msra.mxu0 %v3292_v44 }
0x105f   : > { %v3129_v21 = vpop.xlane.xlu1 %3128  ;;  %3950 = vmatprep.subr.bf16.mxu0 %v3291_v8 }
0x1060   : > { %v3142_v26 = vsub.f32 %v3134_v62, %v3138_v5  ;;  %v3135_v4 = vmul.f32 0.0078125, %v3129_v21 }
0x1061   : > { %v3113_v11 = vpop.xlane.xlu0 %3112 }
0x1062   : > { %v3146_v24 = vmax.f32 %v3142_v26, 0.0  ;;  %v3119_v29 = vmul.f32 0.0078125, %v3113_v11  ;;  %3951 = vmatpush3.bf16.msra.mxu0 %v3291_v8 }
0x1063   : > { %v3133_v17 = vpop.xlane.xlu1 %3132  ;;  %3952 = vmatprep.subr.bf16.mxu0 %v3290_v13 }
0x1064   : > { %v3154_v15 = vadd.f32 1e-12, %v3146_v24  ;;  %v3139_v31 = vmul.f32 %v3119_v29, %v3119_v29  ;;  %v3137_v20 = vmul.f32 0.0078125, %v3133_v17  ;;  %v3151_v53 = vsub.f32 %v5176_v9, %v3119_v29 }
0x1065   : > { %v3131_v33 = vpop.xlane.xlu0 %3130 }
0x1066   : > { %4235 = vrsqrt.f32 %v3154_v15  ;;  %v3143_v35 = vsub.f32 %v3135_v4, %v3139_v31  ;;  %v3145_v0 = vsub.f32 %v3137_v20, %v3141_v30  ;;  %v3136_v37 = vmul.f32 0.0078125, %v3131_v33  ;;  %3953 = vmatpush3.bf16.msra.mxu0 %v3290_v13  ;;  %v3660_v15 = vld [vmem:[%s5366_s4] ss:$0 sm:$0xff] }
0x1068   : > { %v3147_v42 = vmax.f32 %v3143_v35, 0.0  ;;  %v3149_v36 = vmax.f32 %v3145_v0, 0.0  ;;  %v3144_v45 = vsub.f32 %v3136_v37, %v3140_v63 }
0x106a   : > { %v3155_v48 = vadd.f32 1e-12, %v3147_v42  ;;  %v3157_v46 = vadd.f32 1e-12, %v3149_v36  ;;  %v3148_v28 = vmax.f32 %v3144_v45, 0.0 }
0x106c   : > { %4237 = vrsqrt.f32 %v3155_v48  ;;  %v3156_v47 = vadd.f32 1e-12, %v3148_v28 }
0x106d   : > { %4239 = vrsqrt.f32 %v3157_v46 }
0x106e   : > { %4241 = vrsqrt.f32 %v3156_v47 }
0x1073   : > { %v4236_v50 = vpop.eup %4235 }
0x1074   : > { %v3162_v52 = vmul.f32 %v4236_v50, %v3150_v51 }
0x1076   : > { %v3172_v61 = vmul.f32 %v3657_v58, %v3162_v52 }
0x1078   : > { %v3182_v43 = vadd.f32 %v3658_v49, %v3172_v61 }
0x1079   : > { %v4238_v54 = vpop.eup %4237 }
0x107a   : > { %v4240_v56 = vpop.eup %4239  ;;  %v3163_v59 = vmul.f32 %v4238_v54, %v3151_v53 }
0x107b   : > { %v4242_v60 = vpop.eup %4241  ;;  %v3165_v1 = vmul.f32 %v4240_v56, %v3153_v55 }
0x107c   : > { %v3173_v38 = vmul.f32 %v3657_v58, %v3163_v59  ;;  %v3164_v39 = vmul.f32 %v4242_v60, %v3152_v57 }
0x107d   : > { %v3175_v40 = vmul.f32 %v3657_v58, %v3165_v1 }
0x107e   : > { %v3183_v3 = vadd.f32 %v3658_v49, %v3173_v38  ;;  %v3174_v9 = vmul.f32 %v3657_v58, %v3164_v39 }
0x107f   : > { %v3185_v18 = vadd.f32 %v3658_v49, %v3175_v40 }
0x1080   : > { %v3202_v23 = vpack.c.bf16 %v3183_v3, %v3182_v43  ;;  %v3184_v22 = vadd.f32 %v3658_v49, %v3174_v9 }
0x1082   : > { %3934 = vmatprep.mubr.bf16.mxu1 %v3202_v23  ;;  %v3203_v34 = vpack.c.bf16 %v3185_v18, %v3184_v22 }
0x1084   : > { %3935 = vmatmul.mubr.bf16.vlgmr.msra.gmra.mxu1 %v3203_v34 }
0x1144   : > { %v3936_v14 = vpop.f32.mrf.mxu1 }
0x1145   : > { %v3262_v19 = vadd.f32 %v3936_v14, %v3659_v16 }
0x1146   : > { %v3253_v41 = vpop.f32.mrf.mxu1 }
0x1147   : > { %v3254_v5 = vadd.f32 %v3659_v16, %v3253_v41  ;;  %v3270_v29 = vmax.f32 %v3262_v19, 0.0 }
0x1148   : > { %v3937_v2 = vpop.f32.mrf.mxu1 }
0x1149   : > { %v3265_v62 = vadd.f32 %v3937_v2, %v3659_v16  ;;  %v3268_v11 = vmax.f32 %v3254_v5, 0.0 }
0x114a   : > { %v3256_v21 = vpop.f32.mrf.mxu1 }
0x114b   : > { %v3257_v26 = vadd.f32 %v3659_v16, %v3256_v21  ;;  %v3271_v27 = vmax.f32 %v3265_v62, 0.0 }
0x114d   : > { %v3269_v24 = vmax.f32 %v3257_v26, 0.0  ;;  %v3289_v17 = vpack.c.bf16 %v3271_v27, %v3270_v29 }
0x114f   : > { %v3288_v30 = vpack.c.bf16 %v3269_v24, %v3268_v11 }
0x1151   : > { %3954 = vmatprep.mubr.bf16.mxu0 %v3288_v30 }
0x1152   : > { %3955 = vmatmul.mubr.bf16.vlgmr.msra.gmra.mxu0 %v3289_v17 }
0x1212   : > { %v3956_v4 = vpop.f32.mrf.mxu0 }
0x1213   : > { %v3348_v31 = vadd.f32 %v3956_v4, %v3660_v15 }
0x1214   : > { %v3339_v20 = vpop.f32.mrf.mxu0 }
0x1215   : > { %3357 = vst.msk [vmem:[%s5367_s27 + $0x10] sm:$0xff] %vm3354_vm1, %v3348_v31  ;;  %v3340_v63 = vadd.f32 %v3660_v15, %v3339_v20 }
0x1216   : > { %v3957_v33 = vpop.f32.mrf.mxu0 }
0x1217   : > { %3355 = vst.msk [vmem:[%s5368_s29] sm:$0xff] %vm3354_vm1, %v3340_v63  ;;  %v3351_v35 = vadd.f32 %v3957_v33, %v3660_v15 }
0x1218   : > { %v3342_v0 = vpop.f32.mrf.mxu0 }
0x1219   : > { %3358 = vst.msk [vmem:[%s5368_s29 + $0x18] sm:$0xff] %vm3354_vm1, %v3351_v35  ;;  %v3343_v37 = vadd.f32 %v3660_v15, %v3342_v0 }
0x121b   : > { %3356 = vst.msk [vmem:[%s5368_s29 + $0x8] sm:$0xff] %vm3354_vm1, %v3343_v37 }
0x121c PF: > { %s5369_s28 = sld [smem:[#allocation13_spill]] }
0x121d   : > { %s5370_s5 = sld [smem:[#allocation11_spill]] }
0x121e   : > { %s5371_s26 = sld [smem:[#allocation12_spill]] }
0x121f   : > { %s5372_s27 = sld [smem:[#allocation14_spill]] }
0x1222   : > { %p37_p11 = scmp.ge.s32.totalorder %s5369_s28, 4  }
0x1224   :  { %39 = sbr.rel (!%p37_p11) target bundleno = 26 (0x1a), region = 207 }
0x1229   :  { %3370 = vsyncpa [#allocation4], 1 }
0x122a   :  { %3372 = vsyncpa [#allocation4 + $0x1], 1 }
0x122b   :  { %3373 = vsyncpa [#allocation6], 1 }
0x122c   :  { %3375 = vsyncpa [#allocation6 + $0x1], 1 }

</bundles_post_ra>
